<compile_context>
chip_gen: v5e
topology: v5e:2x2
jax: 0.10.0
libtpu: 0.0.40
codegen_flags: <defaults>
</compile_context>

<pallas_src>
import jax
import jax.numpy as jnp
from jax import lax
from jax.experimental import pallas as pl
from jax.experimental.pallas import tpu as pltpu

NEG_SLOPE = 0.01   # nn.LeakyReLU default
BN_EPS = 1e-5      # nn.BatchNorm1d default


def _bn_lrelu(y, gamma, beta, axis):
    """Training-mode BatchNorm1d (biased variance over `axis`) + LeakyReLU(0.01).

    Single-pass statistics (mean and mean-of-squares), normalization folded
    into one fused multiply-add over the activations.
    """
    mean = jnp.mean(y, axis=axis, keepdims=True)
    ms = jnp.mean(y * y, axis=axis, keepdims=True)
    var = jnp.maximum(ms - mean * mean, 0.0)
    s = gamma * lax.rsqrt(var + BN_EPS)        # per-channel scale
    t = beta - mean * s                        # per-channel shift
    yh = y * s + t
    return jnp.where(yh >= 0, yh, NEG_SLOPE * yh)


# ------------------------------ fused kernel -------------------------------- #
def vae_kernel(x_ref, eps_ref,
               w0_ref, g0_ref, be0_ref,
               w1_ref, g1_ref, be1_ref,
               w2_ref, g2_ref, be2_ref,
               w3_ref, g3_ref, be3_ref,
               whead_ref, bhead_ref,
               wdi_ref, bdi_ref,
               wd1_ref, gd1_ref, bed1_ref,
               wd2_ref, gd2_ref, bed2_ref,
               wf_ref, bf_ref,
               head_ref, z_ref, recon_ref):
    B, L = eps_ref.shape
    M = x_ref.shape[1]                 # B * N  (points, lane-dense)
    N = M // B

    # ----- encoder: activations (C, B*N); Conv1d(k=1) == W(Cout,Cin) @ h(Cin,M).
    # Pre-BN biases omitted (cancelled by the BN mean subtraction).
    h = x_ref[...]
    for w_ref, g_ref, be_ref in ((w0_ref, g0_ref, be0_ref),
                                 (w1_ref, g1_ref, be1_ref),
                                 (w2_ref, g2_ref, be2_ref),
                                 (w3_ref, g3_ref, be3_ref)):
        y = jnp.dot(w_ref[...], h.astype(jnp.bfloat16),
                    preferred_element_type=jnp.float32)
        h = _bn_lrelu(y, g_ref[...], be_ref[...], axis=1)

    # torch.max over the point axis: (L, B*N) -> (L, B, N) -> (L, B) -> (B, L)
    pooled = jnp.max(h.reshape(L, B, N), axis=-1).T

    # packed fc_mu | fc_var head: one K=L, N=2L dot -> (B, 2L)
    head = (jnp.dot(pooled.astype(jnp.bfloat16), whead_ref[...],
                    preferred_element_type=jnp.float32) + bhead_ref[...])
    head_ref[...] = head
    mu = head[:, :L]
    logvar = head[:, L:]

    # reparameterize: z = eps * exp(0.5 * logvar) + mu
    z = eps_ref[...] * jnp.exp(0.5 * logvar) + mu
    z_ref[...] = z

    # ----- decoder: activations (B, C), channels lane-dense.
    # decoder_input Linear keeps its bias (no BN after it).
    d = (jnp.dot(z.astype(jnp.bfloat16), wdi_ref[...],
                 preferred_element_type=jnp.float32) + bdi_ref[...])
    for w_ref, g_ref, be_ref in ((wd1_ref, gd1_ref, bed1_ref),
                                 (wd2_ref, gd2_ref, bed2_ref)):
        y = jnp.dot(d.astype(jnp.bfloat16), w_ref[...],
                    preferred_element_type=jnp.float32)
        d = _bn_lrelu(y, g_ref[...], be_ref[...], axis=0)

    # final_layer Linear -> (B, part_point_num * 3)  (lane-dense output store)
    recon_ref[...] = (jnp.dot(d.astype(jnp.bfloat16), wf_ref[...],
                              preferred_element_type=jnp.float32) + bf_ref[...])


# -------------------------------- wrapper ------------------------------------ #
def _full_spec(shape):
    nd = len(shape)
    return pl.BlockSpec(shape, lambda i, _nd=nd: (0,) * _nd)


def _vae_call(x2d, eps, p):
    B, L = eps.shape
    out_dim = p["bf"].shape[1]                 # part_point_num * 3
    args = [x2d, eps]
    for w, g, be in p["enc"]:
        args += [w, g, be]
    args += [p["whead"], p["bhead"], p["wdi"], p["bdi"]]
    for w, g, be in p["dec"]:
        args += [w, g, be]
    args += [p["wf"], p["bf"]]
    return pl.pallas_call(
        vae_kernel,
        grid=(1,),
        out_shape=(jax.ShapeDtypeStruct((B, 2 * L), jnp.float32),
                   jax.ShapeDtypeStruct((B, L), jnp.float32),
                   jax.ShapeDtypeStruct((B, out_dim), jnp.float32)),
        in_specs=[_full_spec(a.shape) for a in args],
        out_specs=(_full_spec((B, 2 * L)),
                   _full_spec((B, L)),
                   _full_spec((B, out_dim))),
        compiler_params=pltpu.CompilerParams(
            dimension_semantics=("arbitrary",)),
    )(*args)


@jax.jit
def vae_forward(x_ncw, eps, params):
    """Matches VAE.forward: returns (recon, z, mu, log_var)."""
    B, C, N = x_ncw.shape
    L = eps.shape[1]
    # PyTorch NCW (B, 3, N) -> lane-dense 2-D (3, B*N): points in the lane dim.
    x2d = jnp.transpose(x_ncw, (1, 0, 2)).reshape(C, B * N).astype(jnp.float32)
    head, z, recon_flat = _vae_call(x2d, eps, params)
    mu = head[:, :L]
    logvar = head[:, L:]
    part_point_num = params["bf"].shape[1] // 3
    recon = recon_flat.reshape(-1, part_point_num, 3)
    return recon, z, mu, logvar


# --------------------------- parameter construction -------------------------- #
def init_params(key, part_point_num, latent_dim):
    """Deterministic synthetic parameters in kernel layout.

    Encoder conv weights: (Cout, Cin) bf16 (kernel computes W @ h).
    Decoder linear weights: (Cin, Cout) bf16 (kernel computes h @ W).
    fc_mu/fc_var packed as one (L, 2L) weight. Biases of layers that feed a
    training-mode BatchNorm are omitted (mathematically cancelled).
    """
    keys = iter(jax.random.split(key, 64))

    def w_mat(shape, fan_in):
        w = jax.random.normal(next(keys), shape, jnp.float32) / jnp.sqrt(float(fan_in))
        return w.astype(jnp.bfloat16)

    def bias(shape):
        return 0.01 * jax.random.normal(next(keys), shape, jnp.float32)

    def bn(shape):
        g = 1.0 + 0.1 * jax.random.normal(next(keys), shape, jnp.float32)
        be = 0.1 * jax.random.normal(next(keys), shape, jnp.float32)
        return g, be

    L = latent_dim
    params = {}

    enc_dims = [3, 32, 64, 64, L]
    enc = []
    for i in range(len(enc_dims) - 1):
        cin, cout = enc_dims[i], enc_dims[i + 1]
        w = w_mat((cout, cin), cin)            # (Cout, Cin)
        g, be = bn((cout, 1))                  # per-channel, broadcast over lanes
        enc.append((w, g, be))
    params["enc"] = enc

    params["whead"] = w_mat((L, 2 * L), L)     # [fc_mu | fc_var]
    params["bhead"] = bias((1, 2 * L))
    params["wdi"] = w_mat((L, L), L)
    params["bdi"] = bias((1, L))

    dec_dims = [L, 128, 512]
    dec = []
    for i in range(len(dec_dims) - 1):
        cin, cout = dec_dims[i], dec_dims[i + 1]
        w = w_mat((cin, cout), cin)            # (Cin, Cout)
        g, be = bn((1, cout))
        dec.append((w, g, be))
    params["dec"] = dec

    params["wf"] = w_mat((512, part_point_num * 3), 512)
    params["bf"] = bias((1, part_point_num * 3))
    return params


if __name__ == "__main__":
    B = 4
    part_point_num = 128
    latent_dim = 32

    key = jax.random.PRNGKey(0)
    kx, keps, kp = jax.random.split(key, 3)

    # PyTorch-style NCW input point cloud (B, 3, N)
    x = jax.random.normal(kx, (B, 3, part_point_num), jnp.float32)
    # Noise for reparameterize (torch.randn_like(std)), generated host-side
    eps = jax.random.normal(keps, (B, latent_dim), jnp.float32)
    params = init_params(kp, part_point_num, latent_dim)

    recon, z, mu, logvar = vae_forward(x, eps, params)
    jax.block_until_ready((recon, z, mu, logvar))

    assert recon.shape == (B, part_point_num, 3)
    assert z.shape == (B, latent_dim)
    assert mu.shape == (B, latent_dim)
    assert logvar.shape == (B, latent_dim)
    assert bool(jnp.all(jnp.isfinite(recon)))
    assert bool(jnp.all(jnp.isfinite(z)))
    print("KERNEL_OK")
</pallas_src>

<mosaic_0001>
module attributes {stable_mosaic.version = 11 : i64} {
  func.func @vae_kernel(%arg0: i32, %arg1: memref<3x512xf32, #tpu.memory_space<vmem>>, %arg2: memref<4x32xf32, #tpu.memory_space<vmem>>, %arg3: memref<32x3xbf16, #tpu.memory_space<vmem>>, %arg4: memref<32x1xf32, #tpu.memory_space<vmem>>, %arg5: memref<32x1xf32, #tpu.memory_space<vmem>>, %arg6: memref<64x32xbf16, #tpu.memory_space<vmem>>, %arg7: memref<64x1xf32, #tpu.memory_space<vmem>>, %arg8: memref<64x1xf32, #tpu.memory_space<vmem>>, %arg9: memref<64x64xbf16, #tpu.memory_space<vmem>>, %arg10: memref<64x1xf32, #tpu.memory_space<vmem>>, %arg11: memref<64x1xf32, #tpu.memory_space<vmem>>, %arg12: memref<32x64xbf16, #tpu.memory_space<vmem>>, %arg13: memref<32x1xf32, #tpu.memory_space<vmem>>, %arg14: memref<32x1xf32, #tpu.memory_space<vmem>>, %arg15: memref<32x64xbf16, #tpu.memory_space<vmem>>, %arg16: memref<1x64xf32, #tpu.memory_space<vmem>>, %arg17: memref<32x32xbf16, #tpu.memory_space<vmem>>, %arg18: memref<1x32xf32, #tpu.memory_space<vmem>>, %arg19: memref<32x128xbf16, #tpu.memory_space<vmem>>, %arg20: memref<1x128xf32, #tpu.memory_space<vmem>>, %arg21: memref<1x128xf32, #tpu.memory_space<vmem>>, %arg22: memref<128x512xbf16, #tpu.memory_space<vmem>>, %arg23: memref<1x512xf32, #tpu.memory_space<vmem>>, %arg24: memref<1x512xf32, #tpu.memory_space<vmem>>, %arg25: memref<512x384xbf16, #tpu.memory_space<vmem>>, %arg26: memref<1x384xf32, #tpu.memory_space<vmem>>, %arg27: memref<4x64xf32, #tpu.memory_space<vmem>>, %arg28: memref<4x32xf32, #tpu.memory_space<vmem>>, %arg29: memref<4x384xf32, #tpu.memory_space<vmem>>) attributes {dimension_semantics = [#tpu.dimension_semantics<arbitrary>], iteration_bounds = array<i64: 1>, scalar_prefetch = 0 : i64, scratch_operands = 0 : i64, tpu.core_type = #tpu.core_type<tc>, window_params = [{pipeline_mode = #tpu.pipeline_mode<synchronous>, transform_indices = @transform_0, window_bounds = array<i64: 3, 512>}, {pipeline_mode = #tpu.pipeline_mode<synchronous>, transform_indices = @transform_1, window_bounds = array<i64: 4, 32>}, {pipeline_mode = #tpu.pipeline_mode<synchronous>, transform_indices = @transform_2, window_bounds = array<i64: 32, 3>}, {pipeline_mode = #tpu.pipeline_mode<synchronous>, transform_indices = @transform_3, window_bounds = array<i64: 32, 1>}, {pipeline_mode = #tpu.pipeline_mode<synchronous>, transform_indices = @transform_4, window_bounds = array<i64: 32, 1>}, {pipeline_mode = #tpu.pipeline_mode<synchronous>, transform_indices = @transform_5, window_bounds = array<i64: 64, 32>}, {pipeline_mode = #tpu.pipeline_mode<synchronous>, transform_indices = @transform_6, window_bounds = array<i64: 64, 1>}, {pipeline_mode = #tpu.pipeline_mode<synchronous>, transform_indices = @transform_7, window_bounds = array<i64: 64, 1>}, {pipeline_mode = #tpu.pipeline_mode<synchronous>, transform_indices = @transform_8, window_bounds = array<i64: 64, 64>}, {pipeline_mode = #tpu.pipeline_mode<synchronous>, transform_indices = @transform_9, window_bounds = array<i64: 64, 1>}, {pipeline_mode = #tpu.pipeline_mode<synchronous>, transform_indices = @transform_10, window_bounds = array<i64: 64, 1>}, {pipeline_mode = #tpu.pipeline_mode<synchronous>, transform_indices = @transform_11, window_bounds = array<i64: 32, 64>}, {pipeline_mode = #tpu.pipeline_mode<synchronous>, transform_indices = @transform_12, window_bounds = array<i64: 32, 1>}, {pipeline_mode = #tpu.pipeline_mode<synchronous>, transform_indices = @transform_13, window_bounds = array<i64: 32, 1>}, {pipeline_mode = #tpu.pipeline_mode<synchronous>, transform_indices = @transform_14, window_bounds = array<i64: 32, 64>}, {pipeline_mode = #tpu.pipeline_mode<synchronous>, transform_indices = @transform_15, window_bounds = array<i64: 1, 64>}, {pipeline_mode = #tpu.pipeline_mode<synchronous>, transform_indices = @transform_16, window_bounds = array<i64: 32, 32>}, {pipeline_mode = #tpu.pipeline_mode<synchronous>, transform_indices = @transform_17, window_bounds = array<i64: 1, 32>}, {pipeline_mode = #tpu.pipeline_mode<synchronous>, transform_indices = @transform_18, window_bounds = array<i64: 32, 128>}, {pipeline_mode = #tpu.pipeline_mode<synchronous>, transform_indices = @transform_19, window_bounds = array<i64: 1, 128>}, {pipeline_mode = #tpu.pipeline_mode<synchronous>, transform_indices = @transform_20, window_bounds = array<i64: 1, 128>}, {pipeline_mode = #tpu.pipeline_mode<synchronous>, transform_indices = @transform_21, window_bounds = array<i64: 128, 512>}, {pipeline_mode = #tpu.pipeline_mode<synchronous>, transform_indices = @transform_22, window_bounds = array<i64: 1, 512>}, {pipeline_mode = #tpu.pipeline_mode<synchronous>, transform_indices = @transform_23, window_bounds = array<i64: 1, 512>}, {pipeline_mode = #tpu.pipeline_mode<synchronous>, transform_indices = @transform_24, window_bounds = array<i64: 512, 384>}, {pipeline_mode = #tpu.pipeline_mode<synchronous>, transform_indices = @transform_25, window_bounds = array<i64: 1, 384>}, {pipeline_mode = #tpu.pipeline_mode<synchronous>, transform_indices = @transform_26, window_bounds = array<i64: 4, 64>}, {pipeline_mode = #tpu.pipeline_mode<synchronous>, transform_indices = @transform_27, window_bounds = array<i64: 4, 32>}, {pipeline_mode = #tpu.pipeline_mode<synchronous>, transform_indices = @transform_28, window_bounds = array<i64: 4, 384>}]} {
    %c0 = arith.constant 0 : index
    %c0_0 = arith.constant 0 : index
    %0 = vector.load %arg1[%c0, %c0_0] : memref<3x512xf32, #tpu.memory_space<vmem>>, vector<3x512xf32>
    %c0_1 = arith.constant 0 : index
    %c0_2 = arith.constant 0 : index
    %1 = vector.load %arg3[%c0_1, %c0_2] : memref<32x3xbf16, #tpu.memory_space<vmem>>, vector<32x3xbf16>
    %2 = arith.truncf %0 : vector<3x512xf32> to vector<3x512xbf16>
    %cst = arith.constant dense<0.000000e+00> : vector<32x512xf32>
    %3 = tpu.matmul %1, %2, %cst {dimension_numbers = #tpu.dot_dimension_numbers<[1], [0], [0], [1], [0, 0, 1, 1], [], []>} : vector<32x3xbf16>, vector<3x512xbf16>, vector<32x512xf32> -> vector<32x512xf32>
    %c0_3 = arith.constant 0 : index
    %c0_4 = arith.constant 0 : index
    %4 = vector.load %arg4[%c0_3, %c0_4] : memref<32x1xf32, #tpu.memory_space<vmem>>, vector<32x1xf32>
    %c0_5 = arith.constant 0 : index
    %c0_6 = arith.constant 0 : index
    %5 = vector.load %arg5[%c0_5, %c0_6] : memref<32x1xf32, #tpu.memory_space<vmem>>, vector<32x1xf32>
    %cst_7 = arith.constant dense<0.000000e+00> : vector<32xf32>
    %6 = vector.multi_reduction <add>, %3, %cst_7 [1] : vector<32x512xf32> to vector<32xf32>
    %7 = vector.shape_cast %6 : vector<32xf32> to vector<32x1xf32>
    %cst_8 = arith.constant 5.120000e+02 : f32
    %8 = vector.broadcast %cst_8 : f32 to vector<32x1xf32>
    %9 = arith.divf %7, %8 : vector<32x1xf32>
    %10 = arith.mulf %3, %3 : vector<32x512xf32>
    %cst_9 = arith.constant dense<0.000000e+00> : vector<32xf32>
    %11 = vector.multi_reduction <add>, %10, %cst_9 [1] : vector<32x512xf32> to vector<32xf32>
    %12 = vector.shape_cast %11 : vector<32xf32> to vector<32x1xf32>
    %cst_10 = arith.constant 5.120000e+02 : f32
    %13 = vector.broadcast %cst_10 : f32 to vector<32x1xf32>
    %14 = arith.divf %12, %13 : vector<32x1xf32>
    %15 = arith.mulf %9, %9 : vector<32x1xf32>
    %16 = arith.subf %14, %15 : vector<32x1xf32>
    %cst_11 = arith.constant 0.000000e+00 : f32
    %17 = vector.broadcast %cst_11 : f32 to vector<32x1xf32>
    %18 = arith.maximumf %16, %17 : vector<32x1xf32>
    %cst_12 = arith.constant 9.99999974E-6 : f32
    %19 = vector.broadcast %cst_12 : f32 to vector<32x1xf32>
    %20 = arith.addf %18, %19 : vector<32x1xf32>
    %21 = math.rsqrt %20 : vector<32x1xf32>
    %22 = arith.mulf %4, %21 : vector<32x1xf32>
    %23 = arith.mulf %9, %22 : vector<32x1xf32>
    %24 = arith.subf %5, %23 : vector<32x1xf32>
    %25 = vector.broadcast %22 : vector<32x1xf32> to vector<32x512xf32>
    %26 = arith.mulf %3, %25 : vector<32x512xf32>
    %27 = vector.broadcast %24 : vector<32x1xf32> to vector<32x512xf32>
    %28 = arith.addf %26, %27 : vector<32x512xf32>
    %cst_13 = arith.constant 0.000000e+00 : f32
    %29 = vector.broadcast %cst_13 : f32 to vector<32x512xf32>
    %30 = arith.cmpf oge, %28, %29 : vector<32x512xf32>
    %cst_14 = arith.constant 0.00999999977 : f32
    %31 = vector.broadcast %cst_14 : f32 to vector<32x512xf32>
    %32 = arith.mulf %31, %28 : vector<32x512xf32>
    %33 = arith.select %30, %28, %32 : vector<32x512xi1>, vector<32x512xf32>
    %c0_15 = arith.constant 0 : index
    %c0_16 = arith.constant 0 : index
    %34 = vector.load %arg6[%c0_15, %c0_16] : memref<64x32xbf16, #tpu.memory_space<vmem>>, vector<64x32xbf16>
    %35 = arith.truncf %33 : vector<32x512xf32> to vector<32x512xbf16>
    %cst_17 = arith.constant dense<0.000000e+00> : vector<64x512xf32>
    %36 = tpu.matmul %34, %35, %cst_17 {dimension_numbers = #tpu.dot_dimension_numbers<[1], [0], [0], [1], [0, 0, 1, 1], [], []>} : vector<64x32xbf16>, vector<32x512xbf16>, vector<64x512xf32> -> vector<64x512xf32>
    %c0_18 = arith.constant 0 : index
    %c0_19 = arith.constant 0 : index
    %37 = vector.load %arg7[%c0_18, %c0_19] : memref<64x1xf32, #tpu.memory_space<vmem>>, vector<64x1xf32>
    %c0_20 = arith.constant 0 : index
    %c0_21 = arith.constant 0 : index
    %38 = vector.load %arg8[%c0_20, %c0_21] : memref<64x1xf32, #tpu.memory_space<vmem>>, vector<64x1xf32>
    %cst_22 = arith.constant dense<0.000000e+00> : vector<64xf32>
    %39 = vector.multi_reduction <add>, %36, %cst_22 [1] : vector<64x512xf32> to vector<64xf32>
    %40 = vector.shape_cast %39 : vector<64xf32> to vector<64x1xf32>
    %cst_23 = arith.constant 5.120000e+02 : f32
    %41 = vector.broadcast %cst_23 : f32 to vector<64x1xf32>
    %42 = arith.divf %40, %41 : vector<64x1xf32>
    %43 = arith.mulf %36, %36 : vector<64x512xf32>
    %cst_24 = arith.constant dense<0.000000e+00> : vector<64xf32>
    %44 = vector.multi_reduction <add>, %43, %cst_24 [1] : vector<64x512xf32> to vector<64xf32>
    %45 = vector.shape_cast %44 : vector<64xf32> to vector<64x1xf32>
    %cst_25 = arith.constant 5.120000e+02 : f32
    %46 = vector.broadcast %cst_25 : f32 to vector<64x1xf32>
    %47 = arith.divf %45, %46 : vector<64x1xf32>
    %48 = arith.mulf %42, %42 : vector<64x1xf32>
    %49 = arith.subf %47, %48 : vector<64x1xf32>
    %cst_26 = arith.constant 0.000000e+00 : f32
    %50 = vector.broadcast %cst_26 : f32 to vector<64x1xf32>
    %51 = arith.maximumf %49, %50 : vector<64x1xf32>
    %cst_27 = arith.constant 9.99999974E-6 : f32
    %52 = vector.broadcast %cst_27 : f32 to vector<64x1xf32>
    %53 = arith.addf %51, %52 : vector<64x1xf32>
    %54 = math.rsqrt %53 : vector<64x1xf32>
    %55 = arith.mulf %37, %54 : vector<64x1xf32>
    %56 = arith.mulf %42, %55 : vector<64x1xf32>
    %57 = arith.subf %38, %56 : vector<64x1xf32>
    %58 = vector.broadcast %55 : vector<64x1xf32> to vector<64x512xf32>
    %59 = arith.mulf %36, %58 : vector<64x512xf32>
    %60 = vector.broadcast %57 : vector<64x1xf32> to vector<64x512xf32>
    %61 = arith.addf %59, %60 : vector<64x512xf32>
    %cst_28 = arith.constant 0.000000e+00 : f32
    %62 = vector.broadcast %cst_28 : f32 to vector<64x512xf32>
    %63 = arith.cmpf oge, %61, %62 : vector<64x512xf32>
    %cst_29 = arith.constant 0.00999999977 : f32
    %64 = vector.broadcast %cst_29 : f32 to vector<64x512xf32>
    %65 = arith.mulf %64, %61 : vector<64x512xf32>
    %66 = arith.select %63, %61, %65 : vector<64x512xi1>, vector<64x512xf32>
    %c0_30 = arith.constant 0 : index
    %c0_31 = arith.constant 0 : index
    %67 = vector.load %arg9[%c0_30, %c0_31] : memref<64x64xbf16, #tpu.memory_space<vmem>>, vector<64x64xbf16>
    %68 = arith.truncf %66 : vector<64x512xf32> to vector<64x512xbf16>
    %cst_32 = arith.constant dense<0.000000e+00> : vector<64x512xf32>
    %69 = tpu.matmul %67, %68, %cst_32 {dimension_numbers = #tpu.dot_dimension_numbers<[1], [0], [0], [1], [0, 0, 1, 1], [], []>} : vector<64x64xbf16>, vector<64x512xbf16>, vector<64x512xf32> -> vector<64x512xf32>
    %c0_33 = arith.constant 0 : index
    %c0_34 = arith.constant 0 : index
    %70 = vector.load %arg10[%c0_33, %c0_34] : memref<64x1xf32, #tpu.memory_space<vmem>>, vector<64x1xf32>
    %c0_35 = arith.constant 0 : index
    %c0_36 = arith.constant 0 : index
    %71 = vector.load %arg11[%c0_35, %c0_36] : memref<64x1xf32, #tpu.memory_space<vmem>>, vector<64x1xf32>
    %cst_37 = arith.constant dense<0.000000e+00> : vector<64xf32>
    %72 = vector.multi_reduction <add>, %69, %cst_37 [1] : vector<64x512xf32> to vector<64xf32>
    %73 = vector.shape_cast %72 : vector<64xf32> to vector<64x1xf32>
    %cst_38 = arith.constant 5.120000e+02 : f32
    %74 = vector.broadcast %cst_38 : f32 to vector<64x1xf32>
    %75 = arith.divf %73, %74 : vector<64x1xf32>
    %76 = arith.mulf %69, %69 : vector<64x512xf32>
    %cst_39 = arith.constant dense<0.000000e+00> : vector<64xf32>
    %77 = vector.multi_reduction <add>, %76, %cst_39 [1] : vector<64x512xf32> to vector<64xf32>
    %78 = vector.shape_cast %77 : vector<64xf32> to vector<64x1xf32>
    %cst_40 = arith.constant 5.120000e+02 : f32
    %79 = vector.broadcast %cst_40 : f32 to vector<64x1xf32>
    %80 = arith.divf %78, %79 : vector<64x1xf32>
    %81 = arith.mulf %75, %75 : vector<64x1xf32>
    %82 = arith.subf %80, %81 : vector<64x1xf32>
    %cst_41 = arith.constant 0.000000e+00 : f32
    %83 = vector.broadcast %cst_41 : f32 to vector<64x1xf32>
    %84 = arith.maximumf %82, %83 : vector<64x1xf32>
    %cst_42 = arith.constant 9.99999974E-6 : f32
    %85 = vector.broadcast %cst_42 : f32 to vector<64x1xf32>
    %86 = arith.addf %84, %85 : vector<64x1xf32>
    %87 = math.rsqrt %86 : vector<64x1xf32>
    %88 = arith.mulf %70, %87 : vector<64x1xf32>
    %89 = arith.mulf %75, %88 : vector<64x1xf32>
    %90 = arith.subf %71, %89 : vector<64x1xf32>
    %91 = vector.broadcast %88 : vector<64x1xf32> to vector<64x512xf32>
    %92 = arith.mulf %69, %91 : vector<64x512xf32>
    %93 = vector.broadcast %90 : vector<64x1xf32> to vector<64x512xf32>
    %94 = arith.addf %92, %93 : vector<64x512xf32>
    %cst_43 = arith.constant 0.000000e+00 : f32
    %95 = vector.broadcast %cst_43 : f32 to vector<64x512xf32>
    %96 = arith.cmpf oge, %94, %95 : vector<64x512xf32>
    %cst_44 = arith.constant 0.00999999977 : f32
    %97 = vector.broadcast %cst_44 : f32 to vector<64x512xf32>
    %98 = arith.mulf %97, %94 : vector<64x512xf32>
    %99 = arith.select %96, %94, %98 : vector<64x512xi1>, vector<64x512xf32>
    %c0_45 = arith.constant 0 : index
    %c0_46 = arith.constant 0 : index
    %100 = vector.load %arg12[%c0_45, %c0_46] : memref<32x64xbf16, #tpu.memory_space<vmem>>, vector<32x64xbf16>
    %101 = arith.truncf %99 : vector<64x512xf32> to vector<64x512xbf16>
    %cst_47 = arith.constant dense<0.000000e+00> : vector<32x512xf32>
    %102 = tpu.matmul %100, %101, %cst_47 {dimension_numbers = #tpu.dot_dimension_numbers<[1], [0], [0], [1], [0, 0, 1, 1], [], []>} : vector<32x64xbf16>, vector<64x512xbf16>, vector<32x512xf32> -> vector<32x512xf32>
    %c0_48 = arith.constant 0 : index
    %c0_49 = arith.constant 0 : index
    %103 = vector.load %arg13[%c0_48, %c0_49] : memref<32x1xf32, #tpu.memory_space<vmem>>, vector<32x1xf32>
    %c0_50 = arith.constant 0 : index
    %c0_51 = arith.constant 0 : index
    %104 = vector.load %arg14[%c0_50, %c0_51] : memref<32x1xf32, #tpu.memory_space<vmem>>, vector<32x1xf32>
    %cst_52 = arith.constant dense<0.000000e+00> : vector<32xf32>
    %105 = vector.multi_reduction <add>, %102, %cst_52 [1] : vector<32x512xf32> to vector<32xf32>
    %106 = vector.shape_cast %105 : vector<32xf32> to vector<32x1xf32>
    %cst_53 = arith.constant 5.120000e+02 : f32
    %107 = vector.broadcast %cst_53 : f32 to vector<32x1xf32>
    %108 = arith.divf %106, %107 : vector<32x1xf32>
    %109 = arith.mulf %102, %102 : vector<32x512xf32>
    %cst_54 = arith.constant dense<0.000000e+00> : vector<32xf32>
    %110 = vector.multi_reduction <add>, %109, %cst_54 [1] : vector<32x512xf32> to vector<32xf32>
    %111 = vector.shape_cast %110 : vector<32xf32> to vector<32x1xf32>
    %cst_55 = arith.constant 5.120000e+02 : f32
    %112 = vector.broadcast %cst_55 : f32 to vector<32x1xf32>
    %113 = arith.divf %111, %112 : vector<32x1xf32>
    %114 = arith.mulf %108, %108 : vector<32x1xf32>
    %115 = arith.subf %113, %114 : vector<32x1xf32>
    %cst_56 = arith.constant 0.000000e+00 : f32
    %116 = vector.broadcast %cst_56 : f32 to vector<32x1xf32>
    %117 = arith.maximumf %115, %116 : vector<32x1xf32>
    %cst_57 = arith.constant 9.99999974E-6 : f32
    %118 = vector.broadcast %cst_57 : f32 to vector<32x1xf32>
    %119 = arith.addf %117, %118 : vector<32x1xf32>
    %120 = math.rsqrt %119 : vector<32x1xf32>
    %121 = arith.mulf %103, %120 : vector<32x1xf32>
    %122 = arith.mulf %108, %121 : vector<32x1xf32>
    %123 = arith.subf %104, %122 : vector<32x1xf32>
    %124 = vector.broadcast %121 : vector<32x1xf32> to vector<32x512xf32>
    %125 = arith.mulf %102, %124 : vector<32x512xf32>
    %126 = vector.broadcast %123 : vector<32x1xf32> to vector<32x512xf32>
    %127 = arith.addf %125, %126 : vector<32x512xf32>
    %cst_58 = arith.constant 0.000000e+00 : f32
    %128 = vector.broadcast %cst_58 : f32 to vector<32x512xf32>
    %129 = arith.cmpf oge, %127, %128 : vector<32x512xf32>
    %cst_59 = arith.constant 0.00999999977 : f32
    %130 = vector.broadcast %cst_59 : f32 to vector<32x512xf32>
    %131 = arith.mulf %130, %127 : vector<32x512xf32>
    %132 = arith.select %129, %127, %131 : vector<32x512xi1>, vector<32x512xf32>
    %133 = vector.shape_cast %132 : vector<32x512xf32> to vector<32x4x128xf32>
    %cst_60 = arith.constant dense<0xFF800000> : vector<32x4xf32>
    %134 = vector.multi_reduction <maximumf>, %133, %cst_60 [2] : vector<32x4x128xf32> to vector<32x4xf32>
    %135 = tpu.transpose %134, [1, 0] : vector<32x4xf32> -> vector<4x32xf32>
    %136 = arith.truncf %135 : vector<4x32xf32> to vector<4x32xbf16>
    %c0_61 = arith.constant 0 : index
    %c0_62 = arith.constant 0 : index
    %137 = vector.load %arg15[%c0_61, %c0_62] : memref<32x64xbf16, #tpu.memory_space<vmem>>, vector<32x64xbf16>
    %cst_63 = arith.constant dense<0.000000e+00> : vector<4x64xf32>
    %138 = tpu.matmul %136, %137, %cst_63 {dimension_numbers = #tpu.dot_dimension_numbers<[1], [0], [0], [1], [0, 0, 1, 1], [], []>} : vector<4x32xbf16>, vector<32x64xbf16>, vector<4x64xf32> -> vector<4x64xf32>
    %c0_64 = arith.constant 0 : index
    %c0_65 = arith.constant 0 : index
    %139 = vector.load %arg16[%c0_64, %c0_65] : memref<1x64xf32, #tpu.memory_space<vmem>>, vector<1x64xf32>
    %140 = vector.broadcast %139 : vector<1x64xf32> to vector<4x64xf32>
    %141 = arith.addf %138, %140 : vector<4x64xf32>
    %c0_66 = arith.constant 0 : index
    %c0_67 = arith.constant 0 : index
    %142 = vector.load %arg27[%c0_66, %c0_67] : memref<4x64xf32, #tpu.memory_space<vmem>>, vector<4x64xf32>
    tpu.vector_store %arg27[%c0_66, %c0_67], %141 {strides = array<i32>} : memref<4x64xf32, #tpu.memory_space<vmem>>, vector<4x64xf32>,
    %143 = vector.extract_strided_slice %141 {offsets = [0, 0], sizes = [4, 32], strides = [1, 1]} : vector<4x64xf32> to vector<4x32xf32>
    %144 = vector.extract_strided_slice %141 {offsets = [0, 32], sizes = [4, 32], strides = [1, 1]} : vector<4x64xf32> to vector<4x32xf32>
    %c0_68 = arith.constant 0 : index
    %c0_69 = arith.constant 0 : index
    %145 = vector.load %arg2[%c0_68, %c0_69] : memref<4x32xf32, #tpu.memory_space<vmem>>, vector<4x32xf32>
    %cst_70 = arith.constant 5.000000e-01 : f32
    %146 = vector.broadcast %cst_70 : f32 to vector<4x32xf32>
    %147 = arith.mulf %146, %144 : vector<4x32xf32>
    %148 = math.exp %147 : vector<4x32xf32>
    %149 = arith.mulf %145, %148 : vector<4x32xf32>
    %150 = arith.addf %149, %143 : vector<4x32xf32>
    %c0_71 = arith.constant 0 : index
    %c0_72 = arith.constant 0 : index
    %151 = vector.load %arg28[%c0_71, %c0_72] : memref<4x32xf32, #tpu.memory_space<vmem>>, vector<4x32xf32>
    tpu.vector_store %arg28[%c0_71, %c0_72], %150 {strides = array<i32>} : memref<4x32xf32, #tpu.memory_space<vmem>>, vector<4x32xf32>,
    %152 = arith.truncf %150 : vector<4x32xf32> to vector<4x32xbf16>
    %c0_73 = arith.constant 0 : index
    %c0_74 = arith.constant 0 : index
    %153 = vector.load %arg17[%c0_73, %c0_74] : memref<32x32xbf16, #tpu.memory_space<vmem>>, vector<32x32xbf16>
    %cst_75 = arith.constant dense<0.000000e+00> : vector<4x32xf32>
    %154 = tpu.matmul %152, %153, %cst_75 {dimension_numbers = #tpu.dot_dimension_numbers<[1], [0], [0], [1], [0, 0, 1, 1], [], []>} : vector<4x32xbf16>, vector<32x32xbf16>, vector<4x32xf32> -> vector<4x32xf32>
    %c0_76 = arith.constant 0 : index
    %c0_77 = arith.constant 0 : index
    %155 = vector.load %arg18[%c0_76, %c0_77] : memref<1x32xf32, #tpu.memory_space<vmem>>, vector<1x32xf32>
    %156 = vector.broadcast %155 : vector<1x32xf32> to vector<4x32xf32>
    %157 = arith.addf %154, %156 : vector<4x32xf32>
    %158 = arith.truncf %157 : vector<4x32xf32> to vector<4x32xbf16>
    %c0_78 = arith.constant 0 : index
    %c0_79 = arith.constant 0 : index
    %159 = vector.load %arg19[%c0_78, %c0_79] : memref<32x128xbf16, #tpu.memory_space<vmem>>, vector<32x128xbf16>
    %cst_80 = arith.constant dense<0.000000e+00> : vector<4x128xf32>
    %160 = tpu.matmul %158, %159, %cst_80 {dimension_numbers = #tpu.dot_dimension_numbers<[1], [0], [0], [1], [0, 0, 1, 1], [], []>} : vector<4x32xbf16>, vector<32x128xbf16>, vector<4x128xf32> -> vector<4x128xf32>
    %c0_81 = arith.constant 0 : index
    %c0_82 = arith.constant 0 : index
    %161 = vector.load %arg20[%c0_81, %c0_82] : memref<1x128xf32, #tpu.memory_space<vmem>>, vector<1x128xf32>
    %c0_83 = arith.constant 0 : index
    %c0_84 = arith.constant 0 : index
    %162 = vector.load %arg21[%c0_83, %c0_84] : memref<1x128xf32, #tpu.memory_space<vmem>>, vector<1x128xf32>
    %cst_85 = arith.constant dense<0.000000e+00> : vector<128xf32>
    %163 = vector.multi_reduction <add>, %160, %cst_85 [0] : vector<4x128xf32> to vector<128xf32>
    %164 = vector.shape_cast %163 : vector<128xf32> to vector<1x128xf32>
    %cst_86 = arith.constant 4.000000e+00 : f32
    %165 = vector.broadcast %cst_86 : f32 to vector<1x128xf32>
    %166 = arith.divf %164, %165 : vector<1x128xf32>
    %167 = arith.mulf %160, %160 : vector<4x128xf32>
    %cst_87 = arith.constant dense<0.000000e+00> : vector<128xf32>
    %168 = vector.multi_reduction <add>, %167, %cst_87 [0] : vector<4x128xf32> to vector<128xf32>
    %169 = vector.shape_cast %168 : vector<128xf32> to vector<1x128xf32>
    %cst_88 = arith.constant 4.000000e+00 : f32
    %170 = vector.broadcast %cst_88 : f32 to vector<1x128xf32>
    %171 = arith.divf %169, %170 : vector<1x128xf32>
    %172 = arith.mulf %166, %166 : vector<1x128xf32>
    %173 = arith.subf %171, %172 : vector<1x128xf32>
    %cst_89 = arith.constant 0.000000e+00 : f32
    %174 = vector.broadcast %cst_89 : f32 to vector<1x128xf32>
    %175 = arith.maximumf %173, %174 : vector<1x128xf32>
    %cst_90 = arith.constant 9.99999974E-6 : f32
    %176 = vector.broadcast %cst_90 : f32 to vector<1x128xf32>
    %177 = arith.addf %175, %176 : vector<1x128xf32>
    %178 = math.rsqrt %177 : vector<1x128xf32>
    %179 = arith.mulf %161, %178 : vector<1x128xf32>
    %180 = arith.mulf %166, %179 : vector<1x128xf32>
    %181 = arith.subf %162, %180 : vector<1x128xf32>
    %182 = vector.broadcast %179 : vector<1x128xf32> to vector<4x128xf32>
    %183 = arith.mulf %160, %182 : vector<4x128xf32>
    %184 = vector.broadcast %181 : vector<1x128xf32> to vector<4x128xf32>
    %185 = arith.addf %183, %184 : vector<4x128xf32>
    %cst_91 = arith.constant 0.000000e+00 : f32
    %186 = vector.broadcast %cst_91 : f32 to vector<4x128xf32>
    %187 = arith.cmpf oge, %185, %186 : vector<4x128xf32>
    %cst_92 = arith.constant 0.00999999977 : f32
    %188 = vector.broadcast %cst_92 : f32 to vector<4x128xf32>
    %189 = arith.mulf %188, %185 : vector<4x128xf32>
    %190 = arith.select %187, %185, %189 : vector<4x128xi1>, vector<4x128xf32>
    %191 = arith.truncf %190 : vector<4x128xf32> to vector<4x128xbf16>
    %c0_93 = arith.constant 0 : index
    %c0_94 = arith.constant 0 : index
    %192 = vector.load %arg22[%c0_93, %c0_94] : memref<128x512xbf16, #tpu.memory_space<vmem>>, vector<128x512xbf16>
    %cst_95 = arith.constant dense<0.000000e+00> : vector<4x512xf32>
    %193 = tpu.matmul %191, %192, %cst_95 {dimension_numbers = #tpu.dot_dimension_numbers<[1], [0], [0], [1], [0, 0, 1, 1], [], []>} : vector<4x128xbf16>, vector<128x512xbf16>, vector<4x512xf32> -> vector<4x512xf32>
    %c0_96 = arith.constant 0 : index
    %c0_97 = arith.constant 0 : index
    %194 = vector.load %arg23[%c0_96, %c0_97] : memref<1x512xf32, #tpu.memory_space<vmem>>, vector<1x512xf32>
    %c0_98 = arith.constant 0 : index
    %c0_99 = arith.constant 0 : index
    %195 = vector.load %arg24[%c0_98, %c0_99] : memref<1x512xf32, #tpu.memory_space<vmem>>, vector<1x512xf32>
    %cst_100 = arith.constant dense<0.000000e+00> : vector<512xf32>
    %196 = vector.multi_reduction <add>, %193, %cst_100 [0] : vector<4x512xf32> to vector<512xf32>
    %197 = vector.shape_cast %196 : vector<512xf32> to vector<1x512xf32>
    %cst_101 = arith.constant 4.000000e+00 : f32
    %198 = vector.broadcast %cst_101 : f32 to vector<1x512xf32>
    %199 = arith.divf %197, %198 : vector<1x512xf32>
    %200 = arith.mulf %193, %193 : vector<4x512xf32>
    %cst_102 = arith.constant dense<0.000000e+00> : vector<512xf32>
    %201 = vector.multi_reduction <add>, %200, %cst_102 [0] : vector<4x512xf32> to vector<512xf32>
    %202 = vector.shape_cast %201 : vector<512xf32> to vector<1x512xf32>
    %cst_103 = arith.constant 4.000000e+00 : f32
    %203 = vector.broadcast %cst_103 : f32 to vector<1x512xf32>
    %204 = arith.divf %202, %203 : vector<1x512xf32>
    %205 = arith.mulf %199, %199 : vector<1x512xf32>
    %206 = arith.subf %204, %205 : vector<1x512xf32>
    %cst_104 = arith.constant 0.000000e+00 : f32
    %207 = vector.broadcast %cst_104 : f32 to vector<1x512xf32>
    %208 = arith.maximumf %206, %207 : vector<1x512xf32>
    %cst_105 = arith.constant 9.99999974E-6 : f32
    %209 = vector.broadcast %cst_105 : f32 to vector<1x512xf32>
    %210 = arith.addf %208, %209 : vector<1x512xf32>
    %211 = math.rsqrt %210 : vector<1x512xf32>
    %212 = arith.mulf %194, %211 : vector<1x512xf32>
    %213 = arith.mulf %199, %212 : vector<1x512xf32>
    %214 = arith.subf %195, %213 : vector<1x512xf32>
    %215 = vector.broadcast %212 : vector<1x512xf32> to vector<4x512xf32>
    %216 = arith.mulf %193, %215 : vector<4x512xf32>
    %217 = vector.broadcast %214 : vector<1x512xf32> to vector<4x512xf32>
    %218 = arith.addf %216, %217 : vector<4x512xf32>
    %cst_106 = arith.constant 0.000000e+00 : f32
    %219 = vector.broadcast %cst_106 : f32 to vector<4x512xf32>
    %220 = arith.cmpf oge, %218, %219 : vector<4x512xf32>
    %cst_107 = arith.constant 0.00999999977 : f32
    %221 = vector.broadcast %cst_107 : f32 to vector<4x512xf32>
    %222 = arith.mulf %221, %218 : vector<4x512xf32>
    %223 = arith.select %220, %218, %222 : vector<4x512xi1>, vector<4x512xf32>
    %224 = arith.truncf %223 : vector<4x512xf32> to vector<4x512xbf16>
    %c0_108 = arith.constant 0 : index
    %c0_109 = arith.constant 0 : index
    %225 = vector.load %arg25[%c0_108, %c0_109] : memref<512x384xbf16, #tpu.memory_space<vmem>>, vector<512x384xbf16>
    %cst_110 = arith.constant dense<0.000000e+00> : vector<4x384xf32>
    %226 = tpu.matmul %224, %225, %cst_110 {dimension_numbers = #tpu.dot_dimension_numbers<[1], [0], [0], [1], [0, 0, 1, 1], [], []>} : vector<4x512xbf16>, vector<512x384xbf16>, vector<4x384xf32> -> vector<4x384xf32>
    %c0_111 = arith.constant 0 : index
    %c0_112 = arith.constant 0 : index
    %227 = vector.load %arg26[%c0_111, %c0_112] : memref<1x384xf32, #tpu.memory_space<vmem>>, vector<1x384xf32>
    %228 = vector.broadcast %227 : vector<1x384xf32> to vector<4x384xf32>
    %229 = arith.addf %226, %228 : vector<4x384xf32>
    %c0_113 = arith.constant 0 : index
    %c0_114 = arith.constant 0 : index
    %230 = vector.load %arg29[%c0_113, %c0_114] : memref<4x384xf32, #tpu.memory_space<vmem>>, vector<4x384xf32>
    tpu.vector_store %arg29[%c0_113, %c0_114], %229 {strides = array<i32>} : memref<4x384xf32, #tpu.memory_space<vmem>>, vector<4x384xf32>,
    return
  }
  func.func @transform_0(%arg0: i32) -> (i32, i32) {
    %c0_i32 = arith.constant 0 : i32
    %c0_i32_0 = arith.constant 0 : i32
    %c0_i32_1 = arith.constant 0 : i32
    return %c0_i32, %c0_i32_0 : i32, i32
  }
  func.func @transform_1(%arg0: i32) -> (i32, i32) {
    %c0_i32 = arith.constant 0 : i32
    %c0_i32_0 = arith.constant 0 : i32
    %c0_i32_1 = arith.constant 0 : i32
    return %c0_i32, %c0_i32_0 : i32, i32
  }
  func.func @transform_2(%arg0: i32) -> (i32, i32) {
    %c0_i32 = arith.constant 0 : i32
    %c0_i32_0 = arith.constant 0 : i32
    %c0_i32_1 = arith.constant 0 : i32
    return %c0_i32, %c0_i32_0 : i32, i32
  }
  func.func @transform_3(%arg0: i32) -> (i32, i32) {
    %c0_i32 = arith.constant 0 : i32
    %c0_i32_0 = arith.constant 0 : i32
    %c0_i32_1 = arith.constant 0 : i32
    return %c0_i32, %c0_i32_0 : i32, i32
  }
  func.func @transform_4(%arg0: i32) -> (i32, i32) {
    %c0_i32 = arith.constant 0 : i32
    %c0_i32_0 = arith.constant 0 : i32
    %c0_i32_1 = arith.constant 0 : i32
    return %c0_i32, %c0_i32_0 : i32, i32
  }
  func.func @transform_5(%arg0: i32) -> (i32, i32) {
    %c0_i32 = arith.constant 0 : i32
    %c0_i32_0 = arith.constant 0 : i32
    %c0_i32_1 = arith.constant 0 : i32
    return %c0_i32, %c0_i32_0 : i32, i32
  }
  func.func @transform_6(%arg0: i32) -> (i32, i32) {
    %c0_i32 = arith.constant 0 : i32
    %c0_i32_0 = arith.constant 0 : i32
    %c0_i32_1 = arith.constant 0 : i32
    return %c0_i32, %c0_i32_0 : i32, i32
  }
  func.func @transform_7(%arg0: i32) -> (i32, i32) {
    %c0_i32 = arith.constant 0 : i32
    %c0_i32_0 = arith.constant 0 : i32
    %c0_i32_1 = arith.constant 0 : i32
    return %c0_i32, %c0_i32_0 : i32, i32
  }
  func.func @transform_8(%arg0: i32) -> (i32, i32) {
    %c0_i32 = arith.constant 0 : i32
    %c0_i32_0 = arith.constant 0 : i32
    %c0_i32_1 = arith.constant 0 : i32
    return %c0_i32, %c0_i32_0 : i32, i32
  }
  func.func @transform_9(%arg0: i32) -> (i32, i32) {
    %c0_i32 = arith.constant 0 : i32
    %c0_i32_0 = arith.constant 0 : i32
    %c0_i32_1 = arith.constant 0 : i32
    return %c0_i32, %c0_i32_0 : i32, i32
  }
  func.func @transform_10(%arg0: i32) -> (i32, i32) {
    %c0_i32 = arith.constant 0 : i32
    %c0_i32_0 = arith.constant 0 : i32
    %c0_i32_1 = arith.constant 0 : i32
    return %c0_i32, %c0_i32_0 : i32, i32
  }
  func.func @transform_11(%arg0: i32) -> (i32, i32) {
    %c0_i32 = arith.constant 0 : i32
    %c0_i32_0 = arith.constant 0 : i32
    %c0_i32_1 = arith.constant 0 : i32
    return %c0_i32, %c0_i32_0 : i32, i32
  }
  func.func @transform_12(%arg0: i32) -> (i32, i32) {
    %c0_i32 = arith.constant 0 : i32
    %c0_i32_0 = arith.constant 0 : i32
    %c0_i32_1 = arith.constant 0 : i32
    return %c0_i32, %c0_i32_0 : i32, i32
  }
  func.func @transform_13(%arg0: i32) -> (i32, i32) {
    %c0_i32 = arith.constant 0 : i32
    %c0_i32_0 = arith.constant 0 : i32
    %c0_i32_1 = arith.constant 0 : i32
    return %c0_i32, %c0_i32_0 : i32, i32
  }
  func.func @transform_14(%arg0: i32) -> (i32, i32) {
    %c0_i32 = arith.constant 0 : i32
    %c0_i32_0 = arith.constant 0 : i32
    %c0_i32_1 = arith.constant 0 : i32
    return %c0_i32, %c0_i32_0 : i32, i32
  }
  func.func @transform_15(%arg0: i32) -> (i32, i32) {
    %c0_i32 = arith.constant 0 : i32
    %c0_i32_0 = arith.constant 0 : i32
    %c0_i32_1 = arith.constant 0 : i32
    return %c0_i32, %c0_i32_0 : i32, i32
  }
  func.func @transform_16(%arg0: i32) -> (i32, i32) {
    %c0_i32 = arith.constant 0 : i32
    %c0_i32_0 = arith.constant 0 : i32
    %c0_i32_1 = arith.constant 0 : i32
    return %c0_i32, %c0_i32_0 : i32, i32
  }
  func.func @transform_17(%arg0: i32) -> (i32, i32) {
    %c0_i32 = arith.constant 0 : i32
    %c0_i32_0 = arith.constant 0 : i32
    %c0_i32_1 = arith.constant 0 : i32
    return %c0_i32, %c0_i32_0 : i32, i32
  }
  func.func @transform_18(%arg0: i32) -> (i32, i32) {
    %c0_i32 = arith.constant 0 : i32
    %c0_i32_0 = arith.constant 0 : i32
    %c0_i32_1 = arith.constant 0 : i32
    return %c0_i32, %c0_i32_0 : i32, i32
  }
  func.func @transform_19(%arg0: i32) -> (i32, i32) {
    %c0_i32 = arith.constant 0 : i32
    %c0_i32_0 = arith.constant 0 : i32
    %c0_i32_1 = arith.constant 0 : i32
    return %c0_i32, %c0_i32_0 : i32, i32
  }
  func.func @transform_20(%arg0: i32) -> (i32, i32) {
    %c0_i32 = arith.constant 0 : i32
    %c0_i32_0 = arith.constant 0 : i32
    %c0_i32_1 = arith.constant 0 : i32
    return %c0_i32, %c0_i32_0 : i32, i32
  }
  func.func @transform_21(%arg0: i32) -> (i32, i32) {
    %c0_i32 = arith.constant 0 : i32
    %c0_i32_0 = arith.constant 0 : i32
    %c0_i32_1 = arith.constant 0 : i32
    return %c0_i32, %c0_i32_0 : i32, i32
  }
  func.func @transform_22(%arg0: i32) -> (i32, i32) {
    %c0_i32 = arith.constant 0 : i32
    %c0_i32_0 = arith.constant 0 : i32
    %c0_i32_1 = arith.constant 0 : i32
    return %c0_i32, %c0_i32_0 : i32, i32
  }
  func.func @transform_23(%arg0: i32) -> (i32, i32) {
    %c0_i32 = arith.constant 0 : i32
    %c0_i32_0 = arith.constant 0 : i32
    %c0_i32_1 = arith.constant 0 : i32
    return %c0_i32, %c0_i32_0 : i32, i32
  }
  func.func @transform_24(%arg0: i32) -> (i32, i32) {
    %c0_i32 = arith.constant 0 : i32
    %c0_i32_0 = arith.constant 0 : i32
    %c0_i32_1 = arith.constant 0 : i32
    return %c0_i32, %c0_i32_0 : i32, i32
  }
  func.func @transform_25(%arg0: i32) -> (i32, i32) {
    %c0_i32 = arith.constant 0 : i32
    %c0_i32_0 = arith.constant 0 : i32
    %c0_i32_1 = arith.constant 0 : i32
    return %c0_i32, %c0_i32_0 : i32, i32
  }
  func.func @transform_26(%arg0: i32) -> (i32, i32) {
    %c0_i32 = arith.constant 0 : i32
    %c0_i32_0 = arith.constant 0 : i32
    %c0_i32_1 = arith.constant 0 : i32
    return %c0_i32, %c0_i32_0 : i32, i32
  }
  func.func @transform_27(%arg0: i32) -> (i32, i32) {
    %c0_i32 = arith.constant 0 : i32
    %c0_i32_0 = arith.constant 0 : i32
    %c0_i32_1 = arith.constant 0 : i32
    return %c0_i32, %c0_i32_0 : i32, i32
  }
  func.func @transform_28(%arg0: i32) -> (i32, i32) {
    %c0_i32 = arith.constant 0 : i32
    %c0_i32_0 = arith.constant 0 : i32
    %c0_i32_1 = arith.constant 0 : i32
    return %c0_i32, %c0_i32_0 : i32, i32
  }
}

</mosaic_0001>

<bundles_post_ra>
// kernel: vae_forward.1
= control target key start
LH: loop header
LB: loop body
LE: loop exit
PB: predicated region body
PF: predicated region fallthrough
CT: control target
= control target key end

     0   :  { %s6893_s0 = inlined_call_operand.vmem [shape: f32[3,512], index: 0, kind: input, shape index: {}]   ;;  %s6894_s1 = inlined_call_operand.vmem [shape: f32[4,32], index: 1, kind: input, shape index: {}]   ;;  %s6895_s2 = inlined_call_operand.vmem [shape: bf16[32,3], index: 2, kind: input, shape index: {}]   ;;  %s6896_s3 = inlined_call_operand.vmem [shape: f32[32,1], index: 3, kind: input, shape index: {}]   ;;  %s6897_s4 = inlined_call_operand.vmem [shape: f32[32,1], index: 4, kind: input, shape index: {}]   ;;  %s6898_s5 = inlined_call_operand.vmem [shape: bf16[64,32], index: 5, kind: input, shape index: {}]   ;;  %s6899_s6 = inlined_call_operand.vmem [shape: f32[64,1], index: 6, kind: input, shape index: {}]   ;;  %s6900_s7 = inlined_call_operand.vmem [shape: f32[64,1], index: 7, kind: input, shape index: {}]   ;;  %s6901_s8 = inlined_call_operand.vmem [shape: bf16[64,64], index: 8, kind: input, shape index: {}]   ;;  %s6902_s9 = inlined_call_operand.vmem [shape: f32[64,1], index: 9, kind: input, shape index: {}]   ;;  %s6903_s10 = inlined_call_operand.vmem [shape: f32[64,1], index: 10, kind: input, shape index: {}]   ;;  %s6904_s11 = inlined_call_operand.vmem [shape: bf16[32,64], index: 11, kind: input, shape index: {}]   ;;  %s6905_s12 = inlined_call_operand.vmem [shape: f32[32,1], index: 12, kind: input, shape index: {}]   ;;  %s6906_s13 = inlined_call_operand.vmem [shape: f32[32,1], index: 13, kind: input, shape index: {}]   ;;  %s6907_s14 = inlined_call_operand.vmem [shape: bf16[32,64], index: 14, kind: input, shape index: {}]   ;;  %s6908_s15 = inlined_call_operand.vmem [shape: f32[1,64], index: 15, kind: input, shape index: {}]   ;;  %s6909_s16 = inlined_call_operand.vmem [shape: bf16[32,32], index: 16, kind: input, shape index: {}]   ;;  %s6910_s17 = inlined_call_operand.vmem [shape: f32[1,32], index: 17, kind: input, shape index: {}]   ;;  %s6911_s18 = inlined_call_operand.vmem [shape: bf16[32,128], index: 18, kind: input, shape index: {}]   ;;  %s6912_s19 = inlined_call_operand.vmem [shape: f32[1,128], index: 19, kind: input, shape index: {}]   ;;  %s6913_s20 = inlined_call_operand.vmem [shape: f32[1,128], index: 20, kind: input, shape index: {}]   ;;  %s6914_s21 = inlined_call_operand.hbm [shape: bf16[128,512], index: 21, kind: input, shape index: {}]   ;;  %s6915_s22 = inlined_call_operand.vmem [shape: f32[1,512], index: 22, kind: input, shape index: {}]   ;;  %s6916_s23 = inlined_call_operand.vmem [shape: f32[1,512], index: 23, kind: input, shape index: {}]   ;;  %s6917_s24 = inlined_call_operand.hbm [shape: bf16[512,384], index: 24, kind: input, shape index: {}]   ;;  %s6918_s25 = inlined_call_operand.vmem [shape: f32[1,384], index: 25, kind: input, shape index: {}]   ;;  %s6919_s26 = inlined_call_operand.vmem [shape: f32[4,64], index: 26, kind: output, shape index: {0}]   ;;  %s6920_s27 = inlined_call_operand.hbm [shape: f32[4,32], index: 27, kind: output, shape index: {1}]   ;;  %s6921_s28 = inlined_call_operand.vmem [shape: f32[4,384], index: 28, kind: output, shape index: {2}]  }
   0x1   :  { %6938 = sst [smem:[#allocation15_spill]] %s6893_s0 }
   0x2   :  { %6939 = sst [smem:[#allocation16_spill]] %s6894_s1 }
   0x3   :  { %6940 = sst [smem:[#allocation17_spill]] %s6895_s2 }
   0x4   :  { %6941 = sst [smem:[#allocation18_spill]] %s6896_s3 }
   0x5   :  { %6942 = sst [smem:[#allocation19_spill]] %s6897_s4 }
   0x6   :  { %6943 = sst [smem:[#allocation20_spill]] %s6898_s5 }
   0x7   :  { %6944 = sst [smem:[#allocation21_spill]] %s6899_s6 }
   0x8   :  { %6945 = sst [smem:[#allocation22_spill]] %s6900_s7 }
   0x9   :  { %6946 = sst [smem:[#allocation23_spill]] %s6901_s8 }
   0xa   :  { %6947 = sst [smem:[#allocation24_spill]] %s6902_s9 }
   0xb   :  { %6948 = sst [smem:[#allocation25_spill]] %s6903_s10 }
   0xc   :  { %6949 = sst [smem:[#allocation26_spill]] %s6904_s11 }
   0xd   :  { %6950 = sst [smem:[#allocation27_spill]] %s6905_s12 }
   0xe   :  { %34 = vsyncpa [#allocation3], 0 }
   0xf   :  { %35 = vsyncpa [#allocation6], 0 }
  0x10   :  { %36 = vsyncpa [#allocation4], 0  ;;  %s83_s9 = sshll.u32 %s6914_s21, 4  ;;  %s5125_s30 = smov [#allocation2]   ;;  %s84_s9 = int_to_ptr.hbm [resolvable:$true] %s83_s9 }
  0x11   :  { %s85_s3 = sshll.u32 %s5125_s30, 4  ;;  %s100_s0 = sshll.u32 %s6917_s24, 4  ;;  %s86_s3 = int_to_ptr.vmem [resolvable:$true] %s85_s3  ;;  %s101_s0 = int_to_ptr.hbm [resolvable:$true] %s100_s0 }
  0x12   :  { %s5126_s11 = smov 256   ;;  %s5127_s29 = smov 16  }
  0x13   :  { %91 = dma.hbm_to_vmem [thread:$0]  %s84_s9, 4096, %s86_s3, [#allocation3], %s5126_s11, %s5126_s11, %s5127_s29  }
  0x14   :  { %s5128_s2 = smov [#allocation5]   ;;  %s5129_s12 = smov 192  }
  0x15   :  { %s102_s7 = sshll.u32 %s5128_s2, 4  ;;  %s5130_s1 = smov 12   ;;  %s103_s7 = int_to_ptr.vmem [resolvable:$true] %s102_s7 }
  0x16   :  { %108 = dma.hbm_to_vmem [thread:$0]  %s101_s0, 12288, %s103_s7, [#allocation6], %s5129_s12, %s5129_s12, %s5130_s1  }
  0x17   :  { %5119 = dma.done.wait [#allocation3], 4096  }
  0x18   :  { %5120 = vsyncadd [#allocation3], 4294963200 }
  0x19   :  { %5121 = dma.done.wait [#allocation6], 12288  }
  0x1a   :  { %5122 = vsyncadd [#allocation6], 4294955008  ;;  %s6951_s8 = sld [smem:[#allocation15_spill]]  ;;  %vm160_vm0 = vcmask 1040384   ;;  %vm161_vm1 = vcmask 1041408   ;;  %v5131_v2 = vmov 65535  }
  0x1b   :  { %v162_v3 = vsel %vm160_vm0, 4294967295, %v5131_v2  ;;  %s6952_s3 = sld [smem:[#allocation17_spill]]  ;;  %vm153_vm2 = vcmask 23552   ;;  %s5136_s11 = smov 96  }
  0x1c   :  { %v163_v4 = vsel %vm161_vm1, %v162_v3, 0  ;;  %s6953_s29 = sld [smem:[#allocation18_spill]] }
  0x1d   :  { %s6954_s12 = sld [smem:[#allocation19_spill]] }
  0x1e   :  { %s6955_s2 = sld [smem:[#allocation20_spill]] }
  0x1f   :  { %s6956_s9 = sld [smem:[#allocation21_spill]] }
  0x20   :  { %v120_v0 = vld [vmem:[%s6951_s8] sm:$0x77]  ;;  %v121_v1 = vld [vmem:[%s6951_s8 + $0x8] sm:$0x77]  ;;  %s6958_s30 = sld [smem:[#allocation23_spill]] }
  0x21   :  { %128 = vst [vmem:[#allocation1] ss:$2 sm:$0xff] %v120_v0  ;;  %v4817_v16 = vld [vmem:[%s6952_s3 + $0x8] sm:$0xff]  ;;  %v4816_v17 = vld [vmem:[%s6952_s3] sm:$0xff]  ;;  %s6963_s1 = sld [smem:[#allocation24_spill]] }
  0x22   :  { %130 = vst [vmem:[#allocation1 + $0x10] ss:$2 sm:$0xff] %v121_v1  ;;  %s6969_s21 = sld [smem:[#allocation26_spill]] }
  0x28   :  { %v131_v5 = vld.sshfl [vmem:[#allocation1] sm:$0xff pattern:$0x75316420]  ;;  %v132_v6 = vld.sshfl [vmem:[#allocation1 + $0x8] sm:$0xff pattern:$0x75316420] }
  0x29   :  { %v139_v7 = vpack.c.bf16 %v131_v5, %v131_v5  ;;  %v140_v8 = vpack.c.bf16 %v132_v6, %v132_v6  ;;  %v133_v9 = vld.sshfl [vmem:[#allocation1 + $0x10] sm:$0xff pattern:$0x75316420]  ;;  %v134_v10 = vld.sshfl [vmem:[#allocation1 + $0x18] sm:$0xff pattern:$0x75316420] }
  0x2a   :  { %v141_v11 = vpack.c.bf16 %v133_v9, %v133_v9  ;;  %v142_v12 = vpack.c.bf16 %v134_v10, %v134_v10 }
  0x2b   :  { %v165_v13 = vand.u32 %v163_v4, %v139_v7  ;;  %v168_v14 = vand.u32 %v163_v4, %v140_v8 }
  0x2c   :  { %v171_v15 = vand.u32 %v163_v4, %v141_v11  ;;  %v174_v18 = vand.u32 %v163_v4, %v142_v12  ;;  %v5132_v11 = vmov 512.0  }
  0x2d   :  { %4962 = vmatpush.bf16.msra.mxu3 %v165_v13  ;;  %202 = vmatpush.bf16.msra.mxu1 %v168_v14  ;;  %4983 = vrcp.f32 %v5132_v11 }
  0x2e   :  { %221 = vmatpush.bf16.msra.mxu2 %v171_v15  ;;  %183 = vmatpush.bf16.msra.mxu0 %v165_v13 }
  0x30   :  { %4190 = vmatmul.msk.bf16.vlgmr.msra.gmra.mxu3 %vm153_vm2, %v4817_v16  ;;  %4191 = vmatmul.msk.bf16.vlgmr.msra.gmra.mxu1 %vm153_vm2, %v4816_v17 }
  0x31   :  { %240 = vmatpush.bf16.msrb.mxu3 %v174_v18  ;;  %4193 = vmatmul.msk.bf16.vlgmr.msra.gmra.mxu2 %vm153_vm2, %v4816_v17 }
  0x32   :  { %4189 = vmatmul.msk.bf16.vlgmr.msra.gmra.mxu0 %vm153_vm2, %v4816_v17 }
  0x33   :  { %v4984_v12 = vpop.eup %4983 }
  0x34   :  { %v281_v13 = vmul.f32 512.0, %v4984_v12  ;;  %vm285_vm3 = vweird.f32 %v4984_v12 }
  0x36   :  { %v282_v14 = vsub.f32 1.0, %v281_v13 }
  0x38   :  { %v283_v15 = vmul.f32 %v4984_v12, %v282_v14 }
  0x40   :  { %4192 = vmatmul.msk.bf16.gmra.mxu1 %vm153_vm2, %v4817_v16  ;;  %4195 = vmatmul.msk.bf16.vlgmr.msrb.gmra.mxu3 %vm153_vm2, %v4816_v17  ;;  %v5133_v17 = vmov 0  }
  0x41   :  { %4194 = vmatmul.msk.bf16.gmra.mxu2 %vm153_vm2, %v4817_v16  ;;  %4978 = vset.pattern.permute.xlu2 %v5133_v17 }
  0x42   :  { %4980 = vset.pattern.permute.xlu1 %v5133_v17  ;;  %4979 = vset.pattern.permute.xlu0 %v5133_v17 }
  0x50   :  { %4196 = vmatmul.msk.bf16.gmra.mxu3 %vm153_vm2, %v4817_v16  ;;  %v284_v16 = vadd.f32 %v4984_v12, %v283_v15 }
  0x52   :  { %v5384_v18 = vsel %vm285_vm3, %v4984_v12, %v284_v16  ;;  %v258_v16 = vld [vmem:[%s6954_s12 + $0x10] sm:$0xff] }
  0xad   :  { %v5306_v20 = vpop.f32.mrf.mxu1 }
  0xae   :  { %v292_v51 = vmul.f32 %v5306_v20, %v5306_v20 }
  0xaf   :  { %v5310_v22 = vpop.f32.mrf.mxu0 }
  0xb0   :  { %v260_v24 = vadd.f32 %v5306_v20, %v5310_v22  ;;  %v291_v52 = vmul.f32 %v5310_v22, %v5310_v22 }
  0xb2   :  { %v307_v61 = vadd.f32 %v292_v51, %v291_v52 }
  0xb3   :  { %v5304_v19 = vpop.f32.mrf.mxu3 }
  0xb4   :  { %v5308_v21 = vpop.f32.mrf.mxu2  ;;  %v299_v38 = vmul.f32 %v5304_v19, %v5304_v19 }
  0xb5   :  { %v5316_v25 = vpop.f32.mrf.mxu1  ;;  %v261_v26 = vadd.f32 %v260_v24, %v5308_v21  ;;  %v293_v58 = vmul.f32 %v5308_v21, %v5308_v21 }
  0xb6   :  { %v296_v59 = vmul.f32 %v5316_v25, %v5316_v25 }
  0xb7   :  { %v5321_v28 = vpop.f32.mrf.mxu0  ;;  %v308_v4 = vadd.f32 %v307_v61, %v293_v58 }
  0xb8   :  { %v265_v31 = vadd.f32 %v5316_v25, %v5321_v28  ;;  %v295_v62 = vmul.f32 %v5321_v28, %v5321_v28 }
  0xba   :  { %v312_v6 = vadd.f32 %v296_v59, %v295_v62 }
  0xbb   :  { %v5312_v23 = vpop.f32.mrf.mxu3 }
  0xbc   :  { %v5319_v27 = vpop.f32.mrf.mxu2  ;;  %v303_v53 = vmul.f32 %v5312_v23, %v5312_v23 }
  0xbd   :  { %v5328_v32 = vpop.f32.mrf.mxu1  ;;  %v266_v33 = vadd.f32 %v265_v31, %v5319_v27  ;;  %v297_v5 = vmul.f32 %v5319_v27, %v5319_v27 }
  0xbe   :  { %v300_v37 = vmul.f32 %v5328_v32, %v5328_v32  ;;  %v270_v39 = vadd.f32 %v5328_v32, %v5304_v19 }
  0xbf   :  { %v313_v9 = vadd.f32 %v312_v6, %v297_v5 }
  0xc0   :  { %v317_v42 = vadd.f32 %v300_v37, %v299_v38 }
  0xc3   :  { %v5323_v29 = vpop.f32.mrf.mxu3 }
  0xc4   :  { %v262_v30 = vadd.f32 %v261_v26, %v5323_v29  ;;  %v5331_v34 = vpop.f32.mrf.mxu2  ;;  %v294_v3 = vmul.f32 %v5323_v29, %v5323_v29 }
  0xc5   :  { %v301_v40 = vmul.f32 %v5331_v34, %v5331_v34  ;;  %v271_v41 = vadd.f32 %v270_v39, %v5331_v34  ;;  %v5345_v43 = vpop.f32.mrf.mxu1 }
  0xc6   :  { %263 = vadd.xlane.f32.xlu2 %v262_v30  ;;  %v304_v49 = vmul.f32 %v5345_v43, %v5345_v43  ;;  %v275_v54 = vadd.f32 %v5345_v43, %v5312_v23  ;;  %v309_v8 = vadd.f32 %v308_v4, %v294_v3 }
  0xc7   :  { %v318_v47 = vadd.f32 %v317_v42, %v301_v40 }
  0xc8   :  { %v322_v57 = vadd.f32 %v304_v49, %v303_v53 }
  0xcb   :  { %v5333_v35 = vpop.f32.mrf.mxu3 }
  0xcc   :  { %v267_v36 = vadd.f32 %v266_v33, %v5333_v35  ;;  %v5352_v48 = vpop.f32.mrf.mxu2  ;;  %v298_v7 = vmul.f32 %v5333_v35, %v5333_v35 }
  0xcd   :  { %v305_v55 = vmul.f32 %v5352_v48, %v5352_v48  ;;  %v276_v56 = vadd.f32 %v275_v54, %v5352_v48 }
  0xce   :  { %268 = vadd.xlane.f32.xlu2 %v267_v36  ;;  %v314_v10 = vadd.f32 %v313_v9, %v298_v7 }
  0xcf   :  { %v323_v1 = vadd.f32 %v322_v57, %v305_v55 }
  0xd3   :  { %v5347_v44 = vpop.f32.mrf.mxu3 }
  0xd4   :  { %v272_v45 = vadd.f32 %v271_v41, %v5347_v44  ;;  %v302_v46 = vmul.f32 %v5347_v44, %v5347_v44 }
  0xd6   :  { %273 = vadd.xlane.f32.xlu0 %v272_v45  ;;  %v319_v50 = vadd.f32 %v318_v47, %v302_v46 }
  0xd8   :  { %320 = vadd.xlane.f32.xlu1 %v319_v50 }
  0xdb   :  { %v5371_v60 = vpop.f32.mrf.mxu3 }
  0xdc   :  { %v277_v63 = vadd.f32 %v276_v56, %v5371_v60  ;;  %v306_v0 = vmul.f32 %v5371_v60, %v5371_v60 }
  0xde   :  { %278 = vadd.xlane.f32.xlu0 %v277_v63  ;;  %v324_v2 = vadd.f32 %v323_v1, %v306_v0 }
  0xe0   :  { %325 = vadd.xlane.f32.xlu1 %v324_v2 }
  0xe6   :  { %310 = vadd.xlane.f32.xlu0 %v309_v8 }
  0xe8   :  { %315 = vadd.xlane.f32.xlu1 %v314_v10  ;;  %v254_v10 = vld [vmem:[%s6953_s29 + $0x10] sm:$0xff] }
 0x139   :  { %v264_v30 = vpop.xlane.xlu2 %263 }
 0x13a   :  { %v5395_v49 = vmul.f32 %v5384_v18, %v264_v30 }
 0x13c   :  { %v331_v55 = vmul.f32 %v5395_v49, %v5395_v49 }
 0x141   :  { %v269_v47 = vpop.xlane.xlu2 %268 }
 0x142   :  { %v5398_v51 = vmul.f32 %v5384_v18, %v269_v47 }
 0x144   :  { %v332_v61 = vmul.f32 %v5398_v51, %v5398_v51 }
 0x149   :  { %v274_v24 = vpop.xlane.xlu0 %273 }
 0x14a   :  { %v289_v26 = vmul.f32 %v5384_v18, %v274_v24 }
 0x14b   :  { %v321_v31 = vpop.xlane.xlu1 %320 }
 0x14c   :  { %v333_v33 = vmul.f32 %v289_v26, %v289_v26  ;;  %v329_v36 = vmul.f32 %v321_v31, %v5384_v18 }
 0x14e   :  { %v337_v37 = vsub.f32 %v329_v36, %v333_v33 }
 0x150   :  { %v341_v38 = vmax.f32 %v337_v37, 0.0 }
 0x151   :  { %v279_v39 = vpop.xlane.xlu0 %278 }
 0x152   :  { %v345_v40 = vadd.f32 1e-05, %v341_v38  ;;  %v5389_v41 = vmul.f32 %v5384_v18, %v279_v39  ;;  %v255_v39 = vld [vmem:[%s6953_s29 + $0x18] sm:$0xff] }
 0x153   :  { %v326_v42 = vpop.xlane.xlu1 %325 }
 0x154   :  { %4985 = vrsqrt.f32 %v345_v40  ;;  %v334_v45 = vmul.f32 %v5389_v41, %v5389_v41  ;;  %v330_v46 = vmul.f32 %v326_v42, %v5384_v18  ;;  %vm373_vm5 = vweird.f32 %v345_v40 }
 0x156   :  { %v338_v50 = vsub.f32 %v330_v46, %v334_v45 }
 0x158   :  { %v342_v52 = vmax.f32 %v338_v50, 0.0 }
 0x159   :  { %v311_v53 = vpop.xlane.xlu0 %310 }
 0x15a   :  { %v4986_v54 = vpop.eup %4985  ;;  %v346_v56 = vadd.f32 1e-05, %v342_v52  ;;  %v327_v57 = vmul.f32 %v311_v53, %v5384_v18  ;;  %v252_v53 = vld [vmem:[%s6953_s29] sm:$0xff] }
 0x15b   :  { %v368_v58 = vmul.f32 %v4986_v54, %v345_v40  ;;  %v316_v59 = vpop.xlane.xlu1 %315  ;;  %vm374_vm4 = vweird.f32 %v4986_v54 }
 0x15c   :  { %4987 = vrsqrt.f32 %v346_v56  ;;  %v335_v62 = vsub.f32 %v327_v57, %v331_v55  ;;  %v328_v63 = vmul.f32 %v316_v59, %v5384_v18  ;;  %vm375_vm6 = vmor %vm373_vm5, %vm374_vm4  ;;  %vm383_vm8 = vweird.f32 %v346_v56 }
 0x15d   :  { %v369_v0 = vmul.f32 %v4986_v54, %v368_v58 }
 0x15e   :  { %v339_v1 = vmax.f32 %v335_v62, 0.0  ;;  %v336_v2 = vsub.f32 %v328_v63, %v332_v61  ;;  %v259_v63 = vld [vmem:[%s6954_s12 + $0x18] sm:$0xff] }
 0x15f   :  { %v370_v3 = vmul.f32 0.5, %v369_v0 }
 0x160   :  { %v343_v4 = vadd.f32 1e-05, %v339_v1  ;;  %v340_v5 = vmax.f32 %v336_v2, 0.0  ;;  %v257_v1 = vld [vmem:[%s6954_s12 + $0x8] sm:$0xff] }
 0x161   :  { %v371_v6 = vsub.f32 1.5, %v370_v3 }
 0x162   :  { %v4988_v7 = vpop.eup %4987  ;;  %4989 = vrsqrt.f32 %v343_v4  ;;  %v344_v8 = vadd.f32 1e-05, %v340_v5  ;;  %vm353_vm11 = vweird.f32 %v343_v4 }
 0x163   :  { %v378_v9 = vmul.f32 %v4988_v7, %v346_v56  ;;  %v372_v11 = vmul.f32 %v4986_v54, %v371_v6  ;;  %vm384_vm7 = vweird.f32 %v4988_v7  ;;  %v253_v56 = vld [vmem:[%s6953_s29 + $0x8] sm:$0xff]  ;;  %s6957_s29 = sld [smem:[#allocation22_spill]] }
 0x164   :  { %4991 = vrsqrt.f32 %v344_v8  ;;  %vm385_vm9 = vmor %vm383_vm8, %vm384_vm7  ;;  %vm363_vm14 = vweird.f32 %v344_v8 }
 0x165   :  { %v379_v12 = vmul.f32 %v4988_v7, %v378_v9  ;;  %v376_v13 = vsel %vm375_vm6, %v4986_v54, %v372_v11 }
 0x166   :  { %v389_v14 = vmul.f32 %v376_v13, %v254_v10 }
 0x167   :  { %v380_v15 = vmul.f32 0.5, %v379_v12 }
 0x168   :  { %v4990_v17 = vpop.eup %4989  ;;  %411 = vperm.xlu2 %4978, %v389_v14   ;;  %v393_v24 = vmul.f32 %v389_v14, %v289_v26 }
 0x169   :  { %v381_v30 = vsub.f32 1.5, %v380_v15  ;;  %v348_v31 = vmul.f32 %v4990_v17, %v343_v4  ;;  %vm354_vm10 = vweird.f32 %v4990_v17 }
 0x16a   :  { %v4992_v33 = vpop.eup %4991  ;;  %v397_v36 = vsub.f32 %v258_v16, %v393_v24  ;;  %vm355_vm13 = vmor %vm353_vm11, %vm354_vm10 }
 0x16b   :  { %v349_v37 = vmul.f32 %v4990_v17, %v348_v31  ;;  %v358_v38 = vmul.f32 %v4992_v33, %v344_v8  ;;  %v382_v40 = vmul.f32 %v4988_v7, %v381_v30  ;;  %vm364_vm12 = vweird.f32 %v4992_v33 }
 0x16c   :  { %447 = vperm.xlu1 %4980, %v397_v36   ;;  %vm365_vm15 = vmor %vm363_vm14, %vm364_vm12 }
 0x16d   :  { %v350_v42 = vmul.f32 0.5, %v349_v37  ;;  %v359_v45 = vmul.f32 %v4992_v33, %v358_v38  ;;  %v386_v46 = vsel %vm385_vm9, %v4988_v7, %v382_v40 }
 0x16e   :  { %v390_v47 = vmul.f32 %v386_v46, %v255_v39 }
 0x16f   :  { %v351_v26 = vsub.f32 1.5, %v350_v42  ;;  %v360_v50 = vmul.f32 0.5, %v359_v45 }
 0x170   :  { %416 = vperm.xlu0 %4979, %v390_v47   ;;  %v394_v62 = vmul.f32 %v390_v47, %v5389_v41  ;;  %v256_v41 = vld [vmem:[%s6954_s12] sm:$0xff] }
 0x171   :  { %v361_v52 = vsub.f32 1.5, %v360_v50  ;;  %v352_v54 = vmul.f32 %v4990_v17, %v351_v26 }
 0x172   :  { %v398_v2 = vsub.f32 %v259_v63, %v394_v62 }
 0x173   :  { %v356_v55 = vsel %vm355_vm13, %v4990_v17, %v352_v54  ;;  %v362_v57 = vmul.f32 %v4992_v33, %v361_v52 }
 0x174   :  { %v387_v58 = vmul.f32 %v356_v55, %v252_v53 }
 0x175   :  { %v366_v59 = vsel %vm365_vm15, %v4992_v33, %v362_v57 }
 0x176   :  { %401 = vperm.xlu2 %4978, %v387_v58   ;;  %v388_v61 = vmul.f32 %v366_v59, %v253_v56  ;;  %v391_v4 = vmul.f32 %v387_v58, %v5395_v49 }
 0x178   :  { %406 = vperm.xlu1 %4980, %v388_v61   ;;  %v392_v0 = vmul.f32 %v388_v61, %v5398_v51  ;;  %v395_v5 = vsub.f32 %v256_v41, %v391_v4 }
 0x17a   :  { %v396_v3 = vsub.f32 %v257_v1, %v392_v0 }
 0x17e   :  { %452 = vperm.xlu2 %4978, %v398_v2  }
 0x180   :  { %442 = vperm.xlu1 %4980, %v396_v3  }
 0x186   :  { %437 = vperm.xlu2 %4978, %v395_v5  }
 0x1c2   :  { %v412_v6 = vpop.permute.xlu2 %411 }
 0x1c3   :  { %v427_v51 = vmul.f32 %v412_v6, %v5304_v19  ;;  %v430_v8 = vmul.f32 %v412_v6, %v5347_v44  ;;  %v428_v11 = vmul.f32 %v412_v6, %v5328_v32  ;;  %v429_v12 = vmul.f32 %v412_v6, %v5331_v34 }
 0x1d0   :  { %v402_v7 = vpop.permute.xlu2 %401 }
 0x1d1   :  { %v419_v14 = vmul.f32 %v402_v7, %v5310_v22  ;;  %v420_v15 = vmul.f32 %v402_v7, %v5306_v20  ;;  %v421_v32 = vmul.f32 %v402_v7, %v5308_v21 }
 0x1d8   :  { %v453_v9 = vpop.permute.xlu2 %452 }
 0x1de   :  { %v448_v10 = vpop.permute.xlu1 %447 }
 0x1df   :  { %v463_v13 = vadd.f32 %v448_v10, %v427_v51  ;;  %v466_v49 = vadd.f32 %v448_v10, %v430_v8  ;;  %v464_v16 = vadd.f32 %v448_v10, %v428_v11  ;;  %v465_v17 = vadd.f32 %v448_v10, %v429_v12 }
 0x1e1   :  { %vm482_vm2 = vcmp.ge.f32.partialorder %v466_v49, 0.0  ;;  %v498_v34 = vmul.f32 0.01, %v466_v49  ;;  %v495_v33 = vmul.f32 0.01, %v463_v13  ;;  %vm479_vm3 = vcmp.ge.f32.partialorder %v463_v13, 0.0 }
 0x1e2   :  { %v417_v24 = vpop.permute.xlu0 %416  ;;  %vm480_vm4 = vcmp.ge.f32.partialorder %v464_v16, 0.0  ;;  %v496_v38 = vmul.f32 0.01, %v464_v16  ;;  %v497_v39 = vmul.f32 0.01, %v465_v17  ;;  %vm481_vm7 = vcmp.ge.f32.partialorder %v465_v17, 0.0 }
 0x1e3   :  { %v431_v30 = vmul.f32 %v417_v24, %v5312_v23  ;;  %v432_v19 = vmul.f32 %v417_v24, %v5345_v43  ;;  %v433_v44 = vmul.f32 %v417_v24, %v5352_v48  ;;  %v434_v31 = vmul.f32 %v417_v24, %v5371_v60  ;;  %v438_v48 = vpop.permute.xlu2 %437 }
 0x1e4   :  { %v422_v60 = vmul.f32 %v402_v7, %v5323_v29  ;;  %v511_v42 = vsel %vm479_vm3, %v463_v13, %v495_v33  ;;  %v455_v53 = vadd.f32 %v438_v48, %v419_v14  ;;  %v512_v54 = vsel %vm480_vm4, %v464_v16, %v496_v38 }
 0x1e5   :  { %v470_v36 = vadd.f32 %v453_v9, %v434_v31  ;;  %v467_v22 = vadd.f32 %v453_v9, %v431_v30  ;;  %v468_v37 = vadd.f32 %v453_v9, %v432_v19  ;;  %v469_v20 = vadd.f32 %v453_v9, %v433_v44  ;;  %v4818_v44 = vld [vmem:[%s6955_s2] sm:$0xff]  ;;  %v4819_v31 = vld [vmem:[%s6955_s2 + $0x8] sm:$0xff] }
 0x1e6   :  { %v513_v55 = vsel %vm481_vm7, %v465_v17, %v497_v39  ;;  %v514_v56 = vsel %vm482_vm2, %v466_v49, %v498_v34  ;;  %v456_v57 = vadd.f32 %v438_v48, %v420_v15  ;;  %v457_v29 = vadd.f32 %v438_v48, %v421_v32  ;;  %v4820_v32 = vld [vmem:[%s6955_s2 + $0x10] sm:$0xff]  ;;  %v4821_v34 = vld [vmem:[%s6955_s2 + $0x18] sm:$0xff] }
 0x1e7   :  { %v502_v23 = vmul.f32 0.01, %v470_v36  ;;  %vm483_vm5 = vcmp.ge.f32.partialorder %v467_v22, 0.0  ;;  %v499_v43 = vmul.f32 0.01, %v467_v22  ;;  %vm484_vm6 = vcmp.ge.f32.partialorder %v468_v37, 0.0 }
 0x1e8   :  { %v500_v40 = vmul.f32 0.01, %v468_v37  ;;  %vm485_vm8 = vcmp.ge.f32.partialorder %v469_v20, 0.0  ;;  %v501_v21 = vmul.f32 0.01, %v469_v20  ;;  %vm486_vm9 = vcmp.ge.f32.partialorder %v470_v36, 0.0 }
 0x1e9   :  { %v515_v45 = vsel %vm483_vm5, %v467_v22, %v499_v43  ;;  %v518_v52 = vsel %vm486_vm9, %v470_v36, %v502_v23  ;;  %v458_v62 = vadd.f32 %v438_v48, %v422_v60  ;;  %vm471_vm10 = vcmp.ge.f32.partialorder %v455_v53, 0.0 }
 0x1ea   :  { %v407_v46 = vpop.permute.xlu1 %406  ;;  %v531_v47 = vpack.c.bf16 %v515_v45, %v511_v42  ;;  %v516_v26 = vsel %vm484_vm6, %v468_v37, %v500_v40  ;;  %v517_v50 = vsel %vm485_vm8, %v469_v20, %v501_v21  ;;  %v534_v61 = vpack.c.bf16 %v518_v52, %v514_v56 }
 0x1eb   :  { %v532_v58 = vpack.c.bf16 %v516_v26, %v512_v54  ;;  %v533_v59 = vpack.c.bf16 %v517_v50, %v513_v55  ;;  %v487_v63 = vmul.f32 0.01, %v455_v53  ;;  %vm472_vm11 = vcmp.ge.f32.partialorder %v456_v57, 0.0 }
 0x1ec   :  { %574 = vmatpush.bf16.msrb.mxu0 %v531_v47  ;;  %661 = vmatpush.bf16.msra.mxu3 %v534_v61  ;;  %v488_v0 = vmul.f32 0.01, %v456_v57  ;;  %v423_v1 = vmul.f32 %v407_v46, %v5321_v28  ;;  %v424_v2 = vmul.f32 %v407_v46, %v5316_v25  ;;  %v425_v3 = vmul.f32 %v407_v46, %v5319_v27 }
 0x1ed   :  { %603 = vmatpush.bf16.msrb.mxu1 %v532_v58  ;;  %632 = vmatpush.bf16.msrb.mxu2 %v533_v59  ;;  %v426_v4 = vmul.f32 %v407_v46, %v5333_v35  ;;  %v489_v5 = vmul.f32 0.01, %v457_v29  ;;  %v490_v6 = vmul.f32 0.01, %v458_v62  ;;  %v503_v10 = vsel %vm471_vm10, %v455_v53, %v487_v63 }
 0x1ee   :  { %v504_v11 = vsel %vm472_vm11, %v456_v57, %v488_v0  ;;  %vm473_vm12 = vcmp.ge.f32.partialorder %v457_v29, 0.0  ;;  %vm474_vm13 = vcmp.ge.f32.partialorder %v458_v62, 0.0  ;;  %vm555_vm4 = vcmask 261120  }
 0x1ef   :  { %v505_v49 = vsel %vm473_vm12, %v457_v29, %v489_v5  ;;  %v506_v14 = vsel %vm474_vm13, %v458_v62, %v490_v6 }
 0x1f2   :  { %v443_v41 = vpop.permute.xlu1 %442 }
 0x1f3   :  { %v459_v7 = vadd.f32 %v443_v41, %v423_v1  ;;  %v460_v51 = vadd.f32 %v443_v41, %v424_v2  ;;  %v461_v8 = vadd.f32 %v443_v41, %v425_v3  ;;  %v462_v9 = vadd.f32 %v443_v41, %v426_v4 }
 0x1f5   :  { %vm475_vm14 = vcmp.ge.f32.partialorder %v459_v7, 0.0  ;;  %v491_v12 = vmul.f32 0.01, %v459_v7  ;;  %vm476_vm15 = vcmp.ge.f32.partialorder %v460_v51, 0.0  ;;  %v492_v28 = vmul.f32 0.01, %v460_v51 }
 0x1f6   :  { %vm477_vm2 = vcmp.ge.f32.partialorder %v461_v8, 0.0  ;;  %v493_v25 = vmul.f32 0.01, %v461_v8  ;;  %vm478_vm3 = vcmp.ge.f32.partialorder %v462_v9, 0.0  ;;  %v494_v27 = vmul.f32 0.01, %v462_v9 }
 0x1f7   :  { %v507_v35 = vsel %vm475_vm14, %v459_v7, %v491_v12  ;;  %v508_v13 = vsel %vm476_vm15, %v460_v51, %v492_v28 }
 0x1f8   :  { %v527_v15 = vpack.c.bf16 %v507_v35, %v503_v10  ;;  %v528_v16 = vpack.c.bf16 %v508_v13, %v504_v11  ;;  %v509_v17 = vsel %vm477_vm2, %v461_v8, %v493_v25  ;;  %v510_v24 = vsel %vm478_vm3, %v462_v9, %v494_v27 }
 0x1f9   :  { %v529_v30 = vpack.c.bf16 %v509_v17, %v505_v49  ;;  %v530_v19 = vpack.c.bf16 %v510_v24, %v506_v14 }
 0x1fa   :  { %575 = vmatpush.bf16.msrb.mxu0 %v527_v15  ;;  %604 = vmatpush.bf16.msrb.mxu1 %v528_v16 }
 0x1fb   :  { %633 = vmatpush.bf16.msrb.mxu2 %v529_v30  ;;  %662 = vmatpush.bf16.msra.mxu3 %v530_v19 }
 0x1fd   :  { %4213 = vmatmul.msk.bf16.vlgmr.msrb.gmra.mxu0 %vm555_vm4, %v4818_v44  ;;  %4217 = vmatmul.msk.bf16.vlgmr.msrb.gmra.mxu1 %vm555_vm4, %v4818_v44 }
 0x1fe   :  { %4221 = vmatmul.msk.bf16.vlgmr.msrb.gmra.mxu2 %vm555_vm4, %v4818_v44  ;;  %4225 = vmatmul.msk.bf16.vlgmr.msra.gmra.mxu3 %vm555_vm4, %v4818_v44 }
 0x20d   :  { %4214 = vmatmul.msk.bf16.gmra.mxu0 %vm555_vm4, %v4819_v31  ;;  %4218 = vmatmul.msk.bf16.gmra.mxu1 %vm555_vm4, %v4819_v31 }
 0x20e   :  { %4222 = vmatmul.msk.bf16.gmra.mxu2 %vm555_vm4, %v4819_v31  ;;  %4226 = vmatmul.msk.bf16.gmra.mxu3 %vm555_vm4, %v4819_v31 }
 0x21d   :  { %4215 = vmatmul.msk.bf16.gmra.mxu0 %vm555_vm4, %v4820_v32  ;;  %4219 = vmatmul.msk.bf16.gmra.mxu1 %vm555_vm4, %v4820_v32 }
 0x21e   :  { %4223 = vmatmul.msk.bf16.gmra.mxu2 %vm555_vm4, %v4820_v32  ;;  %4227 = vmatmul.msk.bf16.gmra.mxu3 %vm555_vm4, %v4820_v32 }
 0x22d   :  { %4216 = vmatmul.msk.bf16.gmra.mxu0 %vm555_vm4, %v4821_v34  ;;  %4220 = vmatmul.msk.bf16.gmra.mxu1 %vm555_vm4, %v4821_v34 }
 0x22e   :  { %4224 = vmatmul.msk.bf16.gmra.mxu2 %vm555_vm4, %v4821_v34  ;;  %4228 = vmatmul.msk.bf16.gmra.mxu3 %vm555_vm4, %v4821_v34 }
 0x27a   :  { %v5479_v33 = vpop.f32.mrf.mxu0  ;;  %v5481_v36 = vpop.f32.mrf.mxu1 }
 0x281   :  { %v5483_v22 = vpop.f32.mrf.mxu2  ;;  %v5485_v37 = vpop.f32.mrf.mxu3 }
 0x282   :  { %v5487_v20 = vpop.f32.mrf.mxu0  ;;  %v5489_v38 = vpop.f32.mrf.mxu1 }
 0x289   :  { %v5491_v39 = vpop.f32.mrf.mxu2  ;;  %v5493_v23 = vpop.f32.mrf.mxu3 }
 0x28a   :  { %v5495_v43 = vpop.f32.mrf.mxu0  ;;  %v5497_v48 = vpop.f32.mrf.mxu1 }
 0x28b   :  { %v756_v40 = vmul.f32 %v5495_v43, %v5495_v43  ;;  %v757_v21 = vmul.f32 %v5497_v48, %v5497_v48  ;;  %v710_v60 = vadd.f32 %v5497_v48, %v5495_v43 }
 0x28d   :  { %v790_v42 = vadd.f32 %v757_v21, %v756_v40 }
 0x291   :  { %v5505_v45 = vpop.f32.mrf.mxu2  ;;  %v5507_v46 = vpop.f32.mrf.mxu3 }
 0x292   :  { %v758_v47 = vmul.f32 %v5505_v45, %v5505_v45  ;;  %v5511_v26 = vpop.f32.mrf.mxu0  ;;  %v5513_v50 = vpop.f32.mrf.mxu1  ;;  %v711_v52 = vadd.f32 %v710_v60, %v5505_v45  ;;  %v759_v53 = vmul.f32 %v5507_v46, %v5507_v46 }
 0x293   :  { %v760_v56 = vmul.f32 %v5511_v26, %v5511_v26  ;;  %v761_v57 = vmul.f32 %v5513_v50, %v5513_v50  ;;  %v715_v59 = vadd.f32 %v5513_v50, %v5511_v26 }
 0x294   :  { %v712_v54 = vadd.f32 %v711_v52, %v5507_v46  ;;  %v791_v55 = vadd.f32 %v790_v42, %v758_v47 }
 0x295   :  { %v795_v2 = vadd.f32 %v761_v57, %v760_v56 }
 0x296   :  { %713 = vadd.xlane.f32.xlu1 %v712_v54  ;;  %v792_v58 = vadd.f32 %v791_v55, %v759_v53  ;;  %v748_v54 = vmul.f32 %v5479_v33, %v5479_v33  ;;  %v749_v55 = vmul.f32 %v5481_v36, %v5481_v36 }
 0x298   :  { %793 = vadd.xlane.f32.xlu0 %v792_v58 }
 0x299   :  { %v5525_v61 = vpop.f32.mrf.mxu2  ;;  %v5527_v29 = vpop.f32.mrf.mxu3 }
 0x29a   :  { %v5529_v62 = vpop.f32.mrf.mxu0  ;;  %v5531_v63 = vpop.f32.mrf.mxu1  ;;  %v716_v0 = vadd.f32 %v715_v59, %v5525_v61  ;;  %v762_v1 = vmul.f32 %v5525_v61, %v5525_v61  ;;  %v763_v3 = vmul.f32 %v5527_v29, %v5527_v29 }
 0x29b   :  { %v764_v4 = vmul.f32 %v5529_v62, %v5529_v62  ;;  %v765_v41 = vmul.f32 %v5531_v63, %v5531_v63  ;;  %v720_v7 = vadd.f32 %v5531_v63, %v5529_v62 }
 0x29c   :  { %v717_v5 = vadd.f32 %v716_v0, %v5527_v29  ;;  %v796_v6 = vadd.f32 %v795_v2, %v762_v1  ;;  %v750_v2 = vmul.f32 %v5483_v22, %v5483_v22 }
 0x29d   :  { %v800_v8 = vadd.f32 %v765_v41, %v764_v4  ;;  %v780_v41 = vadd.f32 %v749_v55, %v748_v54  ;;  %v754_v54 = vmul.f32 %v5491_v39, %v5491_v39 }
 0x29e   :  { %718 = vadd.xlane.f32.xlu2 %v717_v5  ;;  %v797_v51 = vadd.f32 %v796_v6, %v763_v3 }
 0x2a0   :  { %798 = vadd.xlane.f32.xlu1 %v797_v51  ;;  %v705_v51 = vadd.f32 %v5489_v38, %v5487_v20 }
 0x2a1   :  { %v5545_v9 = vpop.f32.mrf.mxu2  ;;  %v5547_v10 = vpop.f32.mrf.mxu3 }
 0x2a2   :  { %v766_v11 = vmul.f32 %v5545_v9, %v5545_v9  ;;  %v5551_v12 = vpop.f32.mrf.mxu0  ;;  %v5553_v28 = vpop.f32.mrf.mxu1  ;;  %v721_v25 = vadd.f32 %v720_v7, %v5545_v9  ;;  %v767_v27 = vmul.f32 %v5547_v10, %v5547_v10 }
 0x2a3   :  { %v768_v49 = vmul.f32 %v5551_v12, %v5551_v12  ;;  %v769_v14 = vmul.f32 %v5553_v28, %v5553_v28  ;;  %v725_v16 = vadd.f32 %v5553_v28, %v5551_v12 }
 0x2a4   :  { %v722_v35 = vadd.f32 %v721_v25, %v5547_v10  ;;  %v801_v13 = vadd.f32 %v800_v8, %v766_v11  ;;  %v751_v11 = vmul.f32 %v5485_v37, %v5485_v37  ;;  %v781_v25 = vadd.f32 %v780_v41, %v750_v2 }
 0x2a5   :  { %v805_v44 = vadd.f32 %v769_v14, %v768_v49  ;;  %v706_v49 = vadd.f32 %v705_v51, %v5491_v39 }
 0x2a6   :  { %723 = vadd.xlane.f32.xlu0 %v722_v35  ;;  %v802_v15 = vadd.f32 %v801_v13, %v767_v27 }
 0x2a8   :  { %803 = vadd.xlane.f32.xlu2 %v802_v15 }
 0x2a9   :  { %v5565_v17 = vpop.f32.mrf.mxu2  ;;  %v5567_v24 = vpop.f32.mrf.mxu3 }
 0x2aa   :  { %v726_v30 = vadd.f32 %v725_v16, %v5565_v17  ;;  %v770_v19 = vmul.f32 %v5565_v17, %v5565_v17  ;;  %v5572_v31 = vpop.f32.mrf.mxu0  ;;  %v5574_v32 = vpop.f32.mrf.mxu1  ;;  %v771_v34 = vmul.f32 %v5567_v24, %v5567_v24 }
 0x2ab   :  { %v772_v40 = vmul.f32 %v5572_v31, %v5572_v31  ;;  %v773_v21 = vmul.f32 %v5574_v32, %v5574_v32  ;;  %v730_v47 = vadd.f32 %v5574_v32, %v5572_v31 }
 0x2ac   :  { %v727_v60 = vadd.f32 %v726_v30, %v5567_v24  ;;  %v806_v42 = vadd.f32 %v805_v44, %v770_v19  ;;  %v782_v30 = vadd.f32 %v781_v25, %v751_v11  ;;  %v707_v19 = vadd.f32 %v706_v49, %v5493_v23 }
 0x2ad   :  { %v810_v53 = vadd.f32 %v773_v21, %v772_v40  ;;  %v700_v21 = vadd.f32 %v5481_v36, %v5479_v33 }
 0x2ae   :  { %728 = vadd.xlane.f32.xlu1 %v727_v60  ;;  %v807_v52 = vadd.f32 %v806_v42, %v771_v34 }
 0x2af   :  { %v701_v42 = vadd.f32 %v700_v21, %v5483_v22 }
 0x2b0   :  { %808 = vadd.xlane.f32.xlu0 %v807_v52  ;;  %v753_v52 = vmul.f32 %v5489_v38, %v5489_v38 }
 0x2b1   :  { %v5589_v56 = vpop.f32.mrf.mxu2  ;;  %v5591_v57 = vpop.f32.mrf.mxu3 }
 0x2b2   :  { %v774_v58 = vmul.f32 %v5589_v56, %v5589_v56  ;;  %v775_v59 = vmul.f32 %v5591_v57, %v5591_v57  ;;  %v731_v0 = vadd.f32 %v730_v47, %v5589_v56  ;;  %v5600_v3 = vpop.f32.mrf.mxu0  ;;  %v5602_v4 = vpop.f32.mrf.mxu1  ;;  %v752_v47 = vmul.f32 %v5487_v20, %v5487_v20 }
 0x2b3   :  { %v735_v7 = vadd.f32 %v5602_v4, %v5600_v3  ;;  %v776_v27 = vmul.f32 %v5600_v3, %v5600_v3  ;;  %v777_v35 = vmul.f32 %v5602_v4, %v5602_v4 }
 0x2b4   :  { %v811_v1 = vadd.f32 %v810_v53, %v774_v58  ;;  %v732_v6 = vadd.f32 %v731_v0, %v5591_v57  ;;  %v702_v53 = vadd.f32 %v701_v42, %v5485_v37  ;;  %v785_v55 = vadd.f32 %v753_v52, %v752_v47 }
 0x2b5   :  { %v815_v44 = vadd.f32 %v777_v35, %v776_v27 }
 0x2b6   :  { %v812_v5 = vadd.f32 %v811_v1, %v775_v59  ;;  %v786_v58 = vadd.f32 %v785_v55, %v754_v54  ;;  %v755_v59 = vmul.f32 %v5493_v23, %v5493_v23 }
 0x2b8   :  { %813 = vadd.xlane.f32.xlu1 %v812_v5  ;;  %733 = vadd.xlane.f32.xlu0 %v732_v6  ;;  %v787_v0 = vadd.f32 %v786_v58, %v755_v59 }
 0x2b9   :  { %v5609_v8 = vpop.f32.mrf.mxu2  ;;  %v5619_v14 = vpop.f32.mrf.mxu3 }
 0x2ba   :  { %v736_v13 = vadd.f32 %v735_v7, %v5609_v8  ;;  %v778_v15 = vmul.f32 %v5609_v8, %v5609_v8  ;;  %v779_v40 = vmul.f32 %v5619_v14, %v5619_v14 }
 0x2bc   :  { %v737_v16 = vadd.f32 %v736_v13, %v5619_v14  ;;  %v816_v34 = vadd.f32 %v815_v44, %v778_v15 }
 0x2be   :  { %738 = vadd.xlane.f32.xlu2 %v737_v16  ;;  %v817_v60 = vadd.f32 %v816_v34, %v779_v40 }
 0x2c0   :  { %783 = vadd.xlane.f32.xlu1 %v782_v30  ;;  %708 = vadd.xlane.f32.xlu0 %v707_v19 }
 0x2c6   :  { %818 = vadd.xlane.f32.xlu2 %v817_v60 }
 0x2ce   :  { %703 = vadd.xlane.f32.xlu2 %v702_v53 }
 0x2d6   :  { %788 = vadd.xlane.f32.xlu2 %v787_v0 }
 0x309   :  { %v714_v1 = vpop.xlane.xlu1 %713 }
 0x30a   :  { %v5640_v2 = vmul.f32 %v714_v1, %v5384_v18 }
 0x30b   :  { %v794_v41 = vpop.xlane.xlu0 %793 }
 0x30c   :  { %v830_v5 = vmul.f32 %v5640_v2, %v5640_v2  ;;  %v822_v6 = vmul.f32 %v794_v41, %v5384_v18 }
 0x30e   :  { %v838_v7 = vsub.f32 %v822_v6, %v830_v5  ;;  %v686_v6 = vld [vmem:[%s6956_s9 + $0x10] sm:$0xff] }
 0x310   :  { %v846_v51 = vmax.f32 %v838_v7, 0.0 }
 0x311   :  { %v719_v11 = vpop.xlane.xlu2 %718 }
 0x312   :  { %v854_v25 = vadd.f32 1e-05, %v846_v51  ;;  %v5646_v27 = vmul.f32 %v719_v11, %v5384_v18 }
 0x313   :  { %v799_v35 = vpop.xlane.xlu1 %798 }
 0x314   :  { %4993 = vrsqrt.f32 %v854_v25  ;;  %v831_v13 = vmul.f32 %v5646_v27, %v5646_v27  ;;  %v823_v49 = vmul.f32 %v799_v35, %v5384_v18  ;;  %vm886_vm6 = vweird.f32 %v854_v25 }
 0x316   :  { %v839_v15 = vsub.f32 %v823_v49, %v831_v13 }
 0x318   :  { %v847_v16 = vmax.f32 %v839_v15, 0.0 }
 0x319   :  { %v724_v30 = vpop.xlane.xlu0 %723 }
 0x31a   :  { %v4994_v19 = vpop.eup %4993  ;;  %v855_v44 = vadd.f32 1e-05, %v847_v16  ;;  %v5652_v34 = vmul.f32 %v724_v30, %v5384_v18 }
 0x31b   :  { %v881_v40 = vmul.f32 %v4994_v19, %v854_v25  ;;  %v804_v21 = vpop.xlane.xlu2 %803  ;;  %vm887_vm5 = vweird.f32 %v4994_v19 }
 0x31c   :  { %4995 = vrsqrt.f32 %v855_v44  ;;  %v832_v60 = vmul.f32 %v5652_v34, %v5652_v34  ;;  %v824_v42 = vmul.f32 %v804_v21, %v5384_v18  ;;  %vm888_vm7 = vmor %vm886_vm6, %vm887_vm5  ;;  %vm896_vm9 = vweird.f32 %v855_v44 }
 0x31d   :  { %v882_v47 = vmul.f32 %v4994_v19, %v881_v40 }
 0x31e   :  { %v840_v52 = vsub.f32 %v824_v42, %v832_v60 }
 0x31f   :  { %v883_v53 = vmul.f32 0.5, %v882_v47 }
 0x320   :  { %v848_v54 = vmax.f32 %v840_v52, 0.0  ;;  %v687_v52 = vld [vmem:[%s6956_s9 + $0x18] sm:$0xff] }
 0x321   :  { %v884_v55 = vsub.f32 1.5, %v883_v53  ;;  %v729_v58 = vpop.xlane.xlu1 %728 }
 0x322   :  { %v4996_v59 = vpop.eup %4995  ;;  %v856_v0 = vadd.f32 1e-05, %v848_v54  ;;  %v5658_v1 = vmul.f32 %v729_v58, %v5384_v18 }
 0x323   :  { %v891_v41 = vmul.f32 %v4996_v59, %v855_v44  ;;  %v809_v5 = vpop.xlane.xlu0 %808  ;;  %v885_v7 = vmul.f32 %v4994_v19, %v884_v55  ;;  %vm897_vm8 = vweird.f32 %v4996_v59 }
 0x324   :  { %4997 = vrsqrt.f32 %v856_v0  ;;  %v833_v51 = vmul.f32 %v5658_v1, %v5658_v1  ;;  %v825_v11 = vmul.f32 %v809_v5, %v5384_v18  ;;  %vm898_vm10 = vmor %vm896_vm9, %vm897_vm8  ;;  %vm906_vm12 = vweird.f32 %v856_v0 }
 0x325   :  { %v892_v35 = vmul.f32 %v4996_v59, %v891_v41  ;;  %v889_v13 = vsel %vm888_vm7, %v4994_v19, %v885_v7 }
 0x326   :  { %v841_v49 = vsub.f32 %v825_v11, %v833_v51  ;;  %v5666_v15 = vmul.f32 %v889_v13, %v686_v6 }
 0x327   :  { %v893_v25 = vmul.f32 0.5, %v892_v35 }
 0x328   :  { %v849_v16 = vmax.f32 %v841_v49, 0.0  ;;  %976 = vperm.xlu0 %4979, %v5666_v15  }
 0x329   :  { %v894_v30 = vsub.f32 1.5, %v893_v25 }
 0x32a   :  { %v4998_v40 = vpop.eup %4997  ;;  %v857_v21 = vadd.f32 1e-05, %v849_v16 }
 0x32b   :  { %v901_v60 = vmul.f32 %v4998_v40, %v856_v0  ;;  %v814_v42 = vpop.xlane.xlu1 %813  ;;  %v734_v47 = vpop.xlane.xlu0 %733  ;;  %v895_v19 = vmul.f32 %v4996_v59, %v894_v30  ;;  %vm907_vm11 = vweird.f32 %v4998_v40  ;;  %v696_v0 = vld [vmem:[%s6957_s29 + $0x20] sm:$0xff] }
 0x32c   :  { %4999 = vrsqrt.f32 %v857_v21  ;;  %v5673_v53 = vmul.f32 %v734_v47, %v5384_v18  ;;  %v826_v58 = vmul.f32 %v814_v42, %v5384_v18  ;;  %vm908_vm13 = vmor %vm906_vm12, %vm907_vm11  ;;  %vm916_vm15 = vweird.f32 %v857_v21 }
 0x32d   :  { %v902_v54 = vmul.f32 %v4998_v40, %v901_v60  ;;  %v899_v55 = vsel %vm898_vm10, %v4996_v59, %v895_v19  ;;  %v688_v59 = vld [vmem:[%s6956_s9 + $0x20] sm:$0xff] }
 0x32e   :  { %v834_v44 = vmul.f32 %v5673_v53, %v5673_v53  ;;  %v5678_v41 = vmul.f32 %v899_v55, %v687_v52 }
 0x32f   :  { %v903_v5 = vmul.f32 0.5, %v902_v54 }
 0x330   :  { %v842_v6 = vsub.f32 %v826_v58, %v834_v44  ;;  %981 = vperm.xlu2 %4978, %v5678_v41   ;;  %v689_v44 = vld [vmem:[%s6956_s9 + $0x28] sm:$0xff] }
 0x331   :  { %v904_v7 = vsub.f32 1.5, %v903_v5  ;;  %v739_v51 = vpop.xlane.xlu2 %738 }
 0x332   :  { %v5000_v11 = vpop.eup %4999  ;;  %v850_v35 = vmax.f32 %v842_v6, 0.0  ;;  %v5685_v60 = vmul.f32 %v739_v51, %v5384_v18 }
 0x333   :  { %v911_v13 = vmul.f32 %v5000_v11, %v857_v21  ;;  %v905_v49 = vmul.f32 %v4998_v40, %v904_v7  ;;  %vm917_vm14 = vweird.f32 %v5000_v11 }
 0x334   :  { %v858_v25 = vadd.f32 1e-05, %v850_v35  ;;  %v835_v55 = vmul.f32 %v5685_v60, %v5685_v60  ;;  %vm918_vm2 = vmor %vm916_vm15, %vm917_vm14 }
 0x335   :  { %v912_v16 = vmul.f32 %v5000_v11, %v911_v13  ;;  %v909_v30 = vsel %vm908_vm13, %v4998_v40, %v905_v49  ;;  %v697_v49 = vld [vmem:[%s6957_s29 + $0x28] sm:$0xff] }
 0x336   :  { %5001 = vrsqrt.f32 %v858_v25  ;;  %v944_v42 = vmul.f32 %v909_v30, %v688_v59  ;;  %vm926_vm5 = vweird.f32 %v858_v25 }
 0x337   :  { %v913_v47 = vmul.f32 0.5, %v912_v16 }
 0x338   :  { %986 = vperm.xlu1 %4980, %v944_v42   ;;  %v952_v52 = vmul.f32 %v944_v42, %v5652_v34  ;;  %v784_v42 = vpop.xlane.xlu1 %783 }
 0x339   :  { %v914_v19 = vsub.f32 1.5, %v913_v47  ;;  %v819_v54 = vpop.xlane.xlu2 %818 }
 0x33a   :  { %v827_v40 = vmul.f32 %v819_v54, %v5384_v18  ;;  %v960_v58 = vsub.f32 %v696_v0, %v952_v52  ;;  %v820_v54 = vmul.f32 %v784_v42, %v5384_v18 }
 0x33b   :  { %v915_v5 = vmul.f32 %v5000_v11, %v914_v19  ;;  %v709_v19 = vpop.xlane.xlu0 %708 }
 0x33c   :  { %v5002_v6 = vpop.eup %5001  ;;  %v843_v7 = vsub.f32 %v827_v40, %v835_v55  ;;  %1058 = vperm.xlu2 %4978, %v960_v58   ;;  %v5711_v58 = vmul.f32 %v709_v19, %v5384_v18 }
 0x33d   :  { %v921_v34 = vmul.f32 %v5002_v6, %v858_v25  ;;  %v919_v51 = vsel %vm918_vm2, %v5000_v11, %v915_v5  ;;  %vm927_vm3 = vweird.f32 %v5002_v6 }
 0x33e   :  { %v851_v35 = vmax.f32 %v843_v7, 0.0  ;;  %v945_v13 = vmul.f32 %v919_v51, %v689_v44  ;;  %vm928_vm6 = vmor %vm926_vm5, %vm927_vm3  ;;  %v829_v25 = vmul.f32 %v5711_v58, %v5711_v58 }
 0x33f   :  { %v922_v59 = vmul.f32 %v5002_v6, %v921_v34 }
 0x340   :  { %v859_v16 = vadd.f32 1e-05, %v851_v35  ;;  %991 = vperm.xlu0 %4979, %v945_v13   ;;  %v953_v21 = vmul.f32 %v945_v13, %v5658_v1  ;;  %v690_v1 = vld [vmem:[%s6956_s9 + $0x30] sm:$0xff] }
 0x341   :  { %v923_v30 = vmul.f32 0.5, %v922_v59  ;;  %v704_v47 = vpop.xlane.xlu2 %703  ;;  %v698_v59 = vld [vmem:[%s6957_s29 + $0x30] sm:$0xff] }
 0x342   :  { %5003 = vrsqrt.f32 %v859_v16  ;;  %v5702_v0 = vmul.f32 %v704_v47, %v5384_v18  ;;  %v961_v52 = vsub.f32 %v697_v49, %v953_v21  ;;  %vm936_vm8 = vweird.f32 %v859_v16 }
 0x343   :  { %v924_v11 = vsub.f32 1.5, %v923_v30 }
 0x344   :  { %v828_v55 = vmul.f32 %v5702_v0, %v5702_v0  ;;  %1063 = vperm.xlu1 %4980, %v961_v52  }
 0x345   :  { %v925_v40 = vmul.f32 %v5002_v6, %v924_v11 }
 0x346   :  { %v836_v44 = vsub.f32 %v820_v54, %v828_v55 }
 0x347   :  { %v929_v5 = vsel %vm928_vm6, %v5002_v6, %v925_v40 }
 0x348   :  { %v5004_v7 = vpop.eup %5003  ;;  %v946_v34 = vmul.f32 %v929_v5, %v690_v1  ;;  %v844_v51 = vmax.f32 %v836_v44, 0.0 }
 0x349   :  { %v931_v35 = vmul.f32 %v5004_v7, %v859_v16  ;;  %v789_v13 = vpop.xlane.xlu2 %788  ;;  %vm937_vm7 = vweird.f32 %v5004_v7 }
 0x34a   :  { %v954_v49 = vmul.f32 %v946_v34, %v5673_v53  ;;  %v852_v21 = vadd.f32 1e-05, %v844_v51  ;;  %v821_v30 = vmul.f32 %v789_v13, %v5384_v18  ;;  %996 = vperm.xlu0 %4979, %v946_v34   ;;  %v691_v53 = vld [vmem:[%s6956_s9 + $0x38] sm:$0xff]  ;;  %vm938_vm9 = vmor %vm936_vm8, %vm937_vm7 }
 0x34b   :  { %v932_v42 = vmul.f32 %v5004_v7, %v931_v35  ;;  %v699_v51 = vld [vmem:[%s6957_s29 + $0x38] sm:$0xff] }
 0x34c   :  { %5005 = vrsqrt.f32 %v852_v21  ;;  %v837_v6 = vsub.f32 %v821_v30, %v829_v25  ;;  %v962_v47 = vsub.f32 %v698_v59, %v954_v49  ;;  %v950_v49 = vmul.f32 %v5666_v15, %v5640_v2 }
 0x34d   :  { %v933_v52 = vmul.f32 0.5, %v932_v42  ;;  %v684_v42 = vld [vmem:[%s6956_s9] sm:$0xff]  ;;  %vm866_vm11 = vweird.f32 %v852_v21  ;;  %v951_v2 = vmul.f32 %v5678_v41, %v5646_v27 }
 0x34e   :  { %v845_v11 = vmax.f32 %v837_v6, 0.0  ;;  %1068 = vperm.xlu2 %4978, %v962_v47  }
 0x34f   :  { %v934_v19 = vsub.f32 1.5, %v933_v52 }
 0x350   :  { %v853_v54 = vadd.f32 1e-05, %v845_v11  ;;  %v695_v11 = vld [vmem:[%s6957_s29 + $0x18] sm:$0xff] }
 0x351   :  { %v935_v55 = vmul.f32 %v5004_v7, %v934_v19 }
 0x352   :  { %v5006_v1 = vpop.eup %5005  ;;  %5007 = vrsqrt.f32 %v853_v54  ;;  %vm876_vm14 = vweird.f32 %v853_v54 }
 0x353   :  { %v861_v40 = vmul.f32 %v5006_v1, %v852_v21  ;;  %v939_v44 = vsel %vm938_vm9, %v5004_v7, %v935_v55  ;;  %vm867_vm10 = vweird.f32 %v5006_v1  ;;  %v694_v7 = vld [vmem:[%s6957_s29 + $0x10] sm:$0xff]  ;;  %v959_v55 = vsub.f32 %v695_v11, %v951_v2  ;;  %v685_v21 = vld [vmem:[%s6956_s9 + $0x8] sm:$0xff]  ;;  %s6970_s9 = sld [smem:[#allocation27_spill]] }
 0x354   :  { %v947_v5 = vmul.f32 %v939_v44, %v691_v53  ;;  %vm868_vm12 = vmor %vm866_vm11, %vm867_vm10  ;;  %v958_v47 = vsub.f32 %v694_v7, %v950_v49  ;;  %v692_v44 = vld [vmem:[%s6957_s29] sm:$0xff] }
 0x355   :  { %v862_v34 = vmul.f32 %v5006_v1, %v861_v40 }
 0x356   :  { %1001 = vperm.xlu1 %4980, %v947_v5   ;;  %v955_v35 = vmul.f32 %v947_v5, %v5685_v60  ;;  %v693_v5 = vld [vmem:[%s6957_s29 + $0x8] sm:$0xff]  ;;  %s6964_s29 = sld [smem:[#allocation25_spill]] }
 0x357   :  { %v863_v16 = vmul.f32 0.5, %v862_v34 }
 0x358   :  { %v5008_v13 = vpop.eup %5007  ;;  %v963_v59 = vsub.f32 %v699_v51, %v955_v35 }
 0x359   :  { %v864_v25 = vsub.f32 1.5, %v863_v16  ;;  %v871_v30 = vmul.f32 %v5008_v13, %v853_v54  ;;  %vm877_vm13 = vweird.f32 %v5008_v13 }
 0x35a   :  { %1073 = vperm.xlu0 %4979, %v963_v59   ;;  %vm878_vm15 = vmor %vm876_vm14, %vm877_vm13 }
 0x35b   :  { %v865_v6 = vmul.f32 %v5006_v1, %v864_v25  ;;  %v872_v60 = vmul.f32 %v5008_v13, %v871_v30 }
 0x35d   :  { %v869_v15 = vsel %vm868_vm12, %v5006_v1, %v865_v6  ;;  %v873_v52 = vmul.f32 0.5, %v872_v60 }
 0x35e   :  { %v940_v19 = vmul.f32 %v869_v15, %v684_v42  ;;  %1048 = vperm.xlu1 %4980, %v958_v47  }
 0x35f   :  { %v874_v53 = vsub.f32 1.5, %v873_v52 }
 0x360   :  { %966 = vperm.xlu2 %4978, %v940_v19   ;;  %v948_v41 = vmul.f32 %v940_v19, %v5702_v0 }
 0x361   :  { %v875_v40 = vmul.f32 %v5008_v13, %v874_v53 }
 0x362   :  { %1053 = vperm.xlu0 %4979, %v959_v55   ;;  %v956_v34 = vsub.f32 %v692_v44, %v948_v41 }
 0x363   :  { %v879_v27 = vsel %vm878_vm15, %v5008_v13, %v875_v40 }
 0x364   :  { %v941_v1 = vmul.f32 %v879_v27, %v685_v21 }
 0x366   :  { %971 = vperm.xlu1 %4980, %v941_v1   ;;  %v949_v54 = vmul.f32 %v941_v1, %v5711_v58 }
 0x368   :  { %v957_v51 = vsub.f32 %v693_v5, %v949_v54 }
 0x36a   :  { %1038 = vperm.xlu0 %4979, %v956_v34   ;;  %1043 = vperm.xlu2 %4978, %v957_v51  }
 0x38a   :  { %v982_v35 = vpop.permute.xlu2 %981 }
 0x38b   :  { %v5756_v42 = vmul.f32 %v982_v35, %v5511_v26  ;;  %v5759_v47 = vmul.f32 %v982_v35, %v5513_v50  ;;  %v5762_v2 = vmul.f32 %v982_v35, %v5525_v61 }
 0x396   :  { %v1059_v0 = vpop.permute.xlu2 %1058 }
 0x39a   :  { %v977_v16 = vpop.permute.xlu0 %976 }
 0x39b   :  { %v5772_v26 = vmul.f32 %v977_v16, %v5497_v48  ;;  %v5775_v15 = vmul.f32 %v977_v16, %v5505_v45  ;;  %v5780_v53 = vmul.f32 %v977_v16, %v5507_v46 }
 0x3aa   :  { %v987_v13 = vpop.permute.xlu1 %986 }
 0x3ab   :  { %v1020_v49 = vmul.f32 %v987_v13, %v5529_v62  ;;  %v1021_v25 = vmul.f32 %v987_v13, %v5531_v63  ;;  %v1022_v30 = vmul.f32 %v987_v13, %v5545_v9  ;;  %v1023_v7 = vmul.f32 %v987_v13, %v5547_v10  ;;  %v1069_v63 = vpop.permute.xlu2 %1068 }
 0x3ac   :  { %v5765_v62 = vmul.f32 %v982_v35, %v5527_v29  ;;  %v5769_v10 = vmul.f32 %v977_v16, %v5495_v43 }
 0x3ad   :  { %v1092_v58 = vadd.f32 %v1059_v0, %v1020_v49  ;;  %v1093_v6 = vadd.f32 %v1059_v0, %v1021_v25  ;;  %v1094_v50 = vadd.f32 %v1059_v0, %v1022_v30  ;;  %v1095_v52 = vadd.f32 %v1059_v0, %v1023_v7 }
 0x3af   :  { %v1157_v55 = vmul.f32 0.01, %v1093_v6  ;;  %vm1124_vm2 = vcmp.ge.f32.partialorder %v1092_v58, 0.0  ;;  %vm1125_vm3 = vcmp.ge.f32.partialorder %v1093_v6, 0.0  ;;  %vm1126_vm5 = vcmp.ge.f32.partialorder %v1094_v50, 0.0 }
 0x3b0   :  { %v1158_v41 = vmul.f32 0.01, %v1094_v50  ;;  %vm1127_vm6 = vcmp.ge.f32.partialorder %v1095_v52, 0.0  ;;  %v1159_v1 = vmul.f32 0.01, %v1095_v52 }
 0x3b2   :  { %v992_v59 = vpop.permute.xlu0 %991  ;;  %v5794_v16 = vsel %vm1126_vm5, %v1094_v50, %v1158_v41 }
 0x3b3   :  { %v1024_v9 = vmul.f32 %v992_v59, %v5551_v12  ;;  %v1025_v61 = vmul.f32 %v992_v59, %v5553_v28  ;;  %v1026_v11 = vmul.f32 %v992_v59, %v5565_v17  ;;  %v1027_v43 = vmul.f32 %v992_v59, %v5567_v24 }
 0x3b4   :  { %v1156_v12 = vmul.f32 0.01, %v1092_v58  ;;  %v5788_v24 = vsel %vm1125_vm3, %v1093_v6, %v1157_v55  ;;  %v5806_v59 = vsel %vm1127_vm6, %v1095_v52, %v1159_v1 }
 0x3b6   :  { %v1064_v60 = vpop.permute.xlu1 %1063  ;;  %v5786_v46 = vsel %vm1124_vm2, %v1092_v58, %v1156_v12 }
 0x3b7   :  { %v1096_v29 = vadd.f32 %v1064_v60, %v1024_v9  ;;  %v1097_v48 = vadd.f32 %v1064_v60, %v1025_v61  ;;  %v1098_v21 = vadd.f32 %v1064_v60, %v1026_v11  ;;  %v1099_v45 = vadd.f32 %v1064_v60, %v1027_v43 }
 0x3b9   :  { %v1160_v27 = vmul.f32 0.01, %v1096_v29  ;;  %vm1128_vm7 = vcmp.ge.f32.partialorder %v1096_v29, 0.0  ;;  %vm1129_vm8 = vcmp.ge.f32.partialorder %v1097_v48, 0.0  ;;  %v1161_v54 = vmul.f32 0.01, %v1097_v48 }
 0x3ba   :  { %v967_v44 = vpop.permute.xlu2 %966  ;;  %vm1130_vm9 = vcmp.ge.f32.partialorder %v1098_v21, 0.0  ;;  %v1163_v51 = vmul.f32 0.01, %v1099_v45  ;;  %vm1131_vm10 = vcmp.ge.f32.partialorder %v1099_v45, 0.0 }
 0x3bb   :  { %v5791_v35 = vsel %vm1128_vm7, %v1096_v29, %v1160_v27  ;;  %v5797_v13 = vmul.f32 %v967_v44, %v5479_v33  ;;  %v5800_v0 = vmul.f32 %v967_v44, %v5481_v36  ;;  %v5809_v49 = vmul.f32 %v967_v44, %v5485_v37 }
 0x3bc   :  { %v997_v19 = vpop.permute.xlu0 %996  ;;  %v5812_v7 = vsel %vm1129_vm8, %v1097_v48, %v1161_v54  ;;  %v1220_v36 = vpack.c.bf16 %v5791_v35, %v5786_v46 }
 0x3bd   :  { %v1028_v40 = vmul.f32 %v997_v19, %v5572_v31  ;;  %v1029_v28 = vmul.f32 %v997_v19, %v5574_v32  ;;  %v1030_v17 = vmul.f32 %v997_v19, %v5589_v56  ;;  %v1031_v5 = vmul.f32 %v997_v19, %v5591_v57 }
 0x3be   :  { %v1162_v31 = vmul.f32 0.01, %v1098_v21  ;;  %v5803_v57 = vmul.f32 %v967_v44, %v5483_v22  ;;  %v5818_v22 = vsel %vm1131_vm10, %v1099_v45, %v1163_v51  ;;  %v1221_v11 = vpack.c.bf16 %v5812_v7, %v5788_v24 }
 0x3bf   :  { %v1100_v34 = vadd.f32 %v1069_v63, %v1028_v40  ;;  %v1101_v32 = vadd.f32 %v1069_v63, %v1029_v28  ;;  %v1102_v56 = vadd.f32 %v1069_v63, %v1030_v17  ;;  %v1103_v25 = vadd.f32 %v1069_v63, %v1031_v5 }
 0x3c0   :  { %v5814_v58 = vsel %vm1130_vm9, %v1098_v21, %v1162_v31 }
 0x3c1   :  { %v1164_v33 = vmul.f32 0.01, %v1100_v34  ;;  %v1165_v6 = vmul.f32 0.01, %v1101_v32  ;;  %v1166_v60 = vmul.f32 0.01, %v1102_v56  ;;  %v1222_v29 = vpack.c.bf16 %v5814_v58, %v5794_v16 }
 0x3c2   :  { %vm1132_vm11 = vcmp.ge.f32.partialorder %v1100_v34, 0.0  ;;  %vm1133_vm12 = vcmp.ge.f32.partialorder %v1101_v32, 0.0  ;;  %vm1134_vm13 = vcmp.ge.f32.partialorder %v1102_v56, 0.0  ;;  %v1167_v52 = vmul.f32 0.01, %v1103_v25 }
 0x3c3   :  { %vm1135_vm14 = vcmp.ge.f32.partialorder %v1103_v25, 0.0 }
 0x3c4   :  { %v1199_v28 = vsel %vm1135_vm14, %v1103_v25, %v1167_v52 }
 0x3c8   :  { %v1002_v30 = vpop.permute.xlu1 %1001 }
 0x3c9   :  { %v1032_v37 = vmul.f32 %v1002_v30, %v5600_v3  ;;  %v1033_v63 = vmul.f32 %v1002_v30, %v5602_v4  ;;  %v1034_v9 = vmul.f32 %v1002_v30, %v5609_v8  ;;  %v1035_v50 = vmul.f32 %v1002_v30, %v5619_v14 }
 0x3ca   :  { %v1196_v3 = vsel %vm1132_vm11, %v1100_v34, %v1164_v33  ;;  %v1197_v4 = vsel %vm1133_vm12, %v1101_v32, %v1165_v6  ;;  %v1198_v8 = vsel %vm1134_vm13, %v1102_v56, %v1166_v60  ;;  %v1223_v14 = vpack.c.bf16 %v5818_v22, %v5806_v59 }
 0x3cc   :  { %v1074_v61 = vpop.permute.xlu0 %1073 }
 0x3cd   :  { %v1104_v19 = vadd.f32 %v1074_v61, %v1032_v37  ;;  %v1105_v43 = vadd.f32 %v1074_v61, %v1033_v63  ;;  %v1106_v12 = vadd.f32 %v1074_v61, %v1034_v9  ;;  %v1107_v55 = vadd.f32 %v1074_v61, %v1035_v50  ;;  %v1044_v50 = vpop.permute.xlu2 %1043 }
 0x3cf   :  { %vm1136_vm15 = vcmp.ge.f32.partialorder %v1104_v19, 0.0  ;;  %vm1137_vm2 = vcmp.ge.f32.partialorder %v1105_v43, 0.0  ;;  %vm1138_vm3 = vcmp.ge.f32.partialorder %v1106_v12, 0.0  ;;  %vm1139_vm5 = vcmp.ge.f32.partialorder %v1107_v55, 0.0 }
 0x3d0   :  { %v1168_v48 = vmul.f32 0.01, %v1104_v19  ;;  %v1169_v21 = vmul.f32 0.01, %v1105_v43  ;;  %v1170_v45 = vmul.f32 0.01, %v1106_v12  ;;  %v1049_v40 = vpop.permute.xlu1 %1048 }
 0x3d1   :  { %v1171_v17 = vmul.f32 0.01, %v1107_v55  ;;  %v1084_v27 = vadd.f32 %v1049_v40, %v5769_v10  ;;  %v1085_v41 = vadd.f32 %v1049_v40, %v5772_v26  ;;  %v1086_v24 = vadd.f32 %v1049_v40, %v5775_v15 }
 0x3d2   :  { %v5838_v1 = vadd.f32 %v1049_v40, %v5780_v53  ;;  %v1200_v44 = vsel %vm1136_vm15, %v1104_v19, %v1168_v48  ;;  %v1201_v5 = vsel %vm1137_vm2, %v1105_v43, %v1169_v21  ;;  %v1202_v54 = vsel %vm1138_vm3, %v1106_v12, %v1170_v45 }
 0x3d3   :  { %v1224_v31 = vpack.c.bf16 %v1200_v44, %v1196_v3  ;;  %v1225_v34 = vpack.c.bf16 %v1201_v5, %v1197_v4  ;;  %v1226_v32 = vpack.c.bf16 %v1202_v54, %v1198_v8  ;;  %v1203_v51 = vsel %vm1139_vm5, %v1107_v55, %v1171_v17 }
 0x3d4   :  { %v1054_v56 = vpop.permute.xlu0 %1053  ;;  %v1227_v16 = vpack.c.bf16 %v1203_v51, %v1199_v28  ;;  %vm1116_vm6 = vcmp.ge.f32.partialorder %v1084_v27, 0.0  ;;  %v1148_v25 = vmul.f32 0.01, %v1084_v27  ;;  %vm1117_vm7 = vcmp.ge.f32.partialorder %v1085_v41, 0.0  ;;  %v4823_v51 = vld [vmem:[%s6958_s30 + $0x8] sm:$0xff] }
 0x3d5   :  { %v1088_v10 = vadd.f32 %v1054_v56, %v5756_v42  ;;  %v1089_v26 = vadd.f32 %v1054_v56, %v5759_v47  ;;  %v1090_v15 = vadd.f32 %v1054_v56, %v5762_v2  ;;  %v1091_v53 = vadd.f32 %v1054_v56, %v5765_v62  ;;  %1265 = vmatpush.bf16.msra.mxu0 %v1224_v31  ;;  %v4824_v56 = vld [vmem:[%s6958_s30 + $0x10] sm:$0xff] }
 0x3d6   :  { %1294 = vmatpush.bf16.msra.mxu1 %v1225_v34  ;;  %1323 = vmatpush.bf16.msra.mxu2 %v1226_v32  ;;  %v1180_v30 = vsel %vm1116_vm6, %v1084_v27, %v1148_v25  ;;  %v1149_v7 = vmul.f32 0.01, %v1085_v41  ;;  %vm1118_vm8 = vcmp.ge.f32.partialorder %v1086_v24, 0.0  ;;  %v1150_v58 = vmul.f32 0.01, %v1086_v24 }
 0x3d7   :  { %1352 = vmatpush.bf16.msrb.mxu3 %v1227_v16  ;;  %vm1120_vm9 = vcmp.ge.f32.partialorder %v1088_v10, 0.0  ;;  %v1152_v33 = vmul.f32 0.01, %v1088_v10  ;;  %vm1121_vm10 = vcmp.ge.f32.partialorder %v1089_v26, 0.0  ;;  %v1153_v6 = vmul.f32 0.01, %v1089_v26 }
 0x3d8   :  { %v972_v60 = vpop.permute.xlu1 %971  ;;  %v1181_v42 = vsel %vm1117_vm7, %v1085_v41, %v1149_v7  ;;  %vm1122_vm11 = vcmp.ge.f32.partialorder %v1090_v15, 0.0  ;;  %v1154_v47 = vmul.f32 0.01, %v1090_v15  ;;  %v1182_v2 = vsel %vm1118_vm8, %v1086_v24, %v1150_v58  ;;  %v4822_v41 = vld [vmem:[%s6958_s30] sm:$0xff]  ;;  %v4825_v16 = vld [vmem:[%s6958_s30 + $0x18] sm:$0xff]  ;;  %s5138_s30 = smov [#allocation7]  }
 0x3d9   :  { %v1008_v62 = vmul.f32 %v972_v60, %v5487_v20  ;;  %v1009_v37 = vmul.f32 %v972_v60, %v5489_v38  ;;  %v1010_v63 = vmul.f32 %v972_v60, %v5491_v39  ;;  %v1011_v9 = vmul.f32 %v972_v60, %v5493_v23  ;;  %1266 = vmatpush.bf16.msra.mxu0 %v1220_v36  ;;  %s4162_s3 = sshll.u32 %s5138_s30, 4  ;;  %s4163_s3 = int_to_ptr.vmem [resolvable:$true] %s4162_s3 }
 0x3da   :  { %1295 = vmatpush.bf16.msra.mxu1 %v1221_v11  ;;  %1324 = vmatpush.bf16.msra.mxu2 %v1222_v29  ;;  %v1184_v52 = vsel %vm1120_vm9, %v1088_v10, %v1152_v33  ;;  %v1185_v61 = vsel %vm1121_vm10, %v1089_v26, %v1153_v6  ;;  %v1186_v19 = vsel %vm1122_vm11, %v1090_v15, %v1154_v47  ;;  %vm1119_vm12 = vcmp.ge.f32.partialorder %v5838_v1, 0.0 }
 0x3db   :  { %v1080_v20 = vadd.f32 %v1044_v50, %v1008_v62  ;;  %v1081_v38 = vadd.f32 %v1044_v50, %v1009_v37  ;;  %v1082_v43 = vadd.f32 %v1044_v50, %v1010_v63  ;;  %v1083_v39 = vadd.f32 %v1044_v50, %v1011_v9  ;;  %1353 = vmatpush.bf16.msrb.mxu3 %v1223_v14 }
 0x3dc   :  { %v1039_v23 = vpop.permute.xlu0 %1038  ;;  %v1216_v46 = vpack.c.bf16 %v1184_v52, %v1180_v30  ;;  %v1217_v35 = vpack.c.bf16 %v1185_v61, %v1181_v42  ;;  %v1218_v36 = vpack.c.bf16 %v1186_v19, %v1182_v2  ;;  %vm1123_vm13 = vcmp.ge.f32.partialorder %v1091_v53, 0.0 }
 0x3dd   :  { %v1076_v11 = vadd.f32 %v1039_v23, %v5797_v13  ;;  %v1077_v29 = vadd.f32 %v1039_v23, %v5800_v0  ;;  %v1078_v12 = vadd.f32 %v1039_v23, %v5803_v57  ;;  %v1079_v55 = vadd.f32 %v1039_v23, %v5809_v49 }
 0x3de   :  { %1267 = vmatpush.bf16.msra.mxu0 %v1216_v46  ;;  %1296 = vmatpush.bf16.msra.mxu1 %v1217_v35  ;;  %v1151_v3 = vmul.f32 0.01, %v5838_v1  ;;  %v1155_v4 = vmul.f32 0.01, %v1091_v53  ;;  %vm1112_vm14 = vcmp.ge.f32.partialorder %v1080_v20, 0.0  ;;  %vm1113_vm15 = vcmp.ge.f32.partialorder %v1081_v38, 0.0 }
 0x3df   :  { %1325 = vmatpush.bf16.msra.mxu2 %v1218_v36  ;;  %vm1108_vm2 = vcmp.ge.f32.partialorder %v1076_v11, 0.0  ;;  %v1140_v59 = vmul.f32 0.01, %v1076_v11  ;;  %v1144_v22 = vmul.f32 0.01, %v1080_v20  ;;  %vm1109_vm3 = vcmp.ge.f32.partialorder %v1077_v29, 0.0 }
 0x3e0   :  { %v1183_v13 = vsel %vm1119_vm12, %v5838_v1, %v1151_v3  ;;  %v1187_v0 = vsel %vm1123_vm13, %v1091_v53, %v1155_v4  ;;  %v1141_v57 = vmul.f32 0.01, %v1077_v29  ;;  %v1145_v49 = vmul.f32 0.01, %v1081_v38 }
 0x3e1   :  { %v1219_v8 = vpack.c.bf16 %v1187_v0, %v1183_v13  ;;  %v1172_v14 = vsel %vm1108_vm2, %v1076_v11, %v1140_v59  ;;  %v1176_v48 = vsel %vm1112_vm14, %v1080_v20, %v1144_v22  ;;  %vm1110_vm5 = vcmp.ge.f32.partialorder %v1078_v12, 0.0 }
 0x3e2   :  { %v1212_v21 = vpack.c.bf16 %v1176_v48, %v1172_v14  ;;  %v1173_v45 = vsel %vm1109_vm3, %v1077_v29, %v1141_v57  ;;  %v1177_v40 = vsel %vm1113_vm15, %v1081_v38, %v1145_v49  ;;  %vm1114_vm6 = vcmp.ge.f32.partialorder %v1082_v43, 0.0 }
 0x3e3   :  { %1354 = vmatpush.bf16.msrb.mxu3 %v1219_v8  ;;  %v1213_v28 = vpack.c.bf16 %v1177_v40, %v1173_v45  ;;  %v1142_v17 = vmul.f32 0.01, %v1078_v12  ;;  %v1146_v27 = vmul.f32 0.01, %v1082_v43  ;;  %vm1111_vm7 = vcmp.ge.f32.partialorder %v1079_v55, 0.0 }
 0x3e4   :  { %1268 = vmatpush.bf16.msra.mxu0 %v1212_v21  ;;  %vm1115_vm8 = vcmp.ge.f32.partialorder %v1083_v39, 0.0  ;;  %v1143_v24 = vmul.f32 0.01, %v1079_v55  ;;  %v1147_v1 = vmul.f32 0.01, %v1083_v39  ;;  %vm1248_vm9 = vcmask 523264  }
 0x3e5   :  { %1297 = vmatpush.bf16.msra.mxu1 %v1213_v28  ;;  %v1174_v44 = vsel %vm1110_vm5, %v1078_v12, %v1142_v17  ;;  %v1178_v5 = vsel %vm1114_vm6, %v1082_v43, %v1146_v27 }
 0x3e6   :  { %v1214_v54 = vpack.c.bf16 %v1178_v5, %v1174_v44  ;;  %v1175_v31 = vsel %vm1111_vm7, %v1079_v55, %v1143_v24  ;;  %v1179_v34 = vsel %vm1115_vm8, %v1083_v39, %v1147_v1 }
 0x3e7   :  { %v1215_v32 = vpack.c.bf16 %v1179_v34, %v1175_v31  ;;  %4245 = vmatmul.msk.bf16.vlgmr.msra.gmra.mxu0 %vm1248_vm9, %v4822_v41 }
 0x3e8   :  { %1326 = vmatpush.bf16.msra.mxu2 %v1214_v54  ;;  %4249 = vmatmul.msk.bf16.vlgmr.msra.gmra.mxu1 %vm1248_vm9, %v4822_v41 }
 0x3e9   :  { %1355 = vmatpush.bf16.msrb.mxu3 %v1215_v32 }
 0x3eb   :  { %4253 = vmatmul.msk.bf16.vlgmr.msra.gmra.mxu2 %vm1248_vm9, %v4822_v41 }
 0x3ec   :  { %4257 = vmatmul.msk.bf16.vlgmr.msrb.gmra.mxu3 %vm1248_vm9, %v4822_v41 }
 0x3f7   :  { %4246 = vmatmul.msk.bf16.gmra.mxu0 %vm1248_vm9, %v4823_v51 }
 0x3f8   :  { %4250 = vmatmul.msk.bf16.gmra.mxu1 %vm1248_vm9, %v4823_v51 }
 0x3fb   :  { %4254 = vmatmul.msk.bf16.gmra.mxu2 %vm1248_vm9, %v4823_v51 }
 0x3fc   :  { %4258 = vmatmul.msk.bf16.gmra.mxu3 %vm1248_vm9, %v4823_v51 }
 0x407   :  { %4247 = vmatmul.msk.bf16.gmra.mxu0 %vm1248_vm9, %v4824_v56 }
 0x408   :  { %4251 = vmatmul.msk.bf16.gmra.mxu1 %vm1248_vm9, %v4824_v56 }
 0x40b   :  { %4255 = vmatmul.msk.bf16.gmra.mxu2 %vm1248_vm9, %v4824_v56 }
 0x40c   :  { %4259 = vmatmul.msk.bf16.gmra.mxu3 %vm1248_vm9, %v4824_v56 }
 0x417   :  { %4248 = vmatmul.msk.bf16.gmra.mxu0 %vm1248_vm9, %v4825_v16 }
 0x418   :  { %4252 = vmatmul.msk.bf16.gmra.mxu1 %vm1248_vm9, %v4825_v16 }
 0x41b   :  { %4256 = vmatmul.msk.bf16.gmra.mxu2 %vm1248_vm9, %v4825_v16 }
 0x41c   :  { %4260 = vmatmul.msk.bf16.gmra.mxu3 %vm1248_vm9, %v4825_v16 }
 0x464   :  { %v5898_v25 = vpop.f32.mrf.mxu0 }
 0x465   :  { %v5900_v10 = vpop.f32.mrf.mxu1 }
 0x46c   :  { %v5902_v26 = vpop.f32.mrf.mxu0 }
 0x46d   :  { %v5904_v15 = vpop.f32.mrf.mxu1 }
 0x46e   :  { %v5906_v53 = vpop.f32.mrf.mxu2 }
 0x46f   :  { %6959 = vst [vmem:[#allocation11_spill] sm:$0xff] %v5906_v53  ;;  %v5908_v30 = vpop.f32.mrf.mxu3 }
 0x470   :  { %6960 = vst [vmem:[#allocation12_spill] sm:$0xff] %v5908_v30 }
 0x474   :  { %v5910_v7 = vpop.f32.mrf.mxu0 }
 0x475   :  { %v5912_v58 = vpop.f32.mrf.mxu1  ;;  %v1449_v60 = vmul.f32 %v5910_v7, %v5910_v7 }
 0x476   :  { %v5914_v33 = vpop.f32.mrf.mxu2  ;;  %v1450_v42 = vmul.f32 %v5912_v58, %v5912_v58  ;;  %v1403_v47 = vadd.f32 %v5912_v58, %v5910_v7 }
 0x477   :  { %6961 = vst [vmem:[#allocation13_spill] sm:$0xff] %v5914_v33  ;;  %v5916_v6 = vpop.f32.mrf.mxu3 }
 0x478   :  { %6962 = vst [vmem:[#allocation14_spill] sm:$0xff] %v5916_v6  ;;  %v1483_v37 = vadd.f32 %v1450_v42, %v1449_v60 }
 0x47c   :  { %v5924_v2 = vpop.f32.mrf.mxu0 }
 0x47d   :  { %v5926_v62 = vpop.f32.mrf.mxu1 }
 0x47e   :  { %v5928_v63 = vpop.f32.mrf.mxu2  ;;  %v1408_v39 = vadd.f32 %v5926_v62, %v5924_v2 }
 0x47f   :  { %v1451_v9 = vmul.f32 %v5928_v63, %v5928_v63  ;;  %v5932_v50 = vpop.f32.mrf.mxu3  ;;  %v1404_v52 = vadd.f32 %v1403_v47, %v5928_v63 }
 0x480   :  { %v1452_v61 = vmul.f32 %v5932_v50, %v5932_v50 }
 0x481   :  { %v1405_v19 = vadd.f32 %v1404_v52, %v5932_v50  ;;  %v1484_v20 = vadd.f32 %v1483_v37, %v1451_v9 }
 0x483   :  { %1406 = vadd.xlane.f32.xlu2 %v1405_v19  ;;  %v1485_v38 = vadd.f32 %v1484_v20, %v1452_v61  ;;  %v1453_v19 = vmul.f32 %v5924_v2, %v5924_v2  ;;  %v1454_v20 = vmul.f32 %v5926_v62, %v5926_v62 }
 0x484   :  { %v5938_v43 = vpop.f32.mrf.mxu0 }
 0x485   :  { %1486 = vadd.xlane.f32.xlu0 %v1485_v38  ;;  %v5942_v23 = vpop.f32.mrf.mxu1  ;;  %v1457_v11 = vmul.f32 %v5938_v43, %v5938_v43 }
 0x486   :  { %v5944_v46 = vpop.f32.mrf.mxu2  ;;  %v1458_v29 = vmul.f32 %v5942_v23, %v5942_v23  ;;  %v1413_v55 = vadd.f32 %v5942_v23, %v5938_v43 }
 0x487   :  { %v5946_v35 = vpop.f32.mrf.mxu3  ;;  %v1409_v36 = vadd.f32 %v1408_v39, %v5944_v46 }
 0x488   :  { %v1493_v59 = vadd.f32 %v1458_v29, %v1457_v11 }
 0x489   :  { %v1410_v12 = vadd.f32 %v1409_v36, %v5946_v35  ;;  %v1455_v36 = vmul.f32 %v5944_v46, %v5944_v46 }
 0x48b   :  { %1411 = vadd.xlane.f32.xlu1 %v1410_v12 }
 0x48c   :  { %v5956_v3 = vpop.f32.mrf.mxu0 }
 0x48d   :  { %v5958_v4 = vpop.f32.mrf.mxu1  ;;  %v1461_v48 = vmul.f32 %v5956_v3, %v5956_v3 }
 0x48e   :  { %v5960_v22 = vpop.f32.mrf.mxu2  ;;  %v1462_v21 = vmul.f32 %v5958_v4, %v5958_v4  ;;  %v1418_v40 = vadd.f32 %v5958_v4, %v5956_v3 }
 0x48f   :  { %v1459_v13 = vmul.f32 %v5960_v22, %v5960_v22  ;;  %v5964_v0 = vpop.f32.mrf.mxu3  ;;  %v1414_v57 = vadd.f32 %v1413_v55, %v5960_v22 }
 0x490   :  { %v1460_v49 = vmul.f32 %v5964_v0, %v5964_v0  ;;  %v1498_v44 = vadd.f32 %v1462_v21, %v1461_v48 }
 0x491   :  { %v1415_v8 = vadd.f32 %v1414_v57, %v5964_v0  ;;  %v1494_v14 = vadd.f32 %v1493_v59, %v1459_v13  ;;  %v1488_v59 = vadd.f32 %v1454_v20, %v1453_v19  ;;  %v1441_v13 = vmul.f32 %v5898_v25, %v5898_v25 }
 0x492   :  { %v1442_v57 = vmul.f32 %v5900_v10, %v5900_v10  ;;  %v1446_v19 = vmul.f32 %v5904_v15, %v5904_v15 }
 0x493   :  { %1416 = vadd.xlane.f32.xlu0 %v1415_v8  ;;  %v1495_v45 = vadd.f32 %v1494_v14, %v1460_v49  ;;  %v1489_v21 = vadd.f32 %v1488_v59, %v1455_v36 }
 0x494   :  { %v5976_v28 = vpop.f32.mrf.mxu0 }
 0x495   :  { %1496 = vadd.xlane.f32.xlu1 %v1495_v45  ;;  %v5980_v27 = vpop.f32.mrf.mxu1  ;;  %v1465_v5 = vmul.f32 %v5976_v28, %v5976_v28 }
 0x496   :  { %v5978_v17 = vpop.f32.mrf.mxu2  ;;  %v1466_v54 = vmul.f32 %v5980_v27, %v5980_v27  ;;  %v1423_v51 = vadd.f32 %v5980_v27, %v5976_v28 }
 0x497   :  { %v1463_v41 = vmul.f32 %v5978_v17, %v5978_v17  ;;  %v5984_v24 = vpop.f32.mrf.mxu3  ;;  %v1419_v1 = vadd.f32 %v1418_v40, %v5978_v17 }
 0x498   :  { %v1464_v34 = vmul.f32 %v5984_v24, %v5984_v24  ;;  %v1503_v16 = vadd.f32 %v1466_v54, %v1465_v5  ;;  %v1393_v5 = vadd.f32 %v5900_v10, %v5898_v25  ;;  %v1473_v54 = vadd.f32 %v1442_v57, %v1441_v13 }
 0x499   :  { %v1420_v31 = vadd.f32 %v1419_v1, %v5984_v24  ;;  %v1499_v32 = vadd.f32 %v1498_v44, %v1463_v41  ;;  %v1456_v41 = vmul.f32 %v5946_v35, %v5946_v35 }
 0x49b   :  { %1421 = vadd.xlane.f32.xlu2 %v1420_v31  ;;  %v1500_v56 = vadd.f32 %v1499_v32, %v1464_v34  ;;  %v1443_v31 = vmul.f32 %v5906_v53, %v5906_v53  ;;  %v1398_v34 = vadd.f32 %v5904_v15, %v5902_v26  ;;  %v1490_v32 = vadd.f32 %v1489_v21, %v1456_v41 }
 0x49c   :  { %v6003_v9 = vpop.f32.mrf.mxu0 }
 0x49d   :  { %1501 = vadd.xlane.f32.xlu0 %v1500_v56  ;;  %v6005_v52 = vpop.f32.mrf.mxu1  ;;  %v1469_v11 = vmul.f32 %v6003_v9, %v6003_v9  ;;  %v1399_v56 = vadd.f32 %v1398_v34, %v5914_v33 }
 0x49e   :  { %v5996_v60 = vpop.f32.mrf.mxu2  ;;  %v1470_v29 = vmul.f32 %v6005_v52, %v6005_v52  ;;  %v1428_v55 = vadd.f32 %v6005_v52, %v6003_v9 }
 0x49f   :  { %v1467_v42 = vmul.f32 %v5996_v60, %v5996_v60  ;;  %v6000_v47 = vpop.f32.mrf.mxu3  ;;  %v1424_v37 = vadd.f32 %v1423_v51, %v5996_v60  ;;  %v1400_v20 = vadd.f32 %v1399_v56, %v5916_v6 }
 0x4a0   :  { %v1468_v61 = vmul.f32 %v6000_v47, %v6000_v47  ;;  %v1508_v45 = vadd.f32 %v1470_v29, %v1469_v11 }
 0x4a1   :  { %v1425_v38 = vadd.f32 %v1424_v37, %v6000_v47  ;;  %v1504_v39 = vadd.f32 %v1503_v16, %v1467_v42  ;;  %v1444_v16 = vmul.f32 %v5908_v30, %v5908_v30  ;;  %v1474_v42 = vadd.f32 %v1473_v54, %v1443_v31 }
 0x4a2   :  { %v1394_v37 = vadd.f32 %v1393_v5, %v5906_v53 }
 0x4a3   :  { %1426 = vadd.xlane.f32.xlu1 %v1425_v38  ;;  %v1505_v12 = vadd.f32 %v1504_v39, %v1468_v61  ;;  %v1445_v61 = vmul.f32 %v5902_v26, %v5902_v26  ;;  %v1447_v38 = vmul.f32 %v5914_v33, %v5914_v33  ;;  %v1475_v39 = vadd.f32 %v1474_v42, %v1444_v16 }
 0x4a4   :  { %v1395_v36 = vadd.f32 %v1394_v37, %v5908_v30 }
 0x4a5   :  { %1506 = vadd.xlane.f32.xlu2 %v1505_v12  ;;  %v1478_v11 = vadd.f32 %v1446_v19, %v1445_v61  ;;  %v1448_v12 = vmul.f32 %v5916_v6, %v5916_v6 }
 0x4a6   :  { %v6026_v49 = vpop.f32.mrf.mxu2 }
 0x4a7   :  { %v1471_v8 = vmul.f32 %v6026_v49, %v6026_v49  ;;  %v6030_v14 = vpop.f32.mrf.mxu3  ;;  %v1429_v48 = vadd.f32 %v1428_v55, %v6026_v49  ;;  %v1479_v29 = vadd.f32 %v1478_v11, %v1447_v38 }
 0x4a8   :  { %v1472_v1 = vmul.f32 %v6030_v14, %v6030_v14 }
 0x4a9   :  { %v1430_v40 = vadd.f32 %v1429_v48, %v6030_v14  ;;  %v1509_v44 = vadd.f32 %v1508_v45, %v1471_v8  ;;  %v1480_v55 = vadd.f32 %v1479_v29, %v1448_v12 }
 0x4ab   :  { %1431 = vadd.xlane.f32.xlu0 %v1430_v40  ;;  %v1510_v51 = vadd.f32 %v1509_v44, %v1472_v1 }
 0x4ad   :  { %1491 = vadd.xlane.f32.xlu2 %v1490_v32  ;;  %1511 = vadd.xlane.f32.xlu1 %v1510_v51 }
 0x4b3   :  { %1401 = vadd.xlane.f32.xlu0 %v1400_v20 }
 0x4b5   :  { %1476 = vadd.xlane.f32.xlu2 %v1475_v39  ;;  %1396 = vadd.xlane.f32.xlu1 %v1395_v36  ;;  %v1379_v39 = vld [vmem:[%s6963_s1 + $0x10] sm:$0xff] }
 0x4bd   :  { %1481 = vadd.xlane.f32.xlu1 %v1480_v55 }
 0x4f6   :  { %v1407_v59 = vpop.xlane.xlu2 %1406 }
 0x4f7   :  { %v6059_v13 = vmul.f32 %v1407_v59, %v5384_v18 }
 0x4f8   :  { %v1487_v57 = vpop.xlane.xlu0 %1486 }
 0x4f9   :  { %v1523_v8 = vmul.f32 %v6059_v13, %v6059_v13  ;;  %v1515_v48 = vmul.f32 %v1487_v57, %v5384_v18 }
 0x4fb   :  { %v1531_v21 = vsub.f32 %v1515_v48, %v1523_v8 }
 0x4fd   :  { %v1539_v45 = vmax.f32 %v1531_v21, 0.0 }
 0x4fe   :  { %v1412_v41 = vpop.xlane.xlu1 %1411 }
 0x4ff   :  { %v1547_v40 = vadd.f32 1e-05, %v1539_v45 }
 0x501   :  { %5009 = vrsqrt.f32 %v1547_v40  ;;  %vm1579_vm11 = vweird.f32 %v1547_v40 }
 0x506   :  { %v1417_v1 = vpop.xlane.xlu0 %1416 }
 0x507   :  { %v5010_v44 = vpop.eup %5009  ;;  %v6065_v5 = vmul.f32 %v1417_v1, %v5384_v18 }
 0x508   :  { %v1574_v54 = vmul.f32 %v5010_v44, %v1547_v40  ;;  %v1497_v31 = vpop.xlane.xlu1 %1496  ;;  %vm1580_vm10 = vweird.f32 %v5010_v44 }
 0x509   :  { %v1525_v34 = vmul.f32 %v6065_v5, %v6065_v5  ;;  %v1517_v32 = vmul.f32 %v1497_v31, %v5384_v18  ;;  %vm1581_vm12 = vmor %vm1579_vm11, %vm1580_vm10 }
 0x50a   :  { %v1575_v51 = vmul.f32 %v5010_v44, %v1574_v54 }
 0x50b   :  { %v1533_v56 = vsub.f32 %v1517_v32, %v1525_v34 }
 0x50c   :  { %v1576_v16 = vmul.f32 0.5, %v1575_v51  ;;  %v6089_v51 = vmul.f32 %v1412_v41, %v5384_v18 }
 0x50d   :  { %v1541_v42 = vmax.f32 %v1533_v56, 0.0 }
 0x50e   :  { %v1577_v37 = vsub.f32 1.5, %v1576_v16  ;;  %v1422_v61 = vpop.xlane.xlu2 %1421 }
 0x50f   :  { %v1549_v19 = vadd.f32 1e-05, %v1541_v42  ;;  %v6071_v20 = vmul.f32 %v1422_v61, %v5384_v18 }
 0x510   :  { %v1502_v38 = vpop.xlane.xlu0 %1501  ;;  %v1578_v36 = vmul.f32 %v5010_v44, %v1577_v37 }
 0x511   :  { %5011 = vrsqrt.f32 %v1549_v19  ;;  %v1526_v11 = vmul.f32 %v6071_v20, %v6071_v20  ;;  %v1518_v29 = vmul.f32 %v1502_v38, %v5384_v18  ;;  %vm1599_vm14 = vweird.f32 %v1549_v19 }
 0x512   :  { %v1582_v12 = vsel %vm1581_vm12, %v5010_v44, %v1578_v36 }
 0x513   :  { %v1534_v55 = vsub.f32 %v1518_v29, %v1526_v11  ;;  %v6079_v59 = vmul.f32 %v1582_v12, %v1379_v39  ;;  %v1381_v29 = vld [vmem:[%s6963_s1 + $0x20] sm:$0xff]  ;;  %v1524_v12 = vmul.f32 %v6089_v51, %v6089_v51 }
 0x515   :  { %v1542_v57 = vmax.f32 %v1534_v55, 0.0  ;;  %1669 = vperm.xlu0 %4979, %v6079_v59  }
 0x516   :  { %v1427_v8 = vpop.xlane.xlu1 %1426 }
 0x517   :  { %v5012_v48 = vpop.eup %5011  ;;  %v1550_v21 = vadd.f32 1e-05, %v1542_v57  ;;  %v6083_v45 = vmul.f32 %v1427_v8, %v5384_v18 }
 0x518   :  { %v1594_v40 = vmul.f32 %v5012_v48, %v1549_v19  ;;  %v1507_v1 = vpop.xlane.xlu2 %1506  ;;  %vm1600_vm13 = vweird.f32 %v5012_v48 }
 0x519   :  { %5013 = vrsqrt.f32 %v1550_v21  ;;  %v1527_v54 = vmul.f32 %v6083_v45, %v6083_v45  ;;  %v1519_v44 = vmul.f32 %v1507_v1, %v5384_v18  ;;  %vm1601_vm15 = vmor %vm1599_vm14, %vm1600_vm13  ;;  %vm1609_vm3 = vweird.f32 %v1550_v21 }
 0x51a   :  { %v1595_v31 = vmul.f32 %v5012_v48, %v1594_v40 }
 0x51b   :  { %v1535_v34 = vsub.f32 %v1519_v44, %v1527_v54 }
 0x51c   :  { %v1596_v32 = vmul.f32 0.5, %v1595_v31 }
 0x51d   :  { %v1543_v56 = vmax.f32 %v1535_v34, 0.0 }
 0x51e   :  { %v1597_v16 = vsub.f32 1.5, %v1596_v32  ;;  %v1432_v42 = vpop.xlane.xlu0 %1431 }
 0x51f   :  { %v5014_v37 = vpop.eup %5013  ;;  %v6091_v61 = vadd.f32 1e-05, %v1543_v56  ;;  %v6094_v38 = vmul.f32 %v1432_v42, %v5384_v18 }
 0x520   :  { %v1604_v39 = vmul.f32 %v5014_v37, %v1550_v21  ;;  %v1492_v36 = vpop.xlane.xlu2 %1491  ;;  %v1512_v11 = vpop.xlane.xlu1 %1511  ;;  %v1598_v41 = vmul.f32 %v5012_v48, %v1597_v16  ;;  %vm1610_vm2 = vweird.f32 %v5014_v37 }
 0x521   :  { %5015 = vrsqrt.f32 %v6091_v61  ;;  %v1528_v55 = vmul.f32 %v6094_v38, %v6094_v38  ;;  %v1516_v57 = vmul.f32 %v1492_v36, %v5384_v18  ;;  %v1520_v8 = vmul.f32 %v1512_v11, %v5384_v18  ;;  %vm1611_vm5 = vmor %vm1609_vm3, %vm1610_vm2 }
 0x522   :  { %v1605_v19 = vmul.f32 %v5014_v37, %v1604_v39  ;;  %v1602_v40 = vsel %vm1601_vm15, %v5012_v48, %v1598_v41  ;;  %vm1619_vm7 = vweird.f32 %v6091_v61 }
 0x523   :  { %v1532_v1 = vsub.f32 %v1516_v57, %v1524_v12  ;;  %v6106_v54 = vmul.f32 %v1602_v40, %v1381_v29  ;;  %v1536_v31 = vsub.f32 %v1520_v8, %v1528_v55  ;;  %v1382_v29 = vld [vmem:[%s6963_s1 + $0x28] sm:$0xff] }
 0x524   :  { %v1606_v44 = vmul.f32 0.5, %v1605_v19 }
 0x525   :  { %v1540_v34 = vmax.f32 %v1532_v1, 0.0  ;;  %1679 = vperm.xlu2 %4978, %v6106_v54   ;;  %v1544_v56 = vmax.f32 %v1536_v31, 0.0 }
 0x526   :  { %v1607_v32 = vsub.f32 1.5, %v1606_v44  ;;  %v1402_v12 = vpop.xlane.xlu0 %1401  ;;  %v1390_v44 = vld [vmem:[%s6964_s29 + $0x28] sm:$0xff] }
 0x527   :  { %v5016_v16 = vpop.eup %5015  ;;  %v1548_v42 = vadd.f32 1e-05, %v1540_v34  ;;  %v6110_v6 = vadd.f32 1e-05, %v1544_v56  ;;  %v6123_v1 = vmul.f32 %v1402_v12, %v5384_v18 }
 0x528   :  { %v1614_v36 = vmul.f32 %v5016_v16, %v6091_v61  ;;  %v1397_v39 = vpop.xlane.xlu1 %1396  ;;  %v1608_v11 = vmul.f32 %v5014_v37, %v1607_v32  ;;  %v1477_v48 = vpop.xlane.xlu2 %1476  ;;  %vm1620_vm6 = vweird.f32 %v5016_v16 }
 0x529   :  { %5017 = vrsqrt.f32 %v1548_v42  ;;  %v6117_v55 = vmul.f32 %v1397_v39, %v5384_v18  ;;  %v1513_v8 = vmul.f32 %v1477_v48, %v5384_v18  ;;  %vm1621_vm8 = vmor %vm1619_vm7, %vm1620_vm6  ;;  %vm1589_vm12 = vweird.f32 %v1548_v42 }
 0x52a   :  { %v1615_v41 = vmul.f32 %v5016_v16, %v1614_v36  ;;  %5019 = vrsqrt.f32 %v6110_v6  ;;  %v1612_v57 = vsel %vm1611_vm5, %v5014_v37, %v1608_v11  ;;  %vm1629_vm13 = vweird.f32 %v6110_v6 }
 0x52b   :  { %v1521_v21 = vmul.f32 %v6117_v55, %v6117_v55  ;;  %v1638_v40 = vmul.f32 %v1612_v57, %v1382_v29  ;;  %v1383_v29 = vld [vmem:[%s6963_s1 + $0x30] sm:$0xff]  ;;  %v1522_v57 = vmul.f32 %v6123_v1, %v6123_v1 }
 0x52c   :  { %v1616_v19 = vmul.f32 0.5, %v1615_v41 }
 0x52d   :  { %v1529_v34 = vsub.f32 %v1513_v8, %v1521_v21  ;;  %1684 = vperm.xlu0 %4979, %v1638_v40   ;;  %v1646_v32 = vmul.f32 %v1638_v40, %v6071_v20 }
 0x52e   :  { %v1617_v31 = vsub.f32 1.5, %v1616_v19 }
 0x52f   :  { %v5018_v37 = vpop.eup %5017  ;;  %v1537_v39 = vmax.f32 %v1529_v34, 0.0  ;;  %v1654_v48 = vsub.f32 %v1390_v44, %v1646_v32 }
 0x530   :  { %v5020_v56 = vpop.eup %5019  ;;  %v1584_v36 = vmul.f32 %v5018_v37, %v1548_v42  ;;  %v1482_v11 = vpop.xlane.xlu1 %1481  ;;  %v1618_v41 = vmul.f32 %v5016_v16, %v1617_v31  ;;  %vm1590_vm10 = vweird.f32 %v5018_v37 }
 0x531   :  { %v1624_v12 = vmul.f32 %v5020_v56, %v6110_v6  ;;  %v1514_v20 = vmul.f32 %v1482_v11, %v5384_v18  ;;  %v1545_v61 = vadd.f32 1e-05, %v1537_v39  ;;  %1756 = vperm.xlu2 %4978, %v1654_v48   ;;  %vm1630_vm11 = vweird.f32 %v5020_v56  ;;  %vm1591_vm14 = vmor %vm1589_vm12, %vm1590_vm10  ;;  %v1392_v6 = vld [vmem:[%s6964_s29 + $0x38] sm:$0xff] }
 0x532   :  { %v1585_v19 = vmul.f32 %v5018_v37, %v1584_v36  ;;  %v1622_v8 = vsel %vm1621_vm8, %v5016_v16, %v1618_v41  ;;  %v1380_v36 = vld [vmem:[%s6963_s1 + $0x18] sm:$0xff]  ;;  %vm1631_vm15 = vmor %vm1629_vm13, %vm1630_vm11 }
 0x533   :  { %v1625_v21 = vmul.f32 %v5020_v56, %v1624_v12  ;;  %v1530_v40 = vsub.f32 %v1514_v20, %v1522_v57  ;;  %v1639_v44 = vmul.f32 %v1622_v8, %v1383_v29  ;;  %5021 = vrsqrt.f32 %v1545_v61  ;;  %v1384_v16 = vld [vmem:[%s6963_s1 + $0x38] sm:$0xff] }
 0x534   :  { %v1586_v34 = vmul.f32 0.5, %v1585_v19  ;;  %vm1559_vm3 = vweird.f32 %v1545_v61 }
 0x535   :  { %v1626_v32 = vmul.f32 0.5, %v1625_v21  ;;  %v1538_v33 = vmax.f32 %v1530_v40, 0.0  ;;  %1689 = vperm.xlu0 %4979, %v1639_v44   ;;  %v1643_v40 = vmul.f32 %v6079_v59, %v6059_v13  ;;  %v1377_v13 = vld [vmem:[%s6963_s1] sm:$0xff] }
 0x536   :  { %v1587_v31 = vsub.f32 1.5, %v1586_v34 }
 0x537   :  { %v1627_v30 = vsub.f32 1.5, %v1626_v32  ;;  %v1546_v53 = vadd.f32 1e-05, %v1538_v33 }
 0x538   :  { %v1588_v39 = vmul.f32 %v5018_v37, %v1587_v31 }
 0x539   :  { %5023 = vrsqrt.f32 %v1546_v53  ;;  %v1628_v11 = vmul.f32 %v5020_v56, %v1627_v30  ;;  %v5022_v48 = vpop.eup %5021  ;;  %v1645_v30 = vmul.f32 %v6106_v54, %v6065_v5  ;;  %vm1569_vm7 = vweird.f32 %v1546_v53 }
 0x53a   :  { %v1592_v29 = vsel %vm1591_vm14, %v5018_v37, %v1588_v39  ;;  %v1554_v33 = vmul.f32 %v5022_v48, %v1545_v61  ;;  %vm1560_vm2 = vweird.f32 %v5022_v48  ;;  %v1647_v61 = vmul.f32 %v1639_v44, %v6083_v45 }
 0x53b   :  { %v1636_v41 = vmul.f32 %v1592_v29, %v1380_v36  ;;  %v1632_v42 = vsel %vm1631_vm15, %v5020_v56, %v1628_v11  ;;  %v1389_v56 = vld [vmem:[%s6964_s29 + $0x20] sm:$0xff]  ;;  %vm1561_vm5 = vmor %vm1559_vm3, %vm1560_vm2 }
 0x53c   :  { %v1640_v12 = vmul.f32 %v1632_v42, %v1384_v16  ;;  %v1555_v57 = vmul.f32 %v5022_v48, %v1554_v33  ;;  %v1653_v5 = vsub.f32 %v1389_v56, %v1645_v30  ;;  %v1388_v16 = vld [vmem:[%s6964_s29 + $0x18] sm:$0xff] }
 0x53d   :  { %1674 = vperm.xlu1 %4980, %v1636_v41   ;;  %v1644_v39 = vmul.f32 %v1636_v41, %v6089_v51  ;;  %v1391_v51 = vld [vmem:[%s6964_s29 + $0x30] sm:$0xff] }
 0x53e   :  { %1694 = vperm.xlu2 %4978, %v1640_v12   ;;  %v1648_v20 = vmul.f32 %v1640_v12, %v6094_v38  ;;  %v1556_v8 = vmul.f32 0.5, %v1555_v57  ;;  %v1387_v38 = vld [vmem:[%s6964_s29 + $0x10] sm:$0xff]  ;;  %v1655_v12 = vsub.f32 %v1391_v51, %v1647_v61 }
 0x53f   :  { %v5024_v19 = vpop.eup %5023  ;;  %v1651_v36 = vsub.f32 %v1387_v38, %v1643_v40  ;;  %v1652_v33 = vsub.f32 %v1388_v16, %v1644_v39 }
 0x540   :  { %v1564_v37 = vmul.f32 %v5024_v19, %v1546_v53  ;;  %v1656_v21 = vsub.f32 %v1392_v6, %v1648_v20  ;;  %v1557_v34 = vsub.f32 1.5, %v1556_v8  ;;  %vm1570_vm6 = vweird.f32 %v5024_v19  ;;  %v1385_v53 = vld [vmem:[%s6964_s29] sm:$0xff]  ;;  %v1386_v20 = vld [vmem:[%s6964_s29 + $0x8] sm:$0xff] }
 0x541   :  { %vm1571_vm8 = vmor %vm1569_vm7, %vm1570_vm6 }
 0x542   :  { %v1565_v32 = vmul.f32 %v5024_v19, %v1564_v37  ;;  %1766 = vperm.xlu0 %4979, %v1656_v21   ;;  %v1558_v31 = vmul.f32 %v5022_v48, %v1557_v34 }
 0x544   :  { %v1566_v54 = vmul.f32 0.5, %v1565_v32  ;;  %v1562_v59 = vsel %vm1561_vm5, %v5022_v48, %v1558_v31  ;;  %v1378_v48 = vld [vmem:[%s6963_s1 + $0x8] sm:$0xff] }
 0x545   :  { %1751 = vperm.xlu1 %4980, %v1653_v5   ;;  %v1633_v29 = vmul.f32 %v1562_v59, %v1377_v13 }
 0x546   :  { %v1567_v11 = vsub.f32 1.5, %v1566_v54  ;;  %1741 = vperm.xlu2 %4978, %v1651_v36  }
 0x547   :  { %v1641_v6 = vmul.f32 %v1633_v29, %v6117_v55 }
 0x548   :  { %v1568_v41 = vmul.f32 %v5024_v19, %v1567_v11 }
 0x549   :  { %v1649_v45 = vsub.f32 %v1385_v53, %v1641_v6 }
 0x54a   :  { %1746 = vperm.xlu0 %4979, %v1652_v33   ;;  %v1572_v42 = vsel %vm1571_vm8, %v5024_v19, %v1568_v41 }
 0x54b   :  { %v1634_v57 = vmul.f32 %v1572_v42, %v1378_v48 }
 0x54d   :  { %1761 = vperm.xlu1 %4980, %v1655_v12   ;;  %v1642_v44 = vmul.f32 %v1634_v57, %v6123_v1 }
 0x54e   :  { %1664 = vperm.xlu2 %4978, %v1634_v57  }
 0x54f   :  { %v1650_v19 = vsub.f32 %v1386_v20, %v1642_v44 }
 0x552   :  { %1731 = vperm.xlu0 %4979, %v1649_v45  }
 0x555   :  { %1659 = vperm.xlu1 %4980, %v1633_v29  }
 0x55d   :  { %1736 = vperm.xlu1 %4980, %v1650_v19  }
 0x57f   :  { %v1680_v8 = vpop.permute.xlu2 %1679 }
 0x580   :  { %v1713_v59 = vmul.f32 %v1680_v8, %v5938_v43 }
 0x587   :  { %v1670_v55 = vpop.permute.xlu0 %1669 }
 0x588   :  { %v1705_v34 = vmul.f32 %v1670_v55, %v5910_v7  ;;  %v1706_v38 = vmul.f32 %v1670_v55, %v5912_v58  ;;  %v1707_v54 = vmul.f32 %v1670_v55, %v5928_v63  ;;  %v1715_v7 = vmul.f32 %v1680_v8, %v5960_v22 }
 0x589   :  { %v1716_v58 = vmul.f32 %v1680_v8, %v5964_v0 }
 0x58b   :  { %v1757_v30 = vpop.permute.xlu2 %1756 }
 0x598   :  { %v1695_v37 = vpop.permute.xlu2 %1694 }
 0x599   :  { %v1726_v43 = vmul.f32 %v1695_v37, %v6005_v52  ;;  %v1728_v0 = vmul.f32 %v1695_v37, %v6030_v14 }
 0x59f   :  { %v1685_v21 = vpop.permute.xlu0 %1684 }
 0x5a0   :  { %v1742_v56 = vpop.permute.xlu2 %1741  ;;  %v1717_v40 = vmul.f32 %v1685_v21, %v5956_v3  ;;  %v1718_v1 = vmul.f32 %v1685_v21, %v5958_v4  ;;  %v1719_v5 = vmul.f32 %v1685_v21, %v5978_v17  ;;  %v1720_v36 = vmul.f32 %v1685_v21, %v5984_v24 }
 0x5a1   :  { %v1777_v32 = vadd.f32 %v1742_v56, %v1705_v34  ;;  %v1778_v31 = vadd.f32 %v1742_v56, %v1706_v38  ;;  %v1714_v3 = vmul.f32 %v1680_v8, %v5942_v23  ;;  %v1708_v4 = vmul.f32 %v1670_v55, %v5932_v50 }
 0x5a2   :  { %v1789_v39 = vadd.f32 %v1757_v30, %v1717_v40  ;;  %v1790_v16 = vadd.f32 %v1757_v30, %v1718_v1  ;;  %v1779_v11 = vadd.f32 %v1742_v56, %v1707_v54  ;;  %v1725_v17 = vmul.f32 %v1695_v37, %v6003_v9 }
 0x5a3   :  { %v1791_v61 = vadd.f32 %v1757_v30, %v1719_v5  ;;  %v1841_v29 = vmul.f32 0.01, %v1777_v32  ;;  %v1842_v24 = vmul.f32 0.01, %v1778_v31  ;;  %v1792_v33 = vadd.f32 %v1757_v30, %v1720_v36 }
 0x5a4   :  { %v1853_v51 = vmul.f32 0.01, %v1789_v39  ;;  %vm1809_vm10 = vcmp.ge.f32.partialorder %v1777_v32, 0.0  ;;  %vm1810_vm11 = vcmp.ge.f32.partialorder %v1778_v31, 0.0  ;;  %v1727_v23 = vmul.f32 %v1695_v37, %v6026_v49 }
 0x5a5   :  { %vm1821_vm12 = vcmp.ge.f32.partialorder %v1789_v39, 0.0  ;;  %v1854_v22 = vmul.f32 0.01, %v1790_v16  ;;  %v6196_v50 = vadd.f32 %v1742_v56, %v1708_v4  ;;  %vm1822_vm13 = vcmp.ge.f32.partialorder %v1790_v16, 0.0 }
 0x5a6   :  { %v1843_v9 = vmul.f32 0.01, %v1779_v11  ;;  %vm1823_vm14 = vcmp.ge.f32.partialorder %v1791_v61, 0.0  ;;  %v6200_v41 = vsel %vm1809_vm10, %v1777_v32, %v1841_v29  ;;  %v6202_v42 = vsel %vm1810_vm11, %v1778_v31, %v1842_v24 }
 0x5a7   :  { %v1690_v13 = vpop.permute.xlu0 %1689  ;;  %vm1811_vm15 = vcmp.ge.f32.partialorder %v1779_v11, 0.0  ;;  %v6204_v52 = vsel %vm1821_vm12, %v1789_v39, %v1853_v51  ;;  %v1855_v49 = vmul.f32 0.01, %v1791_v61  ;;  %vm1824_vm2 = vcmp.ge.f32.partialorder %v1792_v33, 0.0 }
 0x5a8   :  { %v6198_v48 = vpop.permute.xlu2 %1664  ;;  %v1856_v57 = vmul.f32 0.01, %v1792_v33  ;;  %v6206_v45 = vsel %vm1822_vm13, %v1790_v16, %v1854_v22  ;;  %v6216_v8 = vsel %vm1811_vm15, %v1779_v11, %v1843_v9  ;;  %v1721_v30 = vmul.f32 %v1690_v13, %v5976_v28 }
 0x5a9   :  { %v6210_v44 = vmul.f32 %v6198_v48, %v5902_v26  ;;  %v6214_v20 = vmul.f32 %v6198_v48, %v5904_v15  ;;  %v1722_v55 = vmul.f32 %v1690_v13, %v5980_v27  ;;  %v1723_v37 = vmul.f32 %v1690_v13, %v5996_v60 }
 0x5aa   :  { %v1724_v21 = vmul.f32 %v1690_v13, %v6000_v47  ;;  %v6223_v26 = vsel %vm1823_vm14, %v1791_v61, %v1855_v49  ;;  %v6226_v15 = vsel %vm1824_vm2, %v1792_v33, %v1856_v57  ;;  %v6232_v31 = vmul.f32 0.01, %v6196_v50 }
 0x5af   :  { %v1675_v63 = vpop.permute.xlu1 %1674 }
 0x5b0   :  { %v1709_v60 = vmul.f32 %v1675_v63, %v5924_v2  ;;  %v1710_v5 = vmul.f32 %v1675_v63, %v5926_v62  ;;  %v1711_v54 = vmul.f32 %v1675_v63, %v5944_v46  ;;  %v1712_v36 = vmul.f32 %v1675_v63, %v5946_v35 }
 0x5b4   :  { %v1767_v12 = vpop.permute.xlu0 %1766 }
 0x5b5   :  { %v1797_v6 = vadd.f32 %v1767_v12, %v1725_v17  ;;  %v1798_v14 = vadd.f32 %v1767_v12, %v1726_v43  ;;  %v1799_v53 = vadd.f32 %v1767_v12, %v1727_v23  ;;  %v1800_v19 = vadd.f32 %v1767_v12, %v1728_v0 }
 0x5b7   :  { %v1752_v56 = vpop.permute.xlu1 %1751  ;;  %vm1829_vm3 = vcmp.ge.f32.partialorder %v1797_v6, 0.0  ;;  %v1861_v40 = vmul.f32 0.01, %v1797_v6  ;;  %vm1830_vm5 = vcmp.ge.f32.partialorder %v1798_v14, 0.0  ;;  %v1862_v34 = vmul.f32 0.01, %v1798_v14 }
 0x5b8   :  { %v1863_v38 = vmul.f32 0.01, %v1799_v53  ;;  %v1785_v1 = vadd.f32 %v1752_v56, %v1713_v59  ;;  %vm1831_vm6 = vcmp.ge.f32.partialorder %v1799_v53, 0.0  ;;  %v1864_v28 = vmul.f32 0.01, %v1800_v19 }
 0x5b9   :  { %v1786_v27 = vadd.f32 %v1752_v56, %v1714_v3  ;;  %v1787_v32 = vadd.f32 %v1752_v56, %v1715_v7  ;;  %vm1832_vm7 = vcmp.ge.f32.partialorder %v1800_v19, 0.0  ;;  %v6229_v47 = vadd.f32 %v1752_v56, %v1716_v58 }
 0x5ba   :  { %v1893_v13 = vsel %vm1829_vm3, %v1797_v6, %v1861_v40  ;;  %v1894_v59 = vsel %vm1830_vm5, %v1798_v14, %v1862_v34  ;;  %v1895_v3 = vsel %vm1831_vm6, %v1799_v53, %v1863_v38  ;;  %vm1817_vm8 = vcmp.ge.f32.partialorder %v1785_v1, 0.0 }
 0x5bb   :  { %v1849_v2 = vmul.f32 0.01, %v1785_v1  ;;  %v1896_v16 = vsel %vm1832_vm7, %v1800_v19, %v1864_v28  ;;  %vm1818_vm10 = vcmp.ge.f32.partialorder %v1786_v27, 0.0  ;;  %v1850_v7 = vmul.f32 0.01, %v1786_v27 }
 0x5bc   :  { %v1747_v39 = vpop.permute.xlu0 %1746  ;;  %vm1819_vm11 = vcmp.ge.f32.partialorder %v1787_v32, 0.0  ;;  %v1851_v11 = vmul.f32 0.01, %v1787_v32  ;;  %vm1820_vm12 = vcmp.ge.f32.partialorder %v6229_v47, 0.0  ;;  %v1852_v62 = vmul.f32 0.01, %v6229_v47 }
 0x5bd   :  { %v1781_v58 = vadd.f32 %v1747_v39, %v1709_v60  ;;  %v1782_v63 = vadd.f32 %v1747_v39, %v1710_v5  ;;  %v1783_v29 = vadd.f32 %v1747_v39, %v1711_v54  ;;  %v1784_v24 = vadd.f32 %v1747_v39, %v1712_v36 }
 0x5be   :  { %v1881_v33 = vsel %vm1817_vm8, %v1785_v1, %v1849_v2  ;;  %vm1812_vm3 = vcmp.ge.f32.partialorder %v6196_v50, 0.0  ;;  %v1882_v22 = vsel %vm1818_vm10, %v1786_v27, %v1850_v7  ;;  %v1883_v9 = vsel %vm1819_vm11, %v1787_v32, %v1851_v11  ;;  %v6965_v1 = vld [vmem:[#allocation11_spill] sm:$0xff]  ;;  %v6966_v27 = vld [vmem:[#allocation12_spill] sm:$0xff]  ;;  %v6968_v11 = vld [vmem:[#allocation14_spill] sm:$0xff] }
 0x5bf   :  { %v1762_v4 = vpop.permute.xlu1 %1761  ;;  %vm1813_vm5 = vcmp.ge.f32.partialorder %v1781_v58, 0.0  ;;  %v1845_v12 = vmul.f32 0.01, %v1781_v58  ;;  %vm1814_vm6 = vcmp.ge.f32.partialorder %v1782_v63, 0.0  ;;  %v1847_v56 = vmul.f32 0.01, %v1783_v29 }
 0x5c0   :  { %v1793_v46 = vadd.f32 %v1762_v4, %v1721_v30  ;;  %v1794_v35 = vadd.f32 %v1762_v4, %v1722_v55  ;;  %v1795_v17 = vadd.f32 %v1762_v4, %v1723_v37  ;;  %v1796_v61 = vadd.f32 %v1762_v4, %v1724_v21 }
 0x5c1   :  { %v1846_v21 = vmul.f32 0.01, %v1782_v63  ;;  %v1848_v40 = vmul.f32 0.01, %v1784_v24  ;;  %v1909_v5 = vpack.c.bf16 %v6204_v52, %v1881_v33  ;;  %v1884_v54 = vsel %vm1820_vm12, %v6229_v47, %v1852_v62  ;;  %v6967_v52 = vld [vmem:[#allocation13_spill] sm:$0xff] }
 0x5c2   :  { %vm1825_vm13 = vcmp.ge.f32.partialorder %v1793_v46, 0.0  ;;  %vm1826_vm14 = vcmp.ge.f32.partialorder %v1794_v35, 0.0  ;;  %vm1827_vm15 = vcmp.ge.f32.partialorder %v1795_v17, 0.0  ;;  %vm1828_vm2 = vcmp.ge.f32.partialorder %v1796_v61, 0.0 }
 0x5c3   :  { %v1857_v51 = vmul.f32 0.01, %v1793_v46  ;;  %v1858_v43 = vmul.f32 0.01, %v1794_v35  ;;  %v1859_v23 = vmul.f32 0.01, %v1795_v17  ;;  %v1911_v39 = vpack.c.bf16 %v6223_v26, %v1883_v9 }
 0x5c4   :  { %v1860_v0 = vmul.f32 0.01, %v1796_v61  ;;  %v1732_v60 = vpop.permute.xlu0 %1731  ;;  %vm1815_vm7 = vcmp.ge.f32.partialorder %v1783_v29, 0.0  ;;  %vm1816_vm8 = vcmp.ge.f32.partialorder %v1784_v24, 0.0  ;;  %v1878_v2 = vsel %vm1814_vm6, %v1782_v63, %v1846_v21 }
 0x5c5   :  { %v1889_v49 = vsel %vm1825_vm13, %v1793_v46, %v1857_v51  ;;  %v1890_v57 = vsel %vm1826_vm14, %v1794_v35, %v1858_v43  ;;  %v1891_v6 = vsel %vm1827_vm15, %v1795_v17, %v1859_v23  ;;  %v1912_v47 = vpack.c.bf16 %v6226_v15, %v1884_v54 }
 0x5c6   :  { %v1913_v14 = vpack.c.bf16 %v1893_v13, %v1889_v49  ;;  %v1914_v53 = vpack.c.bf16 %v1894_v59, %v1890_v57  ;;  %v1915_v19 = vpack.c.bf16 %v1895_v3, %v1891_v6  ;;  %v1892_v30 = vsel %vm1828_vm2, %v1796_v61, %v1860_v0 }
 0x5c7   :  { %v1660_v55 = vpop.permute.xlu1 %1659  ;;  %v1916_v37 = vpack.c.bf16 %v1896_v16, %v1892_v30  ;;  %v1877_v3 = vsel %vm1813_vm5, %v1781_v58, %v1845_v12  ;;  %v1703_v16 = vmul.f32 %v6198_v48, %v6967_v52  ;;  %v1879_v7 = vsel %vm1815_vm7, %v1783_v29, %v1847_v56 }
 0x5c8   :  { %v1697_v34 = vmul.f32 %v1660_v55, %v5898_v25  ;;  %v1698_v38 = vmul.f32 %v1660_v55, %v5900_v10  ;;  %v1699_v28 = vmul.f32 %v1660_v55, %v6965_v1  ;;  %v1700_v32 = vmul.f32 %v1660_v55, %v6966_v27  ;;  %1937 = vmatpush.bf16.msrb.mxu0 %v1913_v14  ;;  %v4826_v14 = vld [vmem:[%s6969_s21] sm:$0xff] }
 0x5c9   :  { %1956 = vmatpush.bf16.msrb.mxu1 %v1914_v53  ;;  %1975 = vmatpush.bf16.msrb.mxu2 %v1915_v19  ;;  %v1910_v10 = vpack.c.bf16 %v6206_v45, %v1882_v22  ;;  %v1880_v4 = vsel %vm1816_vm8, %v1784_v24, %v1848_v40  ;;  %v1704_v62 = vmul.f32 %v6198_v48, %v6968_v11  ;;  %v4827_v53 = vld [vmem:[%s6969_s21 + $0x8] sm:$0xff] }
 0x5ca   :  { %v1769_v36 = vadd.f32 %v1732_v60, %v1697_v34  ;;  %v1770_v25 = vadd.f32 %v1732_v60, %v1698_v38  ;;  %1994 = vmatpush.bf16.msra.mxu3 %v1916_v37  ;;  %v1771_v13 = vadd.f32 %v1732_v60, %v1699_v28  ;;  %v1772_v59 = vadd.f32 %v1732_v60, %v1700_v32 }
 0x5cb   :  { %v1876_v45 = vsel %vm1812_vm3, %v6196_v50, %v6232_v31  ;;  %v1905_v46 = vpack.c.bf16 %v1877_v3, %v6200_v41  ;;  %v1906_v35 = vpack.c.bf16 %v1878_v2, %v6202_v42  ;;  %v1907_v17 = vpack.c.bf16 %v1879_v7, %v6216_v8 }
 0x5cc   :  { %1938 = vmatpush.bf16.msrb.mxu0 %v1909_v5  ;;  %v1833_v26 = vmul.f32 0.01, %v1769_v36  ;;  %v1834_v58 = vmul.f32 0.01, %v1770_v25  ;;  %vm1801_vm10 = vcmp.ge.f32.partialorder %v1769_v36, 0.0  ;;  %vm1802_vm11 = vcmp.ge.f32.partialorder %v1770_v25, 0.0 }
 0x5cd   :  { %1957 = vmatpush.bf16.msrb.mxu1 %v1910_v10  ;;  %1976 = vmatpush.bf16.msrb.mxu2 %v1911_v39  ;;  %v1908_v48 = vpack.c.bf16 %v1880_v4, %v1876_v45  ;;  %v1835_v61 = vmul.f32 0.01, %v1771_v13  ;;  %v1836_v63 = vmul.f32 0.01, %v1772_v59  ;;  %vm1803_vm12 = vcmp.ge.f32.partialorder %v1771_v13, 0.0 }
 0x5ce   :  { %1995 = vmatpush.bf16.msra.mxu3 %v1912_v47  ;;  %v1865_v41 = vsel %vm1801_vm10, %v1769_v36, %v1833_v26  ;;  %v1866_v33 = vsel %vm1802_vm11, %v1770_v25, %v1834_v58  ;;  %vm1804_vm13 = vcmp.ge.f32.partialorder %v1772_v59, 0.0 }
 0x5cf   :  { %v1737_v15 = vpop.permute.xlu1 %1736  ;;  %v1867_v23 = vsel %vm1803_vm12, %v1771_v13, %v1835_v61  ;;  %v1868_v22 = vsel %vm1804_vm13, %v1772_v59, %v1836_v63 }
 0x5d0   :  { %v1773_v29 = vadd.f32 %v1737_v15, %v6210_v44  ;;  %v1774_v24 = vadd.f32 %v1737_v15, %v6214_v20  ;;  %v1775_v50 = vadd.f32 %v1737_v15, %v1703_v16  ;;  %v1776_v31 = vadd.f32 %v1737_v15, %v1704_v62  ;;  %1939 = vmatpush.bf16.msrb.mxu0 %v1905_v46 }
 0x5d1   :  { %1958 = vmatpush.bf16.msrb.mxu1 %v1906_v35  ;;  %1977 = vmatpush.bf16.msrb.mxu2 %v1907_v17 }
 0x5d2   :  { %1996 = vmatpush.bf16.msra.mxu3 %v1908_v48  ;;  %vm1805_vm14 = vcmp.ge.f32.partialorder %v1773_v29, 0.0  ;;  %v1837_v42 = vmul.f32 0.01, %v1773_v29  ;;  %vm1806_vm15 = vcmp.ge.f32.partialorder %v1774_v24, 0.0  ;;  %v1838_v8 = vmul.f32 0.01, %v1774_v24 }
 0x5d3   :  { %vm1807_vm2 = vcmp.ge.f32.partialorder %v1775_v50, 0.0  ;;  %v1839_v51 = vmul.f32 0.01, %v1775_v50  ;;  %vm1808_vm3 = vcmp.ge.f32.partialorder %v1776_v31, 0.0  ;;  %v1840_v44 = vmul.f32 0.01, %v1776_v31 }
 0x5d4   :  { %v1869_v43 = vsel %vm1805_vm14, %v1773_v29, %v1837_v42  ;;  %v1870_v20 = vsel %vm1806_vm15, %v1774_v24, %v1838_v8 }
 0x5d5   :  { %v1901_v0 = vpack.c.bf16 %v1869_v43, %v1865_v41  ;;  %v1902_v9 = vpack.c.bf16 %v1870_v20, %v1866_v33  ;;  %v1871_v12 = vsel %vm1807_vm2, %v1775_v50, %v1839_v51  ;;  %v1872_v49 = vsel %vm1808_vm3, %v1776_v31, %v1840_v44 }
 0x5d6   :  { %v1903_v57 = vpack.c.bf16 %v1871_v12, %v1867_v23  ;;  %v1904_v6 = vpack.c.bf16 %v1872_v49, %v1868_v22 }
 0x5d7   :  { %1940 = vmatpush.bf16.msrb.mxu0 %v1901_v0  ;;  %1959 = vmatpush.bf16.msrb.mxu1 %v1902_v9 }
 0x5d8   :  { %1978 = vmatpush.bf16.msrb.mxu2 %v1903_v57  ;;  %1997 = vmatpush.bf16.msra.mxu3 %v1904_v6 }
 0x5da   :  { %4269 = vmatmul.msk.bf16.vlgmr.msrb.gmra.mxu0 %vm1248_vm9, %v4826_v14  ;;  %4271 = vmatmul.msk.bf16.vlgmr.msrb.gmra.mxu1 %vm1248_vm9, %v4826_v14 }
 0x5db   :  { %4273 = vmatmul.msk.bf16.vlgmr.msrb.gmra.mxu2 %vm1248_vm9, %v4826_v14  ;;  %4275 = vmatmul.msk.bf16.vlgmr.msra.gmra.mxu3 %vm1248_vm9, %v4826_v14 }
 0x5ea   :  { %4270 = vmatmul.msk.bf16.gmra.mxu0 %vm1248_vm9, %v4827_v53  ;;  %4272 = vmatmul.msk.bf16.gmra.mxu1 %vm1248_vm9, %v4827_v53 }
 0x5eb   :  { %4274 = vmatmul.msk.bf16.gmra.mxu2 %vm1248_vm9, %v4827_v53  ;;  %4276 = vmatmul.msk.bf16.gmra.mxu3 %vm1248_vm9, %v4827_v53 }
 0x657   :  { %v6286_v19 = vpop.f32.mrf.mxu0  ;;  %v6288_v30 = vpop.f32.mrf.mxu1 }
 0x658   :  { %v2041_v55 = vmul.f32 %v6286_v19, %v6286_v19  ;;  %v2042_v37 = vmul.f32 %v6288_v30, %v6288_v30  ;;  %v2017_v21 = vadd.f32 %v6288_v30, %v6286_v19 }
 0x65a   :  { %v2057_v56 = vadd.f32 %v2042_v37, %v2041_v55 }
 0x65e   :  { %v6296_v40 = vpop.f32.mrf.mxu2  ;;  %v6298_v34 = vpop.f32.mrf.mxu3 }
 0x65f   :  { %v2043_v38 = vmul.f32 %v6296_v40, %v6296_v40  ;;  %v2018_v1 = vadd.f32 %v2017_v21, %v6296_v40  ;;  %v6303_v28 = vpop.f32.mrf.mxu0  ;;  %v6305_v27 = vpop.f32.mrf.mxu1  ;;  %v2044_v32 = vmul.f32 %v6298_v34, %v6298_v34 }
 0x660   :  { %v2045_v54 = vmul.f32 %v6303_v28, %v6303_v28  ;;  %v2046_v36 = vmul.f32 %v6305_v27, %v6305_v27  ;;  %v2022_v10 = vadd.f32 %v6305_v27, %v6303_v28 }
 0x661   :  { %v2019_v60 = vadd.f32 %v2018_v1, %v6298_v34  ;;  %v2058_v5 = vadd.f32 %v2057_v56, %v2043_v38 }
 0x662   :  { %v2062_v16 = vadd.f32 %v2046_v36, %v2045_v54 }
 0x663   :  { %2020 = vadd.xlane.f32.xlu2 %v2019_v60  ;;  %v2059_v25 = vadd.f32 %v2058_v5, %v2044_v32 }
 0x665   :  { %2060 = vadd.xlane.f32.xlu0 %v2059_v25 }
 0x666   :  { %v6316_v39 = vpop.f32.mrf.mxu2  ;;  %v6318_v13 = vpop.f32.mrf.mxu3 }
 0x667   :  { %v2047_v59 = vmul.f32 %v6316_v39, %v6316_v39  ;;  %v2023_v3 = vadd.f32 %v2022_v10, %v6316_v39  ;;  %v6323_v2 = vpop.f32.mrf.mxu0  ;;  %v6325_v52 = vpop.f32.mrf.mxu1  ;;  %v2048_v47 = vmul.f32 %v6318_v13, %v6318_v13 }
 0x668   :  { %v2049_v4 = vmul.f32 %v6323_v2, %v6323_v2  ;;  %v2050_v11 = vmul.f32 %v6325_v52, %v6325_v52  ;;  %v2027_v45 = vadd.f32 %v6325_v52, %v6323_v2 }
 0x669   :  { %v2024_v7 = vadd.f32 %v2023_v3, %v6318_v13  ;;  %v2063_v62 = vadd.f32 %v2062_v16, %v2047_v59 }
 0x66a   :  { %v2067_v58 = vadd.f32 %v2050_v11, %v2049_v4 }
 0x66b   :  { %2025 = vadd.xlane.f32.xlu1 %v2024_v7  ;;  %v2064_v26 = vadd.f32 %v2063_v62, %v2048_v47 }
 0x66d   :  { %2065 = vadd.xlane.f32.xlu2 %v2064_v26 }
 0x66e   :  { %v6336_v46 = vpop.f32.mrf.mxu2  ;;  %v6338_v35 = vpop.f32.mrf.mxu3 }
 0x66f   :  { %v2051_v15 = vmul.f32 %v6336_v46, %v6336_v46  ;;  %v2028_v17 = vadd.f32 %v2027_v45, %v6336_v46  ;;  %v6343_v48 = vpop.f32.mrf.mxu0  ;;  %v6345_v61 = vpop.f32.mrf.mxu1  ;;  %v2052_v63 = vmul.f32 %v6338_v35, %v6338_v35 }
 0x670   :  { %v2053_v24 = vmul.f32 %v6343_v48, %v6343_v48  ;;  %v2054_v50 = vmul.f32 %v6345_v61, %v6345_v61  ;;  %v2032_v41 = vadd.f32 %v6345_v61, %v6343_v48 }
 0x671   :  { %v2029_v29 = vadd.f32 %v2028_v17, %v6338_v35  ;;  %v2068_v31 = vadd.f32 %v2067_v58, %v2051_v15 }
 0x672   :  { %v2072_v42 = vadd.f32 %v2054_v50, %v2053_v24 }
 0x673   :  { %2030 = vadd.xlane.f32.xlu0 %v2029_v29  ;;  %v2069_v33 = vadd.f32 %v2068_v31, %v2052_v63  ;;  %v2009_v29 = vld [vmem:[%s6970_s9] sm:$0xff] }
 0x675   :  { %2070 = vadd.xlane.f32.xlu1 %v2069_v33 }
 0x676   :  { %v6356_v8 = vpop.f32.mrf.mxu2  ;;  %v6358_v51 = vpop.f32.mrf.mxu3 }
 0x677   :  { %v2055_v44 = vmul.f32 %v6356_v8, %v6356_v8  ;;  %v2033_v43 = vadd.f32 %v2032_v41, %v6356_v8  ;;  %v2056_v20 = vmul.f32 %v6358_v51, %v6358_v51 }
 0x679   :  { %v2034_v23 = vadd.f32 %v2033_v43, %v6358_v51  ;;  %v2073_v22 = vadd.f32 %v2072_v42, %v2055_v44 }
 0x67b   :  { %2035 = vadd.xlane.f32.xlu2 %v2034_v23  ;;  %v2074_v0 = vadd.f32 %v2073_v22, %v2056_v20  ;;  %v2013_v20 = vld [vmem:[%s6906_s13] sm:$0xff] }
 0x67d   :  { %2075 = vadd.xlane.f32.xlu0 %v2074_v0 }
 0x6d6   :  { %v2021_v9 = vpop.xlane.xlu2 %2020 }
 0x6d7   :  { %v2037_v12 = vmul.f32 %v2021_v9, %v5384_v18 }
 0x6d8   :  { %v2061_v49 = vpop.xlane.xlu0 %2060 }
 0x6d9   :  { %v2081_v57 = vmul.f32 %v2037_v12, %v2037_v12  ;;  %v2077_v6 = vmul.f32 %v2061_v49, %v5384_v18 }
 0x6db   :  { %v2085_v14 = vsub.f32 %v2077_v6, %v2081_v57  ;;  %v2010_v6 = vld [vmem:[%s6970_s9 + $0x8] sm:$0xff] }
 0x6dd   :  { %v2089_v53 = vmax.f32 %v2085_v14, 0.0 }
 0x6de   :  { %v2026_v55 = vpop.xlane.xlu1 %2025 }
 0x6df   :  { %v2093_v37 = vadd.f32 1e-05, %v2089_v53  ;;  %v6369_v21 = vmul.f32 %v2026_v55, %v5384_v18 }
 0x6e0   :  { %v2066_v56 = vpop.xlane.xlu2 %2065 }
 0x6e1   :  { %5025 = vrsqrt.f32 %v2093_v37  ;;  %v2082_v38 = vmul.f32 %v6369_v21, %v6369_v21  ;;  %v2078_v1 = vmul.f32 %v2066_v56, %v5384_v18  ;;  %vm2103_vm5 = vweird.f32 %v2093_v37 }
 0x6e3   :  { %v2086_v32 = vsub.f32 %v2078_v1, %v2082_v38 }
 0x6e5   :  { %v2090_v60 = vmax.f32 %v2086_v32, 0.0 }
 0x6e6   :  { %v2031_v5 = vpop.xlane.xlu0 %2030 }
 0x6e7   :  { %v5026_v54 = vpop.eup %5025  ;;  %v2094_v36 = vadd.f32 1e-05, %v2090_v60  ;;  %v6375_v25 = vmul.f32 %v2031_v5, %v5384_v18  ;;  %v2011_v60 = vld [vmem:[%s6970_s9 + $0x10] sm:$0xff] }
 0x6e8   :  { %v2098_v10 = vmul.f32 %v5026_v54, %v2093_v37  ;;  %v2071_v59 = vpop.xlane.xlu1 %2070  ;;  %vm2104_vm9 = vweird.f32 %v5026_v54 }
 0x6e9   :  { %5027 = vrsqrt.f32 %v2094_v36  ;;  %v2083_v3 = vmul.f32 %v6375_v25, %v6375_v25  ;;  %v2079_v16 = vmul.f32 %v2071_v59, %v5384_v18  ;;  %vm2105_vm6 = vmor %vm2103_vm5, %vm2104_vm9  ;;  %vm2113_vm8 = vweird.f32 %v2094_v36 }
 0x6ea   :  { %v2099_v47 = vmul.f32 %v5026_v54, %v2098_v10 }
 0x6eb   :  { %v2087_v7 = vsub.f32 %v2079_v16, %v2083_v3 }
 0x6ec   :  { %v2100_v4 = vmul.f32 0.5, %v2099_v47 }
 0x6ed   :  { %v2091_v11 = vmax.f32 %v2087_v7, 0.0 }
 0x6ee   :  { %v2101_v62 = vsub.f32 1.5, %v2100_v4  ;;  %v2036_v45 = vpop.xlane.xlu2 %2035 }
 0x6ef   :  { %v5028_v26 = vpop.eup %5027  ;;  %v2095_v58 = vadd.f32 1e-05, %v2091_v11  ;;  %v6381_v15 = vmul.f32 %v2036_v45, %v5384_v18  ;;  %v2012_v11 = vld [vmem:[%s6970_s9 + $0x18] sm:$0xff] }
 0x6f0   :  { %v2108_v17 = vmul.f32 %v5028_v26, %v2094_v36  ;;  %v2076_v63 = vpop.xlane.xlu0 %2075  ;;  %v2102_v24 = vmul.f32 %v5026_v54, %v2101_v62  ;;  %vm2114_vm7 = vweird.f32 %v5028_v26 }
 0x6f1   :  { %5029 = vrsqrt.f32 %v2095_v58  ;;  %v2084_v50 = vmul.f32 %v6381_v15, %v6381_v15  ;;  %v2080_v31 = vmul.f32 %v2076_v63, %v5384_v18  ;;  %vm2115_vm10 = vmor %vm2113_vm8, %vm2114_vm7  ;;  %vm2123_vm11 = vweird.f32 %v2095_v58 }
 0x6f2   :  { %v2109_v41 = vmul.f32 %v5028_v26, %v2108_v17  ;;  %v2106_v33 = vsel %vm2105_vm6, %v5026_v54, %v2102_v24  ;;  %v2014_v54 = vld [vmem:[%s6906_s13 + $0x8] sm:$0xff]  ;;  %vm2270_vm7 = vcmask 1047556  }
 0x6f3   :  { %v2088_v42 = vsub.f32 %v2080_v31, %v2084_v50  ;;  %v2137_v44 = vmul.f32 %v2106_v33, %v2009_v29 }
 0x6f4   :  { %v2110_v43 = vmul.f32 0.5, %v2109_v41 }
 0x6f5   :  { %v2092_v23 = vmax.f32 %v2088_v42, 0.0  ;;  %2151 = vperm.xlu1 %4980, %v2137_v44   ;;  %v2141_v22 = vmul.f32 %v2137_v44, %v2037_v12 }
 0x6f6   :  { %v2111_v0 = vsub.f32 1.5, %v2110_v43 }
 0x6f7   :  { %v5030_v9 = vpop.eup %5029  ;;  %v2096_v49 = vadd.f32 1e-05, %v2092_v23  ;;  %v2145_v57 = vsub.f32 %v2013_v20, %v2141_v22 }
 0x6f8   :  { %v2118_v18 = vmul.f32 %v5030_v9, %v2095_v58  ;;  %v2112_v14 = vmul.f32 %v5028_v26, %v2111_v0  ;;  %vm2124_vm12 = vweird.f32 %v5030_v9  ;;  %v2016_v58 = vld [vmem:[%s6906_s13 + $0x18] sm:$0xff] }
 0x6f9   :  { %5031 = vrsqrt.f32 %v2096_v49  ;;  %2187 = vperm.xlu2 %4978, %v2145_v57   ;;  %vm2125_vm13 = vmor %vm2123_vm11, %vm2124_vm12  ;;  %vm2133_vm14 = vweird.f32 %v2096_v49 }
 0x6fa   :  { %v2119_v53 = vmul.f32 %v5030_v9, %v2118_v18  ;;  %v2116_v55 = vsel %vm2115_vm10, %v5028_v26, %v2112_v14  ;;  %vm2494_vm10 = vcmask 1043456  }
 0x6fb   :  { %v2138_v37 = vmul.f32 %v2116_v55, %v2010_v6 }
 0x6fc   :  { %v2120_v56 = vmul.f32 0.5, %v2119_v53 }
 0x6fd   :  { %2156 = vperm.xlu0 %4979, %v2138_v37   ;;  %v2142_v1 = vmul.f32 %v2138_v37, %v6369_v21  ;;  %v2015_v21 = vld [vmem:[%s6906_s13 + $0x10] sm:$0xff] }
 0x6fe   :  { %v2121_v12 = vsub.f32 1.5, %v2120_v56 }
 0x6ff   :  { %v5032_v38 = vpop.eup %5031  ;;  %v2146_v3 = vsub.f32 %v2014_v54, %v2142_v1 }
 0x700   :  { %v2128_v32 = vmul.f32 %v5032_v38, %v2096_v49  ;;  %v2122_v5 = vmul.f32 %v5030_v9, %v2121_v12  ;;  %vm2134_vm15 = vweird.f32 %v5032_v38 }
 0x701   :  { %vm2135_vm2 = vmor %vm2133_vm14, %vm2134_vm15 }
 0x702   :  { %v2129_v36 = vmul.f32 %v5032_v38, %v2128_v32  ;;  %v2126_v10 = vsel %vm2125_vm13, %v5030_v9, %v2122_v5  ;;  %v5135_v32 = vmov 1934713408  }
 0x703   :  { %v2139_v59 = vmul.f32 %v2126_v10, %v2011_v60  ;;  %v2299_v60 = vunpack.c.l.s4 %v5135_v32 }
 0x704   :  { %v2130_v16 = vmul.f32 0.5, %v2129_v36 }
 0x705   :  { %2161 = vperm.xlu1 %4980, %v2139_v59   ;;  %2192 = vperm.xlu0 %4979, %v2146_v3   ;;  %v2143_v47 = vmul.f32 %v2139_v59, %v6375_v25 }
 0x706   :  { %v2131_v7 = vsub.f32 1.5, %v2130_v16 }
 0x707   :  { %v2147_v4 = vsub.f32 %v2015_v21, %v2143_v47  ;;  %v6429_v47 = vunpack.c.0.s8 %v2299_v60 }
 0x708   :  { %v2132_v62 = vmul.f32 %v5032_v38, %v2131_v7 }
 0x709   :  { %2197 = vperm.xlu2 %4978, %v2147_v4  }
 0x70a   :  { %v2136_v45 = vsel %vm2135_vm2, %v5032_v38, %v2132_v62 }
 0x70b   :  { %v2140_v26 = vmul.f32 %v2136_v45, %v2012_v11 }
 0x70d   :  { %2166 = vperm.xlu0 %4979, %v2140_v26   ;;  %v2144_v17 = vmul.f32 %v2140_v26, %v6381_v15  ;;  %v5134_v15 = vmov 1983009808  }
 0x70e   :  { %v2275_v20 = vunpack.c.l.s4 %v5134_v15 }
 0x70f   :  { %v2148_v63 = vsub.f32 %v2016_v58, %v2144_v17 }
 0x710   :  { %v6417_v57 = vunpack.c.0.s8 %v2275_v20 }
 0x711   :  { %2202 = vperm.xlu1 %4980, %v2148_v63  }
 0x753   :  { %v2188_v41 = vpop.permute.xlu2 %2187 }
 0x767   :  { %v2152_v25 = vpop.permute.xlu1 %2151 }
 0x768   :  { %v2169_v29 = vmul.f32 %v2152_v25, %v6286_v19  ;;  %v2170_v24 = vmul.f32 %v2152_v25, %v6288_v30  ;;  %v2171_v50 = vmul.f32 %v2152_v25, %v6296_v40  ;;  %v2172_v31 = vmul.f32 %v2152_v25, %v6298_v34 }
 0x76a   :  { %v2205_v33 = vadd.f32 %v2188_v41, %v2169_v29  ;;  %v2206_v42 = vadd.f32 %v2188_v41, %v2170_v24  ;;  %v2207_v44 = vadd.f32 %v2188_v41, %v2171_v50  ;;  %v2208_v43 = vadd.f32 %v2188_v41, %v2172_v31  ;;  %v2198_v24 = vpop.permute.xlu2 %2197 }
 0x76c   :  { %vm2221_vm3 = vcmp.ge.f32.partialorder %v2205_v33, 0.0  ;;  %vm2222_vm9 = vcmp.ge.f32.partialorder %v2206_v42, 0.0  ;;  %vm2223_vm5 = vcmp.ge.f32.partialorder %v2207_v44, 0.0  ;;  %v2237_v23 = vmul.f32 0.01, %v2205_v33 }
 0x76d   :  { %v2238_v22 = vmul.f32 0.01, %v2206_v42  ;;  %v2239_v0 = vmul.f32 0.01, %v2207_v44  ;;  %vm2224_vm6 = vcmp.ge.f32.partialorder %v2208_v43, 0.0 }
 0x76e   :  { %v2240_v19 = vmul.f32 0.01, %v2208_v43  ;;  %v2253_v30 = vsel %vm2221_vm3, %v2205_v33, %v2237_v23 }
 0x76f   :  { %v2254_v9 = vsel %vm2222_vm9, %v2206_v42, %v2238_v22  ;;  %v2157_v40 = vpop.permute.xlu0 %2156  ;;  %v2255_v49 = vsel %vm2223_vm5, %v2207_v44, %v2239_v0  ;;  %v2272_v6 = vrot.slane %v2253_v30, 4 }
 0x770   :  { %v2284_v34 = vrot.slane %v2254_v9, 4  ;;  %v2256_v18 = vsel %vm2224_vm6, %v2208_v43, %v2240_v19  ;;  %v2269_v14 = vrot.slane %v2255_v49, 4  ;;  %v2175_v38 = vmul.f32 %v2157_v40, %v6316_v39 }
 0x771   :  { %v2282_v55 = vrot.slane %v2256_v18, 4  ;;  %v2273_v56 = vsel %vm2270_vm7, %v2255_v49, %v2272_v6  ;;  %v2176_v59 = vmul.f32 %v2157_v40, %v6318_v13  ;;  %v2173_v21 = vmul.f32 %v2157_v40, %v6303_v28 }
 0x772   :  { %v2285_v53 = vsel %vm2270_vm7, %v2256_v18, %v2284_v34  ;;  %v2271_v12 = vsel %vm2270_vm7, %v2269_v14, %v2253_v30  ;;  %v2281_v5 = vperm.slane %v2273_v56, %v6417_v57  ;;  %v2174_v45 = vmul.f32 %v2157_v40, %v6305_v27 }
 0x773   :  { %v2293_v37 = vperm.slane %v2285_v53, %v6417_v57  ;;  %v2277_v36 = vperm.slane %v2271_v12, %v6417_v57  ;;  %v2283_v10 = vsel %vm2270_vm7, %v2282_v55, %v2254_v9 }
 0x774   :  { %v2289_v39 = vperm.slane %v2283_v10, %v6417_v57  ;;  %v2308_v11 = vrot.slane %v2281_v5, 4 }
 0x775   :  { %v2306_v54 = vrot.slane %v2293_v37, 4  ;;  %v2296_v62 = vrot.slane %v2277_v36, 4 }
 0x776   :  { %v2294_v29 = vrot.slane %v2289_v39, 4  ;;  %v2309_v27 = vsel %vm2270_vm7, %v2293_v37, %v2308_v11 }
 0x777   :  { %v2193_v1 = vpop.permute.xlu0 %2192  ;;  %v2162_v3 = vpop.permute.xlu1 %2161  ;;  %v2307_v4 = vsel %vm2270_vm7, %v2306_v54, %v2281_v5  ;;  %v2297_v31 = vsel %vm2270_vm7, %v2289_v39, %v2296_v62  ;;  %v2317_v30 = vperm.slane %v2309_v27, %v6429_v47 }
 0x778   :  { %v2211_v16 = vadd.f32 %v2193_v1, %v2175_v38  ;;  %v2212_v7 = vadd.f32 %v2193_v1, %v2176_v59  ;;  %v2177_v26 = vmul.f32 %v2162_v3, %v6323_v2  ;;  %v2178_v58 = vmul.f32 %v2162_v3, %v6325_v52 }
 0x779   :  { %v2180_v13 = vmul.f32 %v2162_v3, %v6338_v35  ;;  %v2209_v17 = vadd.f32 %v2193_v1, %v2173_v21  ;;  %v2210_v28 = vadd.f32 %v2193_v1, %v2174_v45  ;;  %v6438_v25 = vperm.slane %v2307_v4, %v6429_v47 }
 0x77a   :  { %vm2227_vm8 = vcmp.ge.f32.partialorder %v2211_v16, 0.0  ;;  %v2243_v63 = vmul.f32 0.01, %v2211_v16  ;;  %v2244_v50 = vmul.f32 0.01, %v2212_v7  ;;  %v2179_v2 = vmul.f32 %v2162_v3, %v6336_v46 }
 0x77b   :  { %v6443_v52 = vadd.f32 %v2198_v24, %v2177_v26  ;;  %vm2228_vm11 = vcmp.ge.f32.partialorder %v2212_v7, 0.0  ;;  %v6445_v41 = vadd.f32 %v2198_v24, %v2178_v58  ;;  %v6447_v33 = vadd.f32 %v2198_v24, %v2180_v13 }
 0x77c   :  { %v2259_v35 = vsel %vm2227_vm8, %v2211_v16, %v2243_v63  ;;  %vm2225_vm12 = vcmp.ge.f32.partialorder %v2209_v17, 0.0  ;;  %v2241_v42 = vmul.f32 0.01, %v2209_v17  ;;  %v2242_v44 = vmul.f32 0.01, %v2210_v28 }
 0x77d   :  { %v2507_v43 = vsel %vm2494_vm10, %v6438_v25, -inf  ;;  %v6452_v15 = vperm.slane %v2297_v31, %v6429_v47  ;;  %v2295_v20 = vsel %vm2270_vm7, %v2294_v29, %v2277_v36  ;;  %vm2226_vm13 = vcmp.ge.f32.partialorder %v2210_v28, 0.0 }
 0x77e   :  { %v2260_v46 = vsel %vm2228_vm11, %v2212_v7, %v2244_v50  ;;  %v2326_v23 = vrot.slane %v2259_v35, 4  ;;  %2508 = vmax.xlane.f32.xlu0 %v2507_v43  ;;  %v2301_v22 = vperm.slane %v2295_v20, %v6429_v47  ;;  %v6459_v9 = vadd.f32 %v2198_v24, %v2179_v2 }
 0x77f   :  { %v2167_v0 = vpop.permute.xlu0 %2166  ;;  %v2501_v19 = vsel %vm2494_vm10, %v6452_v15, -inf  ;;  %v2257_v40 = vsel %vm2225_vm12, %v2209_v17, %v2241_v42  ;;  %vm2230_vm14 = vcmp.ge.f32.partialorder %v6445_v41, 0.0  ;;  %v2258_v6 = vsel %vm2226_vm13, %v2210_v28, %v2242_v44 }
 0x780   :  { %2502 = vmax.xlane.f32.xlu1 %v2501_v19  ;;  %v2495_v49 = vsel %vm2494_vm10, %v2301_v22, -inf  ;;  %v2318_v34 = vrot.slane %v2301_v22, 4  ;;  %v2338_v14 = vrot.slane %v2260_v46, 4  ;;  %v2183_v53 = vmul.f32 %v2167_v0, %v6356_v8 }
 0x781   :  { %2496 = vmax.xlane.f32.xlu2 %v2495_v49  ;;  %v2324_v55 = vrot.slane %v2317_v30, 4  ;;  %vm2232_vm15 = vcmp.ge.f32.partialorder %v6447_v33, 0.0  ;;  %v2245_v37 = vmul.f32 0.01, %v6443_v52  ;;  %v2327_v12 = vsel %vm2270_vm7, %v2326_v23, %v2257_v40 }
 0x782   :  { %v2319_v56 = vsel %vm2270_vm7, 0.0, %v2318_v34  ;;  %v2246_v38 = vmul.f32 0.01, %v6445_v41  ;;  %v2248_v1 = vmul.f32 0.01, %v6447_v33  ;;  %v2184_v32 = vmul.f32 %v2167_v0, %v6358_v51 }
 0x783   :  { %v2203_v18 = vpop.permute.xlu1 %2202  ;;  %vm2229_vm2 = vcmp.ge.f32.partialorder %v6443_v52, 0.0  ;;  %v2328_v5 = vrot.slane %v2257_v40, 4  ;;  %v2340_v8 = vrot.slane %v2258_v6, 4  ;;  %v2181_v54 = vmul.f32 %v2167_v0, %v6343_v48 }
 0x784   :  { %v2219_v60 = vadd.f32 %v2203_v18, %v2183_v53  ;;  %v2325_v36 = vsel %vm2270_vm7, 0.0, %v2324_v55  ;;  %vm2231_vm3 = vcmp.ge.f32.partialorder %v6459_v9, 0.0  ;;  %v2498_v10 = vsel %vm2494_vm10, %v2319_v56, -inf }
 0x785   :  { %v2220_v59 = vadd.f32 %v2203_v18, %v2184_v32  ;;  %v2333_v3 = vperm.slane %v2327_v12, %v6417_v57  ;;  %v2339_v16 = vsel %vm2270_vm7, %v2338_v14, %v2258_v6  ;;  %v2182_v51 = vmul.f32 %v2167_v0, %v6345_v61 }
 0x786   :  { %v2513_v21 = vsel %vm2494_vm10, %v2317_v30, -inf  ;;  %2499 = vmax.xlane.f32.xlu0 %v2498_v10  ;;  %v2217_v39 = vadd.f32 %v2203_v18, %v2181_v54  ;;  %v2345_v7 = vperm.slane %v2339_v16, %v6417_v57  ;;  %v2516_v48 = vsel %vm2494_vm10, %v2325_v36, -inf }
 0x787   :  { %vm2235_vm9 = vcmp.ge.f32.partialorder %v2219_v60, 0.0  ;;  %v2251_v4 = vmul.f32 0.01, %v2219_v60  ;;  %v2322_v11 = vrot.slane %v6438_v25, 4  ;;  %v2352_v45 = vrot.slane %v2333_v3, 4 }
 0x788   :  { %2517 = vmax.xlane.f32.xlu1 %v2516_v48  ;;  %v2350_v62 = vrot.slane %v2345_v7, 4  ;;  %v2329_v26 = vsel %vm2270_vm7, %v2259_v35, %v2328_v5  ;;  %v2341_v58 = vsel %vm2270_vm7, %v2260_v46, %v2340_v8  ;;  %vm2236_vm5 = vcmp.ge.f32.partialorder %v2220_v59, 0.0 }
 0x789   :  { %2514 = vmax.xlane.f32.xlu2 %v2513_v21  ;;  %v2320_v61 = vrot.slane %v6452_v15, 4  ;;  %v2337_v13 = vperm.slane %v2329_v26, %v6417_v57  ;;  %v2349_v17 = vperm.slane %v2341_v58, %v6417_v57  ;;  %v2252_v28 = vmul.f32 0.01, %v2220_v59 }
 0x78a   :  { %v2351_v63 = vsel %vm2270_vm7, %v2350_v62, %v2333_v3  ;;  %v2323_v25 = vsel %vm2270_vm7, 0.0, %v2322_v11  ;;  %v2353_v29 = vsel %vm2270_vm7, %v2345_v7, %v2352_v45  ;;  %v2267_v24 = vsel %vm2235_vm9, %v2219_v60, %v2251_v4 }
 0x78b   :  { %v6493_v50 = vperm.slane %v2351_v63, %v6429_v47  ;;  %v2361_v31 = vperm.slane %v2353_v29, %v6429_v47  ;;  %v2364_v27 = vrot.slane %v2337_v13, 4  ;;  %v2247_v2 = vmul.f32 0.01, %v6459_v9 }
 0x78c   :  { %v2262_v35 = vsel %vm2230_vm14, %v6445_v41, %v2246_v38  ;;  %v2264_v42 = vsel %vm2232_vm15, %v6447_v33, %v2248_v1  ;;  %v2218_v44 = vadd.f32 %v2203_v18, %v2182_v51  ;;  %v2249_v43 = vmul.f32 0.01, %v2217_v39 }
 0x78d   :  { %v2321_v15 = vsel %vm2270_vm7, 0.0, %v2320_v61  ;;  %v2510_v20 = vsel %vm2494_vm10, %v2323_v25, -inf  ;;  %v2362_v46 = vrot.slane %v2349_v17, 4  ;;  %vm2233_vm6 = vcmp.ge.f32.partialorder %v2217_v39, 0.0 }
 0x78e   :  { %v2268_v23 = vsel %vm2236_vm5, %v2220_v59, %v2252_v28  ;;  %v2438_v22 = vrot.slane %v2267_v24, 4  ;;  %2511 = vmax.xlane.f32.xlu0 %v2510_v20  ;;  %v2376_v0 = vrot.slane %v2361_v31, 4  ;;  %v2261_v41 = vsel %vm2229_vm2, %v6443_v52, %v2245_v37 }
 0x78f   :  { %v2394_v19 = vrot.slane %v2264_v42, 4  ;;  %v2519_v33 = vsel %vm2494_vm10, %v6493_v50, -inf  ;;  %v2365_v30 = vsel %vm2270_vm7, %v2349_v17, %v2364_v27  ;;  %v2396_v40 = vrot.slane %v2262_v35, 4 }
 0x790   :  { %v2250_v49 = vmul.f32 0.01, %v2218_v44  ;;  %2520 = vmax.xlane.f32.xlu1 %v2519_v33  ;;  %v2504_v34 = vsel %vm2494_vm10, %v2321_v15, -inf  ;;  %v2263_v18 = vsel %vm2231_vm3, %v6459_v9, %v2247_v2  ;;  %vm2234_vm8 = vcmp.ge.f32.partialorder %v2218_v44, 0.0 }
 0x791   :  { %v2265_v6 = vsel %vm2233_vm6, %v2217_v39, %v2249_v43  ;;  %v2450_v14 = vrot.slane %v2268_v23, 4  ;;  %2505 = vmax.xlane.f32.xlu2 %v2504_v34  ;;  %v2363_v52 = vsel %vm2270_vm7, %v2362_v46, %v2337_v13  ;;  %v2377_v53 = vsel %vm2270_vm7, 0.0, %v2376_v0 }
 0x792   :  { %v2373_v55 = vperm.slane %v2365_v30, %v6429_v47  ;;  %v2439_v37 = vsel %vm2270_vm7, %v2438_v22, %v2265_v6  ;;  %v2382_v56 = vrot.slane %v2263_v18, 4  ;;  %v2395_v12 = vsel %vm2270_vm7, %v2394_v19, %v2262_v35 }
 0x793   :  { %v2384_v38 = vrot.slane %v2261_v41, 4  ;;  %v2266_v1 = vsel %vm2234_vm8, %v2218_v44, %v2250_v49  ;;  %v2440_v32 = vrot.slane %v2265_v6, 4  ;;  %v2369_v9 = vperm.slane %v2363_v52, %v6429_v47 }
 0x794   :  { %v2528_v60 = vsel %vm2494_vm10, %v2377_v53, -inf  ;;  %v2397_v5 = vsel %vm2270_vm7, %v2264_v42, %v2396_v40  ;;  %v2445_v8 = vperm.slane %v2439_v37, %v6417_v57  ;;  %v2451_v54 = vsel %vm2270_vm7, %v2450_v14, %v2266_v1 }
 0x795   :  { %v2380_v36 = vrot.slane %v2373_v55, 4  ;;  %v2401_v10 = vperm.slane %v2395_v12, %v6417_v57  ;;  %v2457_v59 = vperm.slane %v2451_v54, %v6417_v57  ;;  %v2525_v3 = vsel %vm2494_vm10, %v2361_v31, -inf }
 0x796   :  { %2529 = vmax.xlane.f32.xlu0 %v2528_v60  ;;  %v2374_v16 = vrot.slane %v6493_v50, 4  ;;  %v2383_v51 = vsel %vm2270_vm7, %v2382_v56, %v2261_v41  ;;  %v2452_v21 = vrot.slane %v2266_v1, 4  ;;  %v2531_v39 = vsel %vm2494_vm10, %v2369_v9, -inf }
 0x797   :  { %v2405_v7 = vperm.slane %v2397_v5, %v6417_v57  ;;  %v2462_v48 = vrot.slane %v2457_v59, 4  ;;  %v2385_v4 = vsel %vm2270_vm7, %v2263_v18, %v2384_v38  ;;  %v2464_v11 = vrot.slane %v2445_v8, 4 }
 0x798   :  { %2526 = vmax.xlane.f32.xlu1 %v2525_v3  ;;  %v2441_v62 = vsel %vm2270_vm7, %v2267_v24, %v2440_v32  ;;  %v2381_v45 = vsel %vm2270_vm7, 0.0, %v2380_v36  ;;  %v2389_v26 = vperm.slane %v2383_v51, %v6417_v57  ;;  %v2406_v58 = vrot.slane %v2401_v10, 4 }
 0x799   :  { %2532 = vmax.xlane.f32.xlu2 %v2531_v39  ;;  %v2375_v61 = vsel %vm2270_vm7, 0.0, %v2374_v16  ;;  %v2463_v13 = vsel %vm2270_vm7, %v2462_v48, %v2445_v8  ;;  %v2449_v17 = vperm.slane %v2441_v62, %v6417_v57  ;;  %v2393_v28 = vperm.slane %v2385_v4, %v6417_v57 }
 0x79a   :  { %v2418_v63 = vrot.slane %v2405_v7, 4  ;;  %v6542_v25 = vperm.slane %v2463_v13, %v6429_v47  ;;  %v2453_v29 = vsel %vm2270_vm7, %v2268_v23, %v2452_v21  ;;  %v2540_v24 = vsel %vm2494_vm10, %v2381_v45, -inf }
 0x79b   :  { %v2461_v50 = vperm.slane %v2453_v29, %v6417_v57  ;;  %v2465_v31 = vsel %vm2270_vm7, %v2457_v59, %v2464_v11  ;;  %v2476_v27 = vrot.slane %v2449_v17, 4  ;;  %v2407_v2 = vsel %vm2270_vm7, %v2406_v58, %v2389_v26 }
 0x79c   :  { %v2408_v35 = vrot.slane %v2389_v26, 4  ;;  %v6550_v42 = vperm.slane %v2465_v31, %v6429_v47  ;;  %v2486_v44 = vrot.slane %v6542_v25, 4  ;;  %v2537_v43 = vsel %vm2494_vm10, %v2373_v55, -inf }
 0x79d   :  { %v2522_v15 = vsel %vm2494_vm10, %v2375_v61, -inf  ;;  %v2474_v20 = vrot.slane %v2461_v50, 4  ;;  %v2477_v46 = vsel %vm2270_vm7, %v2461_v50, %v2476_v27  ;;  %v2419_v57 = vsel %vm2270_vm7, %v2418_v63, %v2393_v28 }
 0x79e   :  { %2541 = vmax.xlane.f32.xlu0 %v2540_v24  ;;  %v2488_v23 = vrot.slane %v6550_v42, 4  ;;  %v2487_v22 = vsel %vm2270_vm7, 0.0, %v2486_v44  ;;  %v2485_v0 = vperm.slane %v2477_v46, %v6429_v47  ;;  %v2378_v41 = vrot.slane %v2369_v9, 4 }
 0x79f   :  { %v2413_v19 = vperm.slane %v2407_v2, %v6429_v47  ;;  %v2475_v33 = vsel %vm2270_vm7, %v2474_v20, %v2449_v17  ;;  %v2409_v30 = vsel %vm2270_vm7, %v2401_v10, %v2408_v35  ;;  %v2425_v18 = vperm.slane %v2419_v57, %v6429_v47 }
 0x7a0   :  { %2538 = vmax.xlane.f32.xlu1 %v2537_v43  ;;  %v2481_v40 = vperm.slane %v2475_v33, %v6429_v47  ;;  %v2489_v49 = vsel %vm2270_vm7, 0.0, %v2488_v23  ;;  %v2492_v34 = vrot.slane %v2485_v0, 4  ;;  %v2379_v52 = vsel %vm2270_vm7, 0.0, %v2378_v41 }
 0x7a1   :  { %2523 = vmax.xlane.f32.xlu2 %v2522_v15  ;;  %v2543_v53 = vsel %vm2494_vm10, %v2413_v19, -inf  ;;  %v2417_v55 = vperm.slane %v2409_v30, %v6429_v47  ;;  %v2420_v37 = vrot.slane %v2393_v28, 4  ;;  %v2555_v12 = vsel %vm2494_vm10, %v2425_v18, -inf }
 0x7a2   :  { %v2490_v6 = vrot.slane %v2481_v40, 4  ;;  %v2493_v14 = vsel %vm2270_vm7, 0.0, %v2492_v34  ;;  %v2534_v38 = vsel %vm2494_vm10, %v2379_v52, -inf  ;;  %v2430_v1 = vrot.slane %v2413_v19, 4 }
 0x7a3   :  { %v2432_v32 = vrot.slane %v2417_v55, 4  ;;  %v2421_v9 = vsel %vm2270_vm7, %v2405_v7, %v2420_v37  ;;  %v2549_v8 = vsel %vm2494_vm10, %v2417_v55, -inf  ;;  %v2434_v59 = vrot.slane %v2425_v18, 4 }
 0x7a4   :  { %v2491_v56 = vsel %vm2270_vm7, 0.0, %v2490_v6  ;;  %v2431_v60 = vsel %vm2270_vm7, 0.0, %v2430_v1  ;;  %v2429_v54 = vperm.slane %v2421_v9, %v6429_v47  ;;  %v2579_v7 = vsel %vm2494_vm10, %v2481_v40, -inf }
 0x7a5   :  { %v2433_v5 = vsel %vm2270_vm7, 0.0, %v2432_v32  ;;  %v2546_v36 = vsel %vm2494_vm10, %v2431_v60, -inf  ;;  %v2435_v16 = vsel %vm2270_vm7, 0.0, %v2434_v59  ;;  %v2576_v48 = vsel %vm2494_vm10, %v2489_v49, -inf }
 0x7a6   :  { %2544 = vmax.xlane.f32.xlu0 %v2543_v53  ;;  %v2552_v10 = vsel %vm2494_vm10, %v2433_v5, -inf  ;;  %v2436_v3 = vrot.slane %v2429_v54, 4  ;;  %v2561_v21 = vsel %vm2494_vm10, %v2429_v54, -inf  ;;  %v2558_v39 = vsel %vm2494_vm10, %v2435_v16, -inf }
 0x7a7   :  { %v2567_v4 = vsel %vm2494_vm10, %v6542_v25, -inf  ;;  %v2570_v11 = vsel %vm2494_vm10, %v2487_v22, -inf  ;;  %v2582_v62 = vsel %vm2494_vm10, %v2491_v56, -inf  ;;  %v2573_v45 = vsel %vm2494_vm10, %v6550_v42, -inf }
 0x7a8   :  { %2556 = vmax.xlane.f32.xlu1 %v2555_v12  ;;  %v2437_v51 = vsel %vm2270_vm7, 0.0, %v2436_v3  ;;  %v2588_v26 = vsel %vm2494_vm10, %v2493_v14, -inf  ;;  %v2585_v58 = vsel %vm2494_vm10, %v2485_v0, -inf  ;;  %v2623_v28 = vlaneseq }
 0x7a9   :  { %2535 = vmax.xlane.f32.xlu2 %v2534_v38  ;;  %v2564_v47 = vsel %vm2494_vm10, %v2437_v51, -inf  ;;  %vm2657_vm7 = vcmask 1041409   ;;  %vm2659_vm11 = vcmask 1042434   ;;  %vm2661_vm12 = vcmask 1043459  }
 0x7aa   :  { %v6595_v24 = vand.u32 127, %v2623_v28  ;;  %vm2663_vm13 = vcmask 1044484   ;;  %vm2665_vm14 = vcmask 1045509   ;;  %vm2667_vm15 = vcmask 1046534  }
 0x7ab   :  { %vm2669_vm2 = vcmask 1047559   ;;  %vm2765_vm3 = vcmask 519168   ;;  %vm2777_vm9 = vcmask 257024  }
 0x7ae   :  { %2550 = vmax.xlane.f32.xlu0 %v2549_v8 }
 0x7b0   :  { %2547 = vmax.xlane.f32.xlu1 %v2546_v36 }
 0x7b1   :  { %2553 = vmax.xlane.f32.xlu2 %v2552_v10 }
 0x7b6   :  { %2562 = vmax.xlane.f32.xlu0 %v2561_v21 }
 0x7b8   :  { %2559 = vmax.xlane.f32.xlu1 %v2558_v39 }
 0x7b9   :  { %2565 = vmax.xlane.f32.xlu2 %v2564_v47 }
 0x7be   :  { %2580 = vmax.xlane.f32.xlu0 %v2579_v7 }
 0x7c0   :  { %2577 = vmax.xlane.f32.xlu1 %v2576_v48 }
 0x7c1   :  { %2568 = vmax.xlane.f32.xlu2 %v2567_v4 }
 0x7c6   :  { %2571 = vmax.xlane.f32.xlu0 %v2570_v11 }
 0x7c8   :  { %2583 = vmax.xlane.f32.xlu1 %v2582_v62  ;;  %v4829_v62 = vld [vmem:[%s6907_s14 + $0x8] sm:$0xff] }
 0x7c9   :  { %2574 = vmax.xlane.f32.xlu2 %v2573_v45  ;;  %2758 = vmatpush.bf16.msra.mxu0 %v4829_v62 }
 0x7ce   :  { %2589 = vmax.xlane.f32.xlu0 %v2588_v26 }
 0x7d1   :  { %2586 = vmax.xlane.f32.xlu2 %v2585_v58 }
 0x7f1   :  { %v2509_v61 = vpop.xlane.xlu0 %2508 }
 0x7f2   :  { %v2629_v15 = vperm.slane %v2509_v61, %v6595_v24 }
 0x7f3   :  { %v2503_v13 = vpop.xlane.xlu1 %2502 }
 0x7f4   :  { %v2497_v17 = vpop.xlane.xlu2 %2496  ;;  %v2627_v42 = vperm.slane %v2503_v13, %v6595_v24  ;;  %v4828_v13 = vld [vmem:[%s6907_s14] sm:$0xff]  ;;  %s4164_s14 = sshll.u32 %s6920_s27, 4  ;;  %s4165_s14 = int_to_ptr.hbm [resolvable:$true] %s4164_s14 }
 0x7f5   :  { %v2625_v31 = vperm.slane %v2497_v17, %v6595_v24  ;;  %2759 = vmatpush.bf16.msra.mxu0 %v4828_v13 }
 0x7f9   :  { %v2500_v63 = vpop.xlane.xlu0 %2499 }
 0x7fa   :  { %v2626_v50 = vperm.slane %v2500_v63, %v6595_v24 }
 0x7fb   :  { %v2518_v25 = vpop.xlane.xlu1 %2517 }
 0x7fc   :  { %v2515_v29 = vpop.xlane.xlu2 %2514  ;;  %v2658_v2 = vsel %vm2657_vm7, %v2626_v50, %v2625_v31  ;;  %v2632_v0 = vperm.slane %v2518_v25, %v6595_v24 }
 0x7fd   :  { %v2660_v20 = vsel %vm2659_vm11, %v2627_v42, %v2658_v2  ;;  %v2631_v23 = vperm.slane %v2515_v29, %v6595_v24 }
 0x801   :  { %v2512_v27 = vpop.xlane.xlu0 %2511 }
 0x802   :  { %v2630_v46 = vperm.slane %v2512_v27, %v6595_v24 }
 0x803   :  { %v2521_v35 = vpop.xlane.xlu1 %2520 }
 0x804   :  { %v2506_v44 = vpop.xlane.xlu2 %2505  ;;  %v2633_v14 = vperm.slane %v2521_v35, %v6595_v24 }
 0x805   :  { %v2628_v43 = vperm.slane %v2506_v44, %v6595_v24 }
 0x807   :  { %v2662_v57 = vsel %vm2661_vm12, %v2628_v43, %v2660_v20 }
 0x808   :  { %v2664_v22 = vsel %vm2663_vm13, %v2629_v15, %v2662_v57 }
 0x809   :  { %v2530_v41 = vpop.xlane.xlu0 %2529  ;;  %v2666_v19 = vsel %vm2665_vm14, %v2630_v46, %v2664_v22 }
 0x80a   :  { %v2668_v33 = vsel %vm2667_vm15, %v2631_v23, %v2666_v19  ;;  %v2636_v56 = vperm.slane %v2530_v41, %v6595_v24 }
 0x80b   :  { %v2527_v30 = vpop.xlane.xlu1 %2526  ;;  %v2670_v40 = vsel %vm2669_vm2, %v2632_v0, %v2668_v33 }
 0x80c   :  { %2696 = vxpose.xlu1.b32.start [1/4] (short) (narrow) %v2670_v40, 8  ;;  %v2533_v49 = vpop.xlane.xlu2 %2532  ;;  %v2635_v53 = vperm.slane %v2527_v30, %v6595_v24 }
 0x80d   :  { %v2637_v32 = vperm.slane %v2533_v49, %v6595_v24 }
 0x811   :  { %v2542_v34 = vpop.xlane.xlu0 %2541 }
 0x812   :  { %v2640_v54 = vperm.slane %v2542_v34, %v6595_v24 }
 0x813   :  { %v2539_v18 = vpop.xlane.xlu1 %2538 }
 0x814   :  { %v2524_v6 = vpop.xlane.xlu2 %2523  ;;  %v2639_v5 = vperm.slane %v2539_v18, %v6595_v24 }
 0x815   :  { %v2634_v52 = vperm.slane %v2524_v6, %v6595_v24 }
 0x817   :  { %v2671_v55 = vsel %vm2657_vm7, %v2634_v52, %v2633_v14 }
 0x818   :  { %v2672_v37 = vsel %vm2659_vm11, %v2635_v53, %v2671_v55  ;;  %v4831_v55 = vld [vmem:[%s6909_s16 + $0x8] sm:$0xff] }
 0x819   :  { %v2545_v12 = vpop.xlane.xlu0 %2544  ;;  %v2673_v1 = vsel %vm2661_vm12, %v2636_v56, %v2672_v37  ;;  %2809 = vmatpush.bf16.msra.mxu1 %v4831_v55  ;;  %v4856_v55 = vld [vmem:[#allocation2 + $0xac] sm:$0xf0] }
 0x81a   :  { %v2674_v8 = vsel %vm2663_vm13, %v2637_v32, %v2673_v1  ;;  %v2641_v21 = vperm.slane %v2545_v12, %v6595_v24 }
 0x81b   :  { %v2557_v38 = vpop.xlane.xlu1 %2556 }
 0x81c   :  { %v2536_v9 = vpop.xlane.xlu2 %2535  ;;  %v2645_v26 = vperm.slane %v2557_v38, %v6595_v24 }
 0x81d   :  { %v2638_v60 = vperm.slane %v2536_v9, %v6595_v24  ;;  %v4830_v9 = vld [vmem:[%s6909_s16] sm:$0xff] }
 0x81e   :  { %2810 = vmatpush.bf16.msra.mxu1 %v4830_v9 }
 0x81f   :  { %v2675_v36 = vsel %vm2665_vm14, %v2638_v60, %v2674_v8  ;;  %v4833_v60 = vld [vmem:[%s6911_s18 + $0x8] sm:$0xff] }
 0x820   :  { %v2676_v10 = vsel %vm2667_vm15, %v2639_v5, %v2675_v36  ;;  %2842 = vmatpush.bf16.msra.mxu2 %v4833_v60  ;;  %v4857_v60 = vld [vmem:[#allocation2 + $0xb4] sm:$0xf0] }
 0x821   :  { %v2677_v59 = vsel %vm2669_vm2, %v2640_v54, %v2676_v10  ;;  %v2551_v3 = vpop.xlane.xlu0 %2550 }
 0x822   :  { %2697 = vxpose.xlu1.b32.cont [2/4] (short) (narrow) %v2677_v59, 8  ;;  %v2643_v16 = vperm.slane %v2551_v3, %v6595_v24  ;;  %v4832_v59 = vld [vmem:[%s6911_s18] sm:$0xff] }
 0x823   :  { %v2548_v51 = vpop.xlane.xlu1 %2547  ;;  %v4982_v3 = vld [vmem:[%s6910_s17] ss:$0 sm:$0xff] }
 0x824   :  { %v2642_v39 = vperm.slane %v2548_v51, %v6595_v24  ;;  %v2554_v47 = vpop.xlane.xlu2 %2553  ;;  %2843 = vmatpush.bf16.msra.mxu2 %v4832_v59 }
 0x825   :  { %v2644_v4 = vperm.slane %v2554_v47, %v6595_v24  ;;  %v5137_v47 = vmov 4.0  }
 0x826   :  { %v2678_v7 = vsel %vm2657_vm7, %v2642_v39, %v2641_v21 }
 0x827   :  { %v2679_v48 = vsel %vm2659_vm11, %v2643_v16, %v2678_v7 }
 0x828   :  { %v2680_v45 = vsel %vm2661_vm12, %v2644_v4, %v2679_v48 }
 0x829   :  { %v2563_v11 = vpop.xlane.xlu0 %2562  ;;  %v2681_v63 = vsel %vm2663_vm13, %v2645_v26, %v2680_v45  ;;  %v4418_v26 = vld [vmem:[#allocation2 + $0xe0] sm:$0xf] }
 0x82a   :  { %v2647_v58 = vperm.slane %v2563_v11, %v6595_v24 }
 0x82b   :  { %v2560_v61 = vpop.xlane.xlu1 %2559 }
 0x82c   :  { %v2646_v17 = vperm.slane %v2560_v61, %v6595_v24  ;;  %v2566_v28 = vpop.xlane.xlu2 %2565 }
 0x82d   :  { %v2648_v29 = vperm.slane %v2566_v28, %v6595_v24  ;;  %v4420_v28 = vld [vmem:[#allocation2 + $0xf0] sm:$0xf0] }
 0x82e   :  { %v2682_v25 = vsel %vm2665_vm14, %v2646_v17, %v2681_v63  ;;  %v4862_v17 = vld [vmem:[#allocation2 + $0xe4] sm:$0xf] }
 0x82f   :  { %v2683_v50 = vsel %vm2667_vm15, %v2647_v58, %v2682_v25  ;;  %v4864_v58 = vld [vmem:[#allocation2 + $0xec] sm:$0xf0] }
 0x830   :  { %v2684_v31 = vsel %vm2669_vm2, %v2648_v29, %v2683_v50  ;;  %v4419_v13 = vor.u32 %v4864_v58, %v4418_v26  ;;  %v4423_v29 = vor.u32 %v4862_v17, %v4420_v28  ;;  %v4426_v50 = vld [vmem:[#allocation2 + $0xe8] sm:$0xf]  ;;  %v4851_v26 = vld [vmem:[#allocation2 + $0x8c] sm:$0xf]  ;;  %v4380_v58 = vld [vmem:[#allocation2 + $0x98] sm:$0xf0] }
 0x831   :  { %2698 = vxpose.xlu1.b32.cont [3/4] (short) (narrow) %v2684_v31, 8  ;;  %v2581_v27 = vpop.xlane.xlu0 %2580  ;;  %v4865_v31 = vld [vmem:[#allocation2 + $0xf4] sm:$0xf0]  ;;  %v4383_v17 = vor.u32 %v4851_v26, %v4380_v58  ;;  %v4354_v28 = vld [vmem:[#allocation2 + $0x60] sm:$0xf] }
 0x832   :  { %v2653_v0 = vperm.slane %v2581_v27, %v6595_v24  ;;  %3096 = vmatpush.bf16.msrb.mxu3 %v4419_v13  ;;  %3109 = vmatpush.bf16.msrb.mxu0 %v4423_v29  ;;  %v2849_v26 = vld [vmem:[%s6912_s19] sm:$0x1] }
 0x833   :  { %v2578_v35 = vpop.xlane.xlu1 %2577 }
 0x834   :  { %v2569_v2 = vpop.xlane.xlu2 %2568  ;;  %v2652_v57 = vperm.slane %v2578_v35, %v6595_v24  ;;  %v4427_v35 = vor.u32 %v4865_v31, %v4426_v50  ;;  %v4356_v31 = vld [vmem:[#allocation2 + $0x70] sm:$0xf0] }
 0x835   :  { %v2649_v44 = vperm.slane %v2569_v2, %v6595_v24 }
 0x836   :  { %3122 = vmatpush.bf16.msrb.mxu1 %v4427_v35 }
 0x839   :  { %v2572_v42 = vpop.xlane.xlu0 %2571 }
 0x83a   :  { %v2650_v43 = vperm.slane %v2572_v42, %v6595_v24  ;;  %v4863_v42 = vld [vmem:[#allocation2 + $0xec] sm:$0xf] }
 0x83b   :  { %v2584_v41 = vpop.xlane.xlu1 %2583 }
 0x83c   :  { %v2685_v15 = vsel %vm2657_vm7, %v2650_v43, %v2649_v44  ;;  %v2575_v20 = vpop.xlane.xlu2 %2574  ;;  %v2654_v30 = vperm.slane %v2584_v41, %v6595_v24  ;;  %v4428_v44 = vld [vmem:[#allocation2 + $0xf8] sm:$0xf0]  ;;  %v4410_v41 = vld [vmem:[#allocation2 + $0xc8] sm:$0xf] }
 0x83d   :  { %v2651_v46 = vperm.slane %v2575_v20, %v6595_v24  ;;  %v4431_v43 = vor.u32 %v4863_v42, %v4428_v44  ;;  %v4860_v20 = vld [vmem:[#allocation2 + $0xcc] sm:$0xf0]  ;;  %v4847_v44 = vld [vmem:[#allocation2 + $0x6c] sm:$0xf] }
 0x83f   :  { %v2686_v23 = vsel %vm2659_vm11, %v2651_v46, %v2685_v15  ;;  %v4402_v15 = vld [vmem:[#allocation2 + $0xc0] sm:$0xf]  ;;  %v4858_v46 = vld [vmem:[#allocation2 + $0xc4] sm:$0xf]  ;;  %3135 = vmatpush.bf16.msrb.mxu2 %v4431_v43  ;;  %v4364_v43 = vld [vmem:[#allocation2 + $0x78] sm:$0xf0] }
 0x840   :  { %v2687_v22 = vsel %vm2661_vm12, %v2652_v57, %v2686_v23 }
 0x841   :  { %v2590_v19 = vpop.xlane.xlu0 %2589  ;;  %v2688_v33 = vsel %vm2663_vm13, %v2653_v0, %v2687_v22  ;;  %v4403_v22 = vor.u32 %v4860_v20, %v4402_v15  ;;  %v4404_v0 = vld [vmem:[#allocation2 + $0xd0] sm:$0xf0]  ;;  %v4367_v20 = vor.u32 %v4847_v44, %v4364_v43  ;;  %v4614_v43 = vld [vmem:[#allocation5 + $0x168] sm:$0xf] }
 0x842   :  { %v2656_v40 = vperm.slane %v2590_v19, %v6595_v24  ;;  %v2689_v18 = vsel %vm2665_vm14, %v2654_v30, %v2688_v33  ;;  %v4407_v33 = vor.u32 %v4858_v46, %v4404_v0  ;;  %v4861_v30 = vld [vmem:[#allocation2 + $0xd4] sm:$0xf0]  ;;  %v4338_v46 = vld [vmem:[#allocation2 + $0x40] sm:$0xf]  ;;  %v4888_v44 = vld [vmem:[#allocation5 + $0xb0] sm:$0xf0] }
 0x843   :  { %3097 = vmatpush.bf16.msrb.mxu3 %v4403_v22 }
 0x844   :  { %v2587_v49 = vpop.xlane.xlu2 %2586  ;;  %3110 = vmatpush.bf16.msrb.mxu0 %v4407_v33 }
 0x845   :  { %v2655_v34 = vperm.slane %v2587_v49, %v6595_v24  ;;  %v4981_v24 = vld [vmem:[%s6908_s15] ss:$0 sm:$0xff]  ;;  %v4412_v49 = vld [vmem:[#allocation2 + $0xd8] sm:$0xf0] }
 0x847   :  { %v2690_v6 = vsel %vm2667_vm15, %v2655_v34, %v2689_v18 }
 0x848   :  { %v2691_v14 = vsel %vm2669_vm2, %v2656_v40, %v2690_v6  ;;  %v4859_v40 = vld [vmem:[#allocation2 + $0xcc] sm:$0xf] }
 0x849   :  { %2699 = vxpose.xlu1.b32.end [4/4] (short) (narrow) %v2691_v14, 8  ;;  %v4411_v14 = vor.u32 %v4861_v30, %v4410_v41  ;;  %v4340_v41 = vld [vmem:[#allocation2 + $0x50] sm:$0xf0]  ;;  %v4845_v30 = vld [vmem:[#allocation2 + $0x54] sm:$0xf0] }
 0x84b   :  { %3123 = vmatpush.bf16.msrb.mxu1 %v4411_v14  ;;  %v4840_v14 = vld [vmem:[#allocation2 + $0x2c] sm:$0xf0] }
 0x8d5   :  { %v2712_v52 = vpop.trf.xlu1 }
 0x8d6   :  { %v2728_v53 = vpack.c.bf16 %v2712_v52, %v2712_v52  ;;  %v4415_v52 = vor.u32 %v4859_v40, %v4412_v49  ;;  %v4843_v40 = vld [vmem:[#allocation2 + $0x4c] sm:$0xf]  ;;  %v4348_v49 = vld [vmem:[#allocation2 + $0x58] sm:$0xf0] }
 0x8d8   :  { %4285 = vmatmul.msk.bf16.vlgmr.msra.gmra.mxu0 %vm555_vm4, %v2728_v53  ;;  %v4386_v53 = vld [vmem:[#allocation2 + $0xa0] sm:$0xf]  ;;  %3136 = vmatpush.bf16.msrb.mxu2 %v4415_v52  ;;  %v4838_v52 = vld [vmem:[#allocation2 + $0x24] sm:$0xf] }
 0x955   :  { %v2761_v37 = vpop.f32.mrf.mxu0 }
 0x956   :  { %v2762_v56 = vadd.f32 %v4981_v24, %v2761_v37  ;;  %v4854_v24 = vld [vmem:[#allocation2 + $0xa4] sm:$0xf] }
 0x958   :  { %2766 = vst.msk [vmem:[%s6919_s26] sm:$0xf] %vm2765_vm3, %v2762_v56  ;;  %v2768_v12 = vmul.f32 0.5, %v2762_v56  ;;  %s6971_s26 = sld [smem:[#allocation16_spill]] }
 0x95a   :  { %v2769_v38 = vmul.f32 1.442695, %v2768_v12  ;;  %v4387_v12 = vor.u32 %v4856_v55, %v4386_v53  ;;  %v4324_v55 = vld [vmem:[#allocation2 + $0x30] sm:$0xf0] }
 0x95c   :  { %5033 = vpow2.f32 %v2769_v38  ;;  %v4388_v38 = vld [vmem:[#allocation2 + $0xb0] sm:$0xf0]  ;;  %3098 = vmatpush.bf16.msrb.mxu3 %v4387_v12 }
 0x95d   :  { %v2763_v1 = vpop.f32.mrf.mxu0  ;;  %5035 = vrcp.f32 %v5137_v47  ;;  %v4391_v9 = vor.u32 %v4854_v24, %v4388_v38  ;;  %v4330_v24 = vld [vmem:[#allocation2 + $0x28] sm:$0xf]  ;;  %v4839_v38 = vld [vmem:[#allocation2 + $0x2c] sm:$0xf] }
 0x95e   :  { %v2767_v5 = vld [vmem:[%s6971_s26] sm:$0xf]  ;;  %v4394_v1 = vld [vmem:[#allocation2 + $0xa8] sm:$0xf] }
 0x95f   :  { %3111 = vmatpush.bf16.msrb.mxu0 %v4391_v9  ;;  %v4306_v9 = vld [vmem:[#allocation2] sm:$0xf] }
 0x962   :  { %v5034_v32 = vpop.eup %5033 }
 0x963   :  { %2772 = vrot.lane.b32.xlu2 %v5034_v32, %s5136_s11  ;;  %v5036_v7 = vpop.eup %5035 }
 0x964   :  { %v2859_v48 = vmul.f32 4.0, %v5036_v7 }
 0x966   :  { %v2860_v4 = vsub.f32 1.0, %v2859_v48  ;;  %v4378_v48 = vld [vmem:[#allocation2 + $0x88] sm:$0xf] }
 0x968   :  { %v2861_v63 = vmul.f32 %v5036_v7, %v2860_v4  ;;  %v4853_v4 = vld [vmem:[#allocation2 + $0x94] sm:$0xf0] }
 0x96a   :  { %v2862_v19 = vadd.f32 %v5036_v7, %v2861_v63  ;;  %v4848_v63 = vld [vmem:[#allocation2 + $0x6c] sm:$0xf0] }
 0x96b   :  { %v4355_v50 = vor.u32 %v4848_v63, %v4354_v28 }
 0x9bd   :  { %v2773_v8 = vpop.permute.xlu2 %2772 }
 0x9be   :  { %v2775_v54 = vmul.f32 %v2773_v8, %v2767_v5  ;;  %v4855_v5 = vld [vmem:[#allocation2 + $0xac] sm:$0xf]  ;;  %v4396_v8 = vld [vmem:[#allocation2 + $0xb8] sm:$0xf0] }
 0x9bf   :  { %v4399_v59 = vor.u32 %v4855_v5, %v4396_v8  ;;  %v4836_v5 = vld [vmem:[#allocation2 + $0xc] sm:$0xf0]  ;;  %v4834_v8 = vld [vmem:[#allocation2 + $0x4] sm:$0xf] }
 0x9c0   :  { %v2776_v36 = vadd.f32 %v2775_v54, %v2762_v56 }
 0x9c1   :  { %3137 = vmatpush.bf16.msrb.mxu2 %v4399_v59  ;;  %v4837_v59 = vld [vmem:[#allocation2 + $0x14] sm:$0xf0] }
 0x9c2   :  { %v2779_v10 = vpack.c.bf16 %v2776_v36, %v2776_v36  ;;  %2778 = vst.msk [vmem:[#allocation7] sm:$0xf] %vm2777_vm9, %v2776_v36 }
 0x9c3   :  { %4167 = dma.vmem_to_hbm [thread:$0]  %s4163_s3, 64, %s4165_s14, [#allocation4]  }
 0x9c4   :  { %4294 = vmatmul.msk.bf16.vlgmr.msra.gmra.mxu1 %vm555_vm4, %v2779_v10  ;;  %v4395_v10 = vor.u32 %v4857_v60, %v4394_v1  ;;  %v4332_v1 = vld [vmem:[#allocation2 + $0x38] sm:$0xf0] }
 0x9c5   :  { %3138 = vmatpush.bf16.msrb.mxu2 %v4383_v17  ;;  %v4335_v60 = vor.u32 %v4839_v38, %v4332_v1  ;;  %v2850_v17 = vld [vmem:[%s6913_s20] sm:$0x1]  ;;  %v4906_v38 = vld [vmem:[#allocation5 + $0x140] sm:$0xf0] }
 0x9c6   :  { %3124 = vmatpush.bf16.msrb.mxu1 %v4395_v10  ;;  %v4314_v10 = vld [vmem:[#allocation2 + $0x8] sm:$0xf]  ;;  %v4686_v1 = vld [vmem:[#allocation5 + $0x1f8] sm:$0xf] }
 0x9c9   :  { %3139 = vmatpush.bf16.msrb.mxu2 %v4367_v20  ;;  %v4912_v20 = vld [vmem:[#allocation5 + $0x170] sm:$0xf0] }
 0xa41   :  { %v2812_v16 = vpop.f32.mrf.mxu1 }
 0xa42   :  { %v2813_v51 = vadd.f32 %v4982_v3, %v2812_v16  ;;  %v4370_v3 = vld [vmem:[#allocation2 + $0x80] sm:$0xf]  ;;  %v4852_v16 = vld [vmem:[#allocation2 + $0x8c] sm:$0xf0] }
 0xa43   :  { %v4371_v47 = vor.u32 %v4852_v16, %v4370_v3  ;;  %v4835_v3 = vld [vmem:[#allocation2 + $0xc] sm:$0xf] }
 0xa44   :  { %v2816_v21 = vpack.c.bf16 %v2813_v51, %v2813_v51  ;;  %v4850_v51 = vld [vmem:[#allocation2 + $0x84] sm:$0xf] }
 0xa45   :  { %3099 = vmatpush.bf16.msrb.mxu3 %v4371_v47  ;;  %v4315_v47 = vor.u32 %v4837_v59, %v4314_v10  ;;  %v4782_v10 = vld [vmem:[#allocation5 + $0x2b8] sm:$0xf]  ;;  %v4954_v59 = vld [vmem:[#allocation5 + $0x2c0] sm:$0xf0] }
 0xa46   :  { %4303 = vmatmul.msk.bf16.vlgmr.msra.gmra.mxu2 %vm555_vm4, %v2816_v21  ;;  %vm2863_vm4 = vweird.f32 %v5036_v7 }
 0xa47   :  { %v6698_v32 = vsel %vm2863_vm4, %v5036_v7, %v2862_v19  ;;  %v4372_v7 = vld [vmem:[#allocation2 + $0x90] sm:$0xf0]  ;;  %v4346_v19 = vld [vmem:[#allocation2 + $0x48] sm:$0xf] }
 0xa49   :  { %v2814_v39 = vpop.f32.mrf.mxu1  ;;  %3100 = vmatpush.bf16.msrb.mxu3 %v4355_v50 }
 0xac9   :  { %v6690_v11 = vpop.f32.mrf.mxu2 }
 0xaca   :  { %v2851_v62 = vsel %vm2494_vm10, %v6690_v11, 0.0  ;;  %v2866_v45 = vmul.f32 %v6690_v11, %v6690_v11 }
 0xacb   :  { %v2852_v61 = vrot.slane %v2851_v62, 4 }
 0xacc   :  { %v2867_v25 = vsel %vm2494_vm10, %v2866_v45, 0.0  ;;  %v4379_v45 = vor.u32 %v4853_v4, %v4378_v48 }
 0xacd   :  { %v2853_v27 = vadd.f32 %v2852_v61, %v2851_v62  ;;  %v2868_v2 = vrot.slane %v2867_v25, 4  ;;  %v4375_v62 = vor.u32 %v4850_v51, %v4372_v7  ;;  %v4316_v51 = vld [vmem:[#allocation2 + $0x18] sm:$0xf0] }
 0xace   :  { %3125 = vmatpush.bf16.msrb.mxu1 %v4379_v45  ;;  %v4319_v48 = vor.u32 %v4835_v3, %v4316_v51 }
 0xacf   :  { %v2854_v57 = vrot.slane %v2853_v27, 2  ;;  %v2869_v23 = vadd.f32 %v2868_v2, %v2867_v25  ;;  %3112 = vmatpush.bf16.msrb.mxu0 %v4375_v62  ;;  %v4846_v25 = vld [vmem:[#allocation2 + $0x64] sm:$0xf]  ;;  %v4849_v2 = vld [vmem:[#allocation2 + $0x74] sm:$0xf0] }
 0xad0   :  { %v4359_v35 = vor.u32 %v4846_v25, %v4356_v31 }
 0xad1   :  { %v2855_v34 = vadd.f32 %v2854_v57, %v2853_v27  ;;  %v2870_v18 = vrot.slane %v2869_v23, 2  ;;  %v2847_v6 = vpop.f32.mrf.mxu2  ;;  %v4362_v27 = vld [vmem:[#allocation2 + $0x68] sm:$0xf]  ;;  %v4844_v57 = vld [vmem:[#allocation2 + $0x4c] sm:$0xf0] }
 0xad2   :  { %v4363_v42 = vor.u32 %v4849_v2, %v4362_v27  ;;  %v4339_v0 = vor.u32 %v4844_v57, %v4338_v46  ;;  %v4322_v6 = vld [vmem:[#allocation2 + $0x20] sm:$0xf]  ;;  %v4936_v46 = vld [vmem:[#allocation5 + $0x230] sm:$0xf0]  ;;  %v4615_v57 = vor.u32 %v4912_v20, %v4614_v43 }
 0xad3   :  { %v2856_v37 = vrot.slane %v2855_v34, 1  ;;  %v2871_v56 = vadd.f32 %v2870_v18, %v2869_v23  ;;  %3113 = vmatpush.bf16.msrb.mxu0 %v4359_v35  ;;  %v4842_v23 = vld [vmem:[#allocation2 + $0x44] sm:$0xf]  ;;  %v4351_v18 = vor.u32 %v4843_v40, %v4348_v49  ;;  %v4323_v53 = vor.u32 %v4840_v14, %v4322_v6  ;;  %v4909_v40 = vld [vmem:[#allocation5 + $0x158] sm:$0xf0] }
 0xad4   :  { %3126 = vmatpush.bf16.msrb.mxu1 %v4363_v42  ;;  %v4343_v33 = vor.u32 %v4842_v23, %v4340_v41  ;;  %3101 = vmatpush.bf16.msrb.mxu3 %v4339_v0  ;;  %v4518_v42 = vld [vmem:[#allocation5 + $0xa8] sm:$0xf]  ;;  %v4506_v41 = vld [vmem:[#allocation5 + $0x90] sm:$0xf] }
 0xad5   :  { %v2857_v54 = vadd.f32 %v2856_v37, %v2855_v34  ;;  %v2872_v36 = vrot.slane %v2871_v56, 1  ;;  %v4347_v34 = vor.u32 %v4845_v30, %v4346_v19  ;;  %v4841_v37 = vld [vmem:[#allocation2 + $0x34] sm:$0xf0]  ;;  %3140 = vmatpush.bf16.msrb.mxu2 %v4351_v18  ;;  %v4885_v19 = vld [vmem:[#allocation5 + $0x98] sm:$0xf0] }
 0xad6   :  { %v4331_v12 = vor.u32 %v4841_v37, %v4330_v24  ;;  %v4507_v30 = vor.u32 %v4885_v19, %v4506_v41  ;;  %v4698_v49 = vld [vmem:[#allocation5 + $0x210] sm:$0xf]  ;;  %v4882_v24 = vld [vmem:[#allocation5 + $0x80] sm:$0xf0]  ;;  %v4590_v37 = vld [vmem:[#allocation5 + $0x138] sm:$0xf] }
 0xad7   :  { %v6701_v21 = vmul.f32 %v6698_v32, %v2857_v54  ;;  %v2873_v39 = vadd.f32 %v2872_v36, %v2871_v56  ;;  %3114 = vmatpush.bf16.msrb.mxu0 %v4343_v33  ;;  %v4327_v56 = vor.u32 %v4838_v52, %v4324_v55  ;;  %v4308_v54 = vld [vmem:[#allocation2 + $0x10] sm:$0xf0]  ;;  %v4307_v36 = vor.u32 %v4836_v5, %v4306_v9  ;;  %v4602_v33 = vld [vmem:[#allocation5 + $0x150] sm:$0xf]  ;;  %v4957_v52 = vld [vmem:[#allocation5 + $0x2d8] sm:$0xf0] }
 0xad8   :  { %3127 = vmatpush.bf16.msrb.mxu1 %v4347_v34  ;;  %3102 = vmatpush.bf16.msrb.mxu3 %v4323_v53  ;;  %v4311_v16 = vor.u32 %v4834_v8, %v4308_v54  ;;  %v4933_v34 = vld [vmem:[#allocation5 + $0x218] sm:$0xf0]  ;;  %v4603_v18 = vor.u32 %v4909_v40, %v4602_v33  ;;  %v4794_v14 = vld [vmem:[#allocation5 + $0x2d0] sm:$0xf]  ;;  %v4494_v55 = vld [vmem:[#allocation5 + $0x78] sm:$0xf]  ;;  %v4591_v54 = vor.u32 %v4906_v38, %v4590_v37 }
 0xad9   :  { %v2874_v61 = vmul.f32 %v2873_v39, %v6698_v32  ;;  %v2875_v13 = vmul.f32 %v6701_v21, %v6701_v21  ;;  %3141 = vmatpush.bf16.msrb.mxu2 %v4335_v60  ;;  %v4699_v6 = vor.u32 %v4933_v34, %v4698_v49  ;;  %v4795_v53 = vor.u32 %v4957_v52, %v4794_v14  ;;  %v4930_v9 = vld [vmem:[#allocation5 + $0x200] sm:$0xf0] }
 0xadb   :  { %v2876_v29 = vsub.f32 %v2874_v61, %v2875_v13  ;;  %3115 = vmatpush.bf16.msrb.mxu0 %v4327_v56 }
 0xadc   :  { %3128 = vmatpush.bf16.msrb.mxu1 %v4331_v12  ;;  %3103 = vmatpush.bf16.msrb.mxu3 %v4307_v36  ;;  %v4495_v12 = vor.u32 %v4882_v24, %v4494_v55  ;;  %v4687_v36 = vor.u32 %v4930_v9, %v4686_v1  ;;  %v4770_v9 = vld [vmem:[#allocation5 + $0x2a0] sm:$0xf] }
 0xadd   :  { %v2877_v15 = vmax.f32 %v2876_v29, 0.0  ;;  %3142 = vmatpush.bf16.msrb.mxu2 %v4319_v48  ;;  %v4482_v48 = vld [vmem:[#allocation5 + $0x60] sm:$0xf] }
 0xadf   :  { %v2878_v22 = vadd.f32 1e-05, %v2877_v15  ;;  %3116 = vmatpush.bf16.msrb.mxu0 %v4311_v16  ;;  %v4519_v15 = vor.u32 %v4888_v44, %v4518_v42 }
 0xae0   :  { %3129 = vmatpush.bf16.msrb.mxu1 %v4315_v47 }
 0xae1   :  { %5037 = vrsqrt.f32 %v2878_v22  ;;  %vm2885_vm6 = vweird.f32 %v2878_v22  ;;  %3992 = vmatpush.bf16.msra.mxu3 %v4519_v15 }
 0xae3   :  { %4005 = vmatpush.bf16.msra.mxu0 %v4615_v57 }
 0xae5   :  { %3993 = vmatpush.bf16.msra.mxu3 %v4507_v30 }
 0xae7   :  { %v5038_v39 = vpop.eup %5037  ;;  %4006 = vmatpush.bf16.msra.mxu0 %v4603_v18 }
 0xae8   :  { %v2880_v7 = vmul.f32 %v5038_v39, %v2878_v22  ;;  %vm2886_vm5 = vweird.f32 %v5038_v39  ;;  %v4960_v22 = vld [vmem:[#allocation5 + $0x2f0] sm:$0xf0] }
 0xae9   :  { %vm2887_vm8 = vmor %vm2885_vm6, %vm2886_vm5  ;;  %3994 = vmatpush.bf16.msra.mxu3 %v4495_v12 }
 0xaea   :  { %v2881_v4 = vmul.f32 %v5038_v39, %v2880_v7 }
 0xaeb   :  { %4007 = vmatpush.bf16.msra.mxu0 %v4591_v54 }
 0xaec   :  { %v2882_v62 = vmul.f32 0.5, %v2881_v4  ;;  %v4879_v4 = vld [vmem:[#allocation5 + $0x68] sm:$0xf0] }
 0xaee   :  { %v2883_v45 = vsub.f32 1.5, %v2882_v62 }
 0xaf0   :  { %v2884_v58 = vmul.f32 %v5038_v39, %v2883_v45 }
 0xaf2   :  { %v2888_v61 = vsel %vm2887_vm8, %v5038_v39, %v2884_v58  ;;  %v4783_v39 = vor.u32 %v4954_v59, %v4782_v10  ;;  %v4483_v58 = vor.u32 %v4879_v4, %v4482_v48  ;;  %v4566_v4 = vld [vmem:[#allocation5 + $0x108] sm:$0xf] }
 0xaf3   :  { %v2889_v13 = vmul.f32 %v2888_v61, %v2849_v26  ;;  %v4578_v61 = vld [vmem:[#allocation5 + $0x120] sm:$0xf] }
 0xaf4   :  { %3995 = vmatpush.bf16.msra.mxu3 %v4483_v58 }
 0xaf5   :  { %v2890_v28 = vmul.f32 %v2889_v13, %v6701_v21  ;;  %v2893_v63 = vperm.slane %v2889_v13, 0  ;;  %v4710_v21 = vld [vmem:[#allocation5 + $0x228] sm:$0xf]  ;;  %v4903_v13 = vld [vmem:[#allocation5 + $0x128] sm:$0xf0] }
 0xaf6   :  { %v4711_v23 = vor.u32 %v4936_v46, %v4710_v21 }
 0xaf7   :  { %v2891_v25 = vsub.f32 %v2850_v17, %v2890_v28  ;;  %v2895_v29 = vmul.f32 %v2893_v63, %v6690_v11  ;;  %v4806_v11 = vld [vmem:[#allocation5 + $0x2e8] sm:$0xf]  ;;  %v4579_v63 = vor.u32 %v4903_v13, %v4578_v61 }
 0xaf8   :  { %v4807_v0 = vor.u32 %v4960_v22, %v4806_v11  ;;  %4018 = vmatpush.bf16.msra.mxu1 %v4711_v23  ;;  %v4662_v13 = vld [vmem:[#allocation5 + $0x1c8] sm:$0xf] }
 0xaf9   :  { %v2897_v50 = vperm.slane %v2891_v25, 0  ;;  %v4674_v25 = vld [vmem:[#allocation5 + $0x1e0] sm:$0xf]  ;;  %4008 = vmatpush.bf16.msra.mxu0 %v4579_v63 }
 0xafa   :  { %4031 = vmatpush.bf16.msra.mxu2 %v4807_v0 }
 0xafb   :  { %v2899_v31 = vadd.f32 %v2897_v50, %v2895_v29  ;;  %v4927_v29 = vld [vmem:[#allocation5 + $0x1e8] sm:$0xf0] }
 0xafc   :  { %4019 = vmatpush.bf16.msra.mxu1 %v4699_v6 }
 0xafd   :  { %vm2900_vm7 = vcmp.ge.f32.partialorder %v2899_v31, 0.0  ;;  %v2901_v27 = vmul.f32 0.01, %v2899_v31 }
 0xafe   :  { %4032 = vmatpush.bf16.msra.mxu2 %v4795_v53 }
 0xaff   :  { %v2902_v2 = vsel %vm2900_vm7, %v2899_v31, %v2901_v27 }
 0xb00   :  { %v2903_v35 = vpack.c.bf16 %v2902_v2, %v2902_v2  ;;  %4020 = vmatpush.bf16.msra.mxu1 %v4687_v36  ;;  %v4675_v2 = vor.u32 %v4927_v29, %v4674_v25 }
 0xb02   :  { %3104 = vmatmul.bf16.vlgmr.msrb.gmra.mxu3 %v2903_v35  ;;  %3117 = vmatmul.bf16.vlgmr.msrb.gmra.mxu0 %v2903_v35 }
 0xb03   :  { %3130 = vmatmul.bf16.vlgmr.msrb.gmra.mxu1 %v2903_v35  ;;  %3143 = vmatmul.bf16.vlgmr.msrb.gmra.mxu2 %v2903_v35 }
 0xb04   :  { %4033 = vmatpush.bf16.msra.mxu2 %v4783_v39  ;;  %4021 = vmatpush.bf16.msra.mxu1 %v4675_v2 }
 0xb7f   :  { %v6714_v56 = vpop.f32.mrf.mxu0 }
 0xb80   :  { %v3157_v60 = vsel %vm2494_vm10, %v6714_v56, 0.0  ;;  %v3183_v5 = vmul.f32 %v6714_v56, %v6714_v56  ;;  %v6720_v8 = vpop.f32.mrf.mxu1 }
 0xb81   :  { %v3158_v3 = vrot.slane %v3157_v60, 4  ;;  %v3164_v16 = vsel %vm2494_vm10, %v6720_v8, 0.0  ;;  %v3184_v51 = vmul.f32 %v6720_v8, %v6720_v8 }
 0xb82   :  { %v3193_v47 = vsel %vm2494_vm10, %v3183_v5, 0.0  ;;  %v3165_v7 = vrot.slane %v3164_v16, 4 }
 0xb83   :  { %v3159_v62 = vadd.f32 %v3158_v3, %v3157_v60  ;;  %v3194_v45 = vrot.slane %v3193_v47, 4  ;;  %v3200_v26 = vsel %vm2494_vm10, %v3184_v51, 0.0  ;;  %v4951_v60 = vld [vmem:[#allocation5 + $0x2a8] sm:$0xf0]  ;;  %v4470_v3 = vld [vmem:[#allocation5 + $0x48] sm:$0xf] }
 0xb84   :  { %v3166_v17 = vadd.f32 %v3165_v7, %v3164_v16  ;;  %v3201_v28 = vrot.slane %v3200_v26, 4  ;;  %v4876_v16 = vld [vmem:[#allocation5 + $0x50] sm:$0xf0] }
 0xb85   :  { %v3160_v50 = vrot.slane %v3159_v62, 2  ;;  %v3195_v31 = vadd.f32 %v3194_v45, %v3193_v47  ;;  %v6728_v27 = vpop.f32.mrf.mxu3 }
 0xb86   :  { %v3167_v35 = vrot.slane %v3166_v17, 2  ;;  %v3202_v42 = vadd.f32 %v3201_v28, %v3200_v26  ;;  %v3150_v44 = vsel %vm2494_vm10, %v6728_v27, 0.0  ;;  %v3182_v43 = vmul.f32 %v6728_v27, %v6728_v27  ;;  %v6734_v15 = vpop.f32.mrf.mxu2 }
 0xb87   :  { %v3161_v20 = vadd.f32 %v3160_v50, %v3159_v62  ;;  %v3196_v21 = vrot.slane %v3195_v31, 2  ;;  %v3151_v46 = vrot.slane %v3150_v44, 4  ;;  %v3171_v57 = vsel %vm2494_vm10, %v6734_v15, 0.0  ;;  %v3120_v23 = vpop.f32.mrf.mxu0  ;;  %v4900_v62 = vld [vmem:[#allocation5 + $0x110] sm:$0xf0] }
 0xb88   :  { %v3168_v11 = vadd.f32 %v3167_v35, %v3166_v17  ;;  %v3203_v22 = vrot.slane %v3202_v42, 2  ;;  %v3186_v0 = vsel %vm2494_vm10, %v3182_v43, 0.0  ;;  %v3172_v41 = vrot.slane %v3171_v57, 4  ;;  %v3133_v19 = vpop.f32.mrf.mxu1  ;;  %v4924_v17 = vld [vmem:[#allocation5 + $0x1d0] sm:$0xf0] }
 0xb89   :  { %v3162_v33 = vrot.slane %v3161_v20, 1  ;;  %v3197_v30 = vadd.f32 %v3196_v21, %v3195_v31  ;;  %v3152_v40 = vadd.f32 %v3151_v46, %v3150_v44  ;;  %v3187_v49 = vrot.slane %v3186_v0, 4  ;;  %v4758_v50 = vld [vmem:[#allocation5 + $0x288] sm:$0xf]  ;;  %v4948_v31 = vld [vmem:[#allocation5 + $0x290] sm:$0xf0] }
 0xb8a   :  { %v3169_v34 = vrot.slane %v3168_v11, 1  ;;  %v3204_v18 = vadd.f32 %v3203_v22, %v3202_v42  ;;  %v3173_v6 = vadd.f32 %v3172_v41, %v3171_v57  ;;  %v3185_v14 = vmul.f32 %v6734_v15, %v6734_v15  ;;  %v4458_v43 = vld [vmem:[#allocation5 + $0x30] sm:$0xf]  ;;  %v4897_v22 = vld [vmem:[#allocation5 + $0xf8] sm:$0xf0] }
 0xb8b   :  { %v3163_v52 = vadd.f32 %v3162_v33, %v3161_v20  ;;  %v3198_v53 = vrot.slane %v3197_v30, 1  ;;  %v3153_v55 = vrot.slane %v3152_v40, 2  ;;  %v3188_v24 = vadd.f32 %v3187_v49, %v3186_v0  ;;  %v4873_v20 = vld [vmem:[#allocation5 + $0x38] sm:$0xf0] }
 0xb8c   :  { %v3170_v37 = vadd.f32 %v3169_v34, %v3168_v11  ;;  %v3205_v12 = vrot.slane %v3204_v18, 1  ;;  %v3174_v38 = vrot.slane %v3173_v6, 2  ;;  %v3207_v1 = vsel %vm2494_vm10, %v3185_v14, 0.0  ;;  %v4554_v11 = vld [vmem:[#allocation5 + $0xf0] sm:$0xf] }
 0xb8d   :  { %v6743_v5 = vmul.f32 %v3163_v52, %v6698_v32  ;;  %v3199_v54 = vadd.f32 %v3198_v53, %v3197_v30  ;;  %v3154_v36 = vadd.f32 %v3153_v55, %v3152_v40  ;;  %v3189_v10 = vrot.slane %v3188_v24, 2  ;;  %v3107_v59 = vpop.f32.mrf.mxu3  ;;  %v4650_v30 = vld [vmem:[#allocation5 + $0x1b0] sm:$0xf]  ;;  %v4921_v40 = vld [vmem:[#allocation5 + $0x1b8] sm:$0xf0] }
 0xb8e   :  { %v6746_v51 = vmul.f32 %v3170_v37, %v6698_v32  ;;  %v3206_v39 = vadd.f32 %v3205_v12, %v3204_v18  ;;  %v3175_v47 = vadd.f32 %v3174_v38, %v3173_v6  ;;  %v3208_v7 = vrot.slane %v3207_v1, 4  ;;  %v3146_v48 = vpop.f32.mrf.mxu2  ;;  %v4746_v14 = vld [vmem:[#allocation5 + $0x270] sm:$0xf]  ;;  %v4945_v52 = vld [vmem:[#allocation5 + $0x278] sm:$0xf0] }
 0xb8f   :  { %v3215_v45 = vmul.f32 %v3199_v54, %v6698_v32  ;;  %v3219_v26 = vmul.f32 %v6743_v5, %v6743_v5  ;;  %v3155_v58 = vrot.slane %v3154_v36, 1  ;;  %v3190_v61 = vadd.f32 %v3189_v10, %v3188_v24  ;;  %v4446_v53 = vld [vmem:[#allocation5 + $0x18] sm:$0xf]  ;;  %v4870_v55 = vld [vmem:[#allocation5 + $0x20] sm:$0xf0] }
 0xb90   :  { %v3216_v28 = vmul.f32 %v3206_v39, %v6698_v32  ;;  %v3220_v63 = vmul.f32 %v6746_v51, %v6746_v51  ;;  %v3176_v25 = vrot.slane %v3175_v47, 1  ;;  %v3209_v29 = vadd.f32 %v3208_v7, %v3207_v1  ;;  %v4542_v24 = vld [vmem:[#allocation5 + $0xd8] sm:$0xf]  ;;  %v4918_v59 = vld [vmem:[#allocation5 + $0x1a0] sm:$0xf0] }
 0xb91   :  { %v3223_v2 = vsub.f32 %v3215_v45, %v3219_v26  ;;  %v3156_v35 = vadd.f32 %v3155_v58, %v3154_v36  ;;  %v3191_v42 = vrot.slane %v3190_v61, 1  ;;  %v4771_v44 = vor.u32 %v4951_v60, %v4770_v9  ;;  %v4894_v9 = vld [vmem:[#allocation5 + $0xe0] sm:$0xf0]  ;;  %v4638_v60 = vld [vmem:[#allocation5 + $0x198] sm:$0xf] }
 0xb92   :  { %v3224_v21 = vsub.f32 %v3216_v28, %v3220_v63  ;;  %v3177_v46 = vadd.f32 %v3176_v25, %v3175_v47  ;;  %v3210_v57 = vrot.slane %v3209_v29, 2  ;;  %v4471_v23 = vor.u32 %v4876_v16, %v4470_v3  ;;  %v4734_v39 = vld [vmem:[#allocation5 + $0x258] sm:$0xf]  ;;  %v4942_v47 = vld [vmem:[#allocation5 + $0x260] sm:$0xf0] }
 0xb93   :  { %v3227_v0 = vmax.f32 %v3223_v2, 0.0  ;;  %v6755_v41 = vmul.f32 %v3156_v35, %v6698_v32  ;;  %v3192_v19 = vadd.f32 %v3191_v42, %v3190_v61  ;;  %4034 = vmatpush.bf16.msra.mxu2 %v4771_v44  ;;  %v4567_v33 = vor.u32 %v4900_v62, %v4566_v4  ;;  %v4434_v7 = vld [vmem:[#allocation5] sm:$0xf]  ;;  %v4867_v45 = vld [vmem:[#allocation5 + $0x8] sm:$0xf0] }
 0xb94   :  { %v3228_v49 = vmax.f32 %v3224_v21, 0.0  ;;  %v6758_v34 = vmul.f32 %v3177_v46, %v6698_v32  ;;  %v3211_v18 = vadd.f32 %v3210_v57, %v3209_v29  ;;  %3996 = vmatpush.bf16.msra.mxu3 %v4471_v23  ;;  %v4663_v6 = vor.u32 %v4924_v17, %v4662_v13  ;;  %v4530_v26 = vld [vmem:[#allocation5 + $0xc0] sm:$0xf]  ;;  %v4891_v58 = vld [vmem:[#allocation5 + $0xc8] sm:$0xf0] }
 0xb95   :  { %v6760_v37 = vadd.f32 1e-05, %v3227_v0  ;;  %v3214_v12 = vmul.f32 %v3192_v19, %v6698_v32  ;;  %v3218_v38 = vmul.f32 %v6755_v41, %v6755_v41  ;;  %4009 = vmatpush.bf16.msra.mxu0 %v4567_v33  ;;  %v4759_v1 = vor.u32 %v4948_v31, %v4758_v50  ;;  %v4626_v63 = vld [vmem:[#allocation5 + $0x180] sm:$0xf]  ;;  %v4915_v25 = vld [vmem:[#allocation5 + $0x188] sm:$0xf0] }
 0xb96   :  { %v6765_v54 = vadd.f32 1e-05, %v3228_v49  ;;  %v3212_v36 = vrot.slane %v3211_v18, 1  ;;  %4022 = vmatpush.bf16.msra.mxu1 %v4663_v6  ;;  %v4459_v10 = vor.u32 %v4873_v20, %v4458_v43  ;;  %v4555_v16 = vor.u32 %v4897_v22, %v4554_v11  ;;  %v4722_v31 = vld [vmem:[#allocation5 + $0x240] sm:$0xf] }
 0xb97   :  { %5039 = vrsqrt.f32 %v6760_v37  ;;  %v3222_v3 = vsub.f32 %v3214_v12, %v3218_v38  ;;  %4035 = vmatpush.bf16.msra.mxu2 %v4759_v1  ;;  %v3221_v4 = vmul.f32 %v6758_v34, %v6758_v34  ;;  %v4651_v62 = vor.u32 %v4921_v40, %v4650_v30  ;;  %v4887_v2 = vld [vmem:[#allocation5 + $0xac] sm:$0xf]  ;;  %v4520_v35 = vld [vmem:[#allocation5 + $0xb4] sm:$0xf0]  ;;  %v4908_v12 = vld [vmem:[#allocation5 + $0x154] sm:$0xf] }
 0xb98   :  { %5041 = vrsqrt.f32 %v6765_v54  ;;  %v3213_v48 = vadd.f32 %v3212_v36, %v3211_v18  ;;  %3997 = vmatpush.bf16.msra.mxu3 %v4459_v10  ;;  %v4747_v13 = vor.u32 %v4945_v52, %v4746_v14  ;;  %v4447_v17 = vor.u32 %v4870_v55, %v4446_v53  ;;  %v4911_v43 = vld [vmem:[#allocation5 + $0x16c] sm:$0xf]  ;;  %v4616_v20 = vld [vmem:[#allocation5 + $0x174] sm:$0xf0]  ;;  %v4884_v14 = vld [vmem:[#allocation5 + $0x94] sm:$0xf] }
 0xb99   :  { %v3226_v61 = vmax.f32 %v3222_v3, 0.0  ;;  %4010 = vmatpush.bf16.msra.mxu0 %v4555_v16  ;;  %v4543_v28 = vor.u32 %v4894_v9, %v4542_v24  ;;  %v4639_v50 = vor.u32 %v4918_v59, %v4638_v60  ;;  %v4735_v44 = vor.u32 %v4942_v47, %v4734_v39  ;;  %v4939_v57 = vld [vmem:[#allocation5 + $0x248] sm:$0xf0]  ;;  %v4712_v11 = vld [vmem:[#allocation5 + $0x234] sm:$0xf0] }
 0xb9a   :  { %v3217_v29 = vmul.f32 %v3213_v48, %v6698_v32  ;;  %4023 = vmatpush.bf16.msra.mxu1 %v4651_v62  ;;  %v4435_v46 = vor.u32 %v4867_v45, %v4434_v7  ;;  %v4935_v23 = vld [vmem:[#allocation5 + $0x22c] sm:$0xf]  ;;  %v4531_v32 = vor.u32 %v4891_v58, %v4530_v26  ;;  %v4523_v0 = vor.u32 %v4887_v2, %v4520_v35  ;;  %v4808_v33 = vld [vmem:[#allocation5 + $0x2f4] sm:$0xf0]  ;;  %v4508_v52 = vld [vmem:[#allocation5 + $0x9c] sm:$0xf0] }
 0xb9b   :  { %v6772_v42 = vadd.f32 1e-05, %v3226_v61  ;;  %4036 = vmatpush.bf16.msra.mxu2 %v4747_v13  ;;  %v4959_v19 = vld [vmem:[#allocation5 + $0x2ec] sm:$0xf]  ;;  %v4627_v18 = vor.u32 %v4915_v25, %v4626_v63  ;;  %v4619_v6 = vor.u32 %v4911_v43, %v4616_v20  ;;  %v4723_v55 = vor.u32 %v4939_v57, %v4722_v31  ;;  %v4604_v38 = vld [vmem:[#allocation5 + $0x15c] sm:$0xf0] }
 0xb9c   :  { %v3225_v21 = vsub.f32 %v3217_v29, %v3221_v4  ;;  %3998 = vmatpush.bf16.msra.mxu3 %v4447_v17  ;;  %v4715_v24 = vor.u32 %v4935_v23, %v4712_v11  ;;  %v4811_v60 = vor.u32 %v4959_v19, %v4808_v33  ;;  %v4932_v36 = vld [vmem:[#allocation5 + $0x214] sm:$0xf]  ;;  %v4700_v10 = vld [vmem:[#allocation5 + $0x21c] sm:$0xf0]  ;;  %v4511_v3 = vor.u32 %v4884_v14, %v4508_v52  ;;  %v4881_v7 = vld [vmem:[#allocation5 + $0x7c] sm:$0xf] }
 0xb9d   :  { %v6774_v22 = vpop.eup %5039  ;;  %5043 = vrsqrt.f32 %v6772_v42  ;;  %4011 = vmatpush.bf16.msra.mxu0 %v4543_v28  ;;  %v4956_v16 = vld [vmem:[#allocation5 + $0x2d4] sm:$0xf]  ;;  %v4796_v39 = vld [vmem:[#allocation5 + $0x2dc] sm:$0xf0]  ;;  %v4607_v47 = vor.u32 %v4908_v12, %v4604_v38  ;;  %v4496_v48 = vld [vmem:[#allocation5 + $0x84] sm:$0xf0]  ;;  %v4703_v62 = vor.u32 %v4932_v36, %v4700_v10  ;;  %vm3250_vm14 = vweird.f32 %v6760_v37 }
 0xb9e   :  { %v6777_v30 = vpop.eup %5041  ;;  %v3245_v40 = vmul.f32 %v6774_v22, %v6760_v37  ;;  %v3229_v49 = vmax.f32 %v3225_v21, 0.0  ;;  %4024 = vmatpush.bf16.msra.mxu1 %v4639_v50  ;;  %v4905_v45 = vld [vmem:[#allocation5 + $0x13c] sm:$0xf]  ;;  %v4592_v26 = vld [vmem:[#allocation5 + $0x144] sm:$0xf0]  ;;  %v4799_v13 = vor.u32 %v4956_v16, %v4796_v39  ;;  %v4499_v25 = vor.u32 %v4881_v7, %v4496_v48 }
 0xb9f   :  { %v3255_v53 = vmul.f32 %v6777_v30, %v6765_v54  ;;  %4037 = vmatpush.bf16.msra.mxu2 %v4735_v44  ;;  %v4929_v17 = vld [vmem:[#allocation5 + $0x1fc] sm:$0xf]  ;;  %v4688_v28 = vld [vmem:[#allocation5 + $0x204] sm:$0xf0]  ;;  %v4595_v2 = vor.u32 %v4905_v45, %v4592_v26  ;;  %v4878_v35 = vld [vmem:[#allocation5 + $0x64] sm:$0xf]  ;;  %vm3251_vm12 = vweird.f32 %v6774_v22  ;;  %vm3261_vm13 = vweird.f32 %v6777_v30 }
 0xba0   :  { %v3246_v1 = vmul.f32 %v6774_v22, %v3245_v40  ;;  %v6784_v9 = vadd.f32 1e-05, %v3229_v49  ;;  %3999 = vmatpush.bf16.msra.mxu3 %v4435_v46  ;;  %v4953_v29 = vld [vmem:[#allocation5 + $0x2bc] sm:$0xf]  ;;  %v4784_v50 = vld [vmem:[#allocation5 + $0x2c4] sm:$0xf0]  ;;  %v4691_v43 = vor.u32 %v4929_v17, %v4688_v28  ;;  %vm3260_vm15 = vweird.f32 %v6765_v54  ;;  %vm6807_vm3 = vmor %vm3250_vm14, %vm3251_vm12 }
 0xba1   :  { %v3256_v59 = vmul.f32 %v6777_v30, %v3255_v53  ;;  %4012 = vmatpush.bf16.msra.mxu0 %v4531_v32  ;;  %v4484_v44 = vld [vmem:[#allocation5 + $0x6c] sm:$0xf0]  ;;  %v4902_v20 = vld [vmem:[#allocation5 + $0x124] sm:$0xf]  ;;  %v4787_v11 = vor.u32 %v4953_v29, %v4784_v50  ;;  %v4875_v14 = vld [vmem:[#allocation5 + $0x4c] sm:$0xf]  ;;  %vm3240_vm5 = vweird.f32 %v6772_v42 }
 0xba2   :  { %5045 = vrsqrt.f32 %v6784_v9  ;;  %4025 = vmatpush.bf16.msra.mxu1 %v4627_v18  ;;  %v3247_v58 = vmul.f32 0.5, %v3246_v1  ;;  %v4580_v21 = vld [vmem:[#allocation5 + $0x12c] sm:$0xf0]  ;;  %v4926_v32 = vld [vmem:[#allocation5 + $0x1e4] sm:$0xf]  ;;  %v4487_v40 = vor.u32 %v4878_v35, %v4484_v44  ;;  %vm6815_vm4 = vmor %vm3260_vm15, %vm3261_vm13  ;;  %vm3270_vm8 = vweird.f32 %v6784_v9 }
 0xba3   :  { %v6788_v4 = vpop.eup %5043  ;;  %4038 = vmatpush.bf16.msra.mxu2 %v4723_v55  ;;  %v3257_v63 = vmul.f32 0.5, %v3256_v59  ;;  %v4950_v49 = vld [vmem:[#allocation5 + $0x2a4] sm:$0xf]  ;;  %v4772_v18 = vld [vmem:[#allocation5 + $0x2ac] sm:$0xf0] }
 0xba4   :  { %4044 = vmatpush.bf16.msrb.mxu3 %v4523_v0  ;;  %v3235_v61 = vmul.f32 %v6788_v4, %v6772_v42  ;;  %v3248_v57 = vsub.f32 1.5, %v3247_v58  ;;  %v4676_v0 = vld [vmem:[#allocation5 + $0x1ec] sm:$0xf0]  ;;  %v4472_v52 = vld [vmem:[#allocation5 + $0x54] sm:$0xf0]  ;;  %vm3241_vm2 = vweird.f32 %v6788_v4 }
 0xba5   :  { %4057 = vmatpush.bf16.msrb.mxu0 %v4619_v6  ;;  %v3258_v19 = vsub.f32 1.5, %v3257_v63  ;;  %v4583_v6 = vor.u32 %v4902_v20, %v4580_v21  ;;  %v4899_v12 = vld [vmem:[#allocation5 + $0x10c] sm:$0xf]  ;;  %v4568_v38 = vld [vmem:[#allocation5 + $0x114] sm:$0xf0]  ;;  %v4475_v16 = vor.u32 %v4875_v14, %v4472_v52  ;;  %vm6825_vm6 = vmor %vm3240_vm5, %vm3241_vm2 }
 0xba6   :  { %4070 = vmatpush.bf16.msrb.mxu1 %v4715_v24  ;;  %v3236_v31 = vmul.f32 %v6788_v4, %v3235_v61  ;;  %v4679_v24 = vor.u32 %v4926_v32, %v4676_v0  ;;  %v3249_v1 = vmul.f32 %v6774_v22, %v3248_v57  ;;  %v4923_v36 = vld [vmem:[#allocation5 + $0x1cc] sm:$0xf]  ;;  %v4664_v10 = vld [vmem:[#allocation5 + $0x1d4] sm:$0xf0]  ;;  %v4571_v7 = vor.u32 %v4899_v12, %v4568_v38  ;;  %v4872_v48 = vld [vmem:[#allocation5 + $0x34] sm:$0xf] }
 0xba7   :  { %4083 = vmatpush.bf16.msrb.mxu2 %v4811_v60  ;;  %v4775_v60 = vor.u32 %v4950_v49, %v4772_v18  ;;  %v3259_v59 = vmul.f32 %v6777_v30, %v3258_v19  ;;  %v4947_v39 = vld [vmem:[#allocation5 + $0x28c] sm:$0xf]  ;;  %v4667_v37 = vor.u32 %v4923_v36, %v4664_v10  ;;  %v4896_v54 = vld [vmem:[#allocation5 + $0xf4] sm:$0xf]  ;;  %v4556_v61 = vld [vmem:[#allocation5 + $0xfc] sm:$0xf0] }
 0xba8   :  { %4045 = vmatpush.bf16.msrb.mxu3 %v4511_v3  ;;  %v6793_v46 = vpop.eup %5045  ;;  %v3237_v23 = vmul.f32 0.5, %v3236_v31  ;;  %v3253_v17 = vsel %vm6807_vm3, %v6774_v22, %v3249_v1  ;;  %v4920_v63 = vld [vmem:[#allocation5 + $0x1b4] sm:$0xf]  ;;  %v4559_v35 = vor.u32 %v4896_v54, %v4556_v61  ;;  %v4869_v44 = vld [vmem:[#allocation5 + $0x1c] sm:$0xf] }
 0xba9   :  { %4058 = vmatpush.bf16.msrb.mxu0 %v4607_v47  ;;  %v3265_v33 = vmul.f32 %v6793_v46, %v6784_v9  ;;  %v4760_v47 = vld [vmem:[#allocation5 + $0x294] sm:$0xf0]  ;;  %vm3271_vm9 = vweird.f32 %v6793_v46  ;;  %v3263_v50 = vsel %vm6815_vm4, %v6777_v30, %v3259_v59  ;;  %v4944_v31 = vld [vmem:[#allocation5 + $0x274] sm:$0xf]  ;;  %v3278_v21 = vrot.slane %v3253_v17, 7 }
 0xbaa   :  { %4071 = vmatpush.bf16.msrb.mxu1 %v4703_v62  ;;  %v3238_v53 = vsub.f32 1.5, %v3237_v23  ;;  %v4460_v62 = vld [vmem:[#allocation5 + $0x3c] sm:$0xf0]  ;;  %v4763_v28 = vor.u32 %v4947_v39, %v4760_v47  ;;  %vm3272_vm7 = vmor %vm3270_vm8, %vm3271_vm9  ;;  %v3148_v20 = vld [vmem:[%s6915_s22] sm:$0xf]  ;;  %v3279_v32 = vrot.slane %v3263_v50, 6 }
 0xbab   :  { %4084 = vmatpush.bf16.msrb.mxu2 %v4799_v13  ;;  %v3266_v55 = vmul.f32 %v6793_v46, %v3265_v33  ;;  %v4463_v22 = vor.u32 %v4872_v48, %v4460_v62  ;;  %v4893_v23 = vld [vmem:[#allocation5 + $0xdc] sm:$0xf]  ;;  %v4866_v14 = vld [vmem:[#allocation5 + $0x4] sm:$0xf]  ;;  %v4628_v10 = vld [vmem:[#allocation5 + $0x18c] sm:$0xf0] }
 0xbac   :  { %4046 = vmatpush.bf16.msrb.mxu3 %v4499_v25  ;;  %v3239_v26 = vmul.f32 %v6788_v4, %v3238_v53  ;;  %v4652_v25 = vld [vmem:[#allocation5 + $0x1bc] sm:$0xf0]  ;;  %v4917_v33 = vld [vmem:[#allocation5 + $0x19c] sm:$0xf]  ;;  %v4436_v53 = vld [vmem:[#allocation5 + $0xc] sm:$0xf0] }
 0xbad   :  { %4059 = vmatpush.bf16.msrb.mxu0 %v4595_v2  ;;  %v3267_v3 = vmul.f32 0.5, %v3266_v55  ;;  %v4748_v2 = vld [vmem:[#allocation5 + $0x27c] sm:$0xf0]  ;;  %v4655_v57 = vor.u32 %v4920_v63, %v4652_v25  ;;  %v4941_v18 = vld [vmem:[#allocation5 + $0x25c] sm:$0xf]  ;;  %v4439_v59 = vor.u32 %v4866_v14, %v4436_v53 }
 0xbae   :  { %4072 = vmatpush.bf16.msrb.mxu1 %v4691_v43  ;;  %v4448_v43 = vld [vmem:[#allocation5 + $0x24] sm:$0xf0]  ;;  %v3243_v30 = vsel %vm6825_vm6, %v6788_v4, %v3239_v26  ;;  %v4751_v19 = vor.u32 %v4944_v31, %v4748_v2  ;;  %v4890_v55 = vld [vmem:[#allocation5 + $0xc4] sm:$0xf]  ;;  %v4724_v39 = vld [vmem:[#allocation5 + $0x24c] sm:$0xf0] }
 0xbaf   :  { %4085 = vmatpush.bf16.msrb.mxu2 %v4787_v11  ;;  %v3268_v58 = vsub.f32 1.5, %v3267_v3  ;;  %v4544_v11 = vld [vmem:[#allocation5 + $0xe4] sm:$0xf0]  ;;  %v4451_v49 = vor.u32 %v4869_v44, %v4448_v43  ;;  %v3281_v4 = vsel %vm160_vm0, %v3243_v30, %v3278_v21  ;;  %v4914_v36 = vld [vmem:[#allocation5 + $0x184] sm:$0xf] }
 0xbb0   :  { %4047 = vmatpush.bf16.msrb.mxu3 %v4487_v40  ;;  %v4640_v40 = vld [vmem:[#allocation5 + $0x1a4] sm:$0xf0]  ;;  %v4547_v52 = vor.u32 %v4893_v23, %v4544_v11  ;;  %v4631_v45 = vor.u32 %v4914_v36, %v4628_v10  ;;  %v3149_v63 = vld [vmem:[%s6916_s23] sm:$0xf]  ;;  %v4526_v44 = vld [vmem:[#allocation5 + $0xb0] sm:$0xf] }
 0xbb1   :  { %4060 = vmatpush.bf16.msrb.mxu0 %v4583_v6  ;;  %v3269_v42 = vmul.f32 %v6793_v46, %v3268_v58  ;;  %v4736_v6 = vld [vmem:[#allocation5 + $0x264] sm:$0xf0]  ;;  %v4643_v38 = vor.u32 %v4917_v33, %v4640_v40  ;;  %v4889_v21 = vld [vmem:[#allocation5 + $0xb8] sm:$0xf0]  ;;  %v4718_v11 = vld [vmem:[#allocation5 + $0x230] sm:$0xf] }
 0xbb2   :  { %4073 = vmatpush.bf16.msrb.mxu1 %v4679_v24  ;;  %v4532_v24 = vld [vmem:[#allocation5 + $0xcc] sm:$0xf0]  ;;  %v4913_v23 = vld [vmem:[#allocation5 + $0x178] sm:$0xf0]  ;;  %v4886_v53 = vld [vmem:[#allocation5 + $0xa0] sm:$0xf0] }
 0xbb3   :  { %4086 = vmatpush.bf16.msrb.mxu2 %v4775_v60  ;;  %v3273_v9 = vsel %vm3272_vm7, %v6793_v46, %v3269_v42  ;;  %v4739_v60 = vor.u32 %v4941_v18, %v4736_v6  ;;  %v4535_v3 = vor.u32 %v4890_v55, %v4532_v24  ;;  %v4706_v36 = vld [vmem:[#allocation5 + $0x218] sm:$0xf]  ;;  %v4934_v10 = vld [vmem:[#allocation5 + $0x220] sm:$0xf0] }
 0xbb4   :  { %4048 = vmatpush.bf16.msrb.mxu3 %v4475_v16  ;;  %v3280_v0 = vrot.slane %v3273_v9, 5  ;;  %v4938_v16 = vld [vmem:[#allocation5 + $0x244] sm:$0xf] }
 0xbb5   :  { %4061 = vmatpush.bf16.msrb.mxu0 %v4571_v7  ;;  %v4727_v54 = vor.u32 %v4938_v16, %v4724_v39 }
 0xbb6   :  { %4074 = vmatpush.bf16.msrb.mxu1 %v4667_v37  ;;  %v3282_v46 = vsel %vm2659_vm11, %v3279_v32, %v3280_v0  ;;  %v4814_v32 = vld [vmem:[#allocation5 + $0x2f0] sm:$0xf] }
 0xbb7   :  { %4087 = vmatpush.bf16.msrb.mxu2 %v4763_v28  ;;  %v3283_v12 = vsel %vm161_vm1, %v3281_v4, %v3282_v46 }
 0xbb8   :  { %4049 = vmatpush.bf16.msrb.mxu3 %v4463_v22  ;;  %v3285_v1 = vmul.f32 %v3283_v12, %v3148_v20 }
 0xbb9   :  { %4062 = vmatpush.bf16.msrb.mxu0 %v4559_v35 }
 0xbba   :  { %4075 = vmatpush.bf16.msrb.mxu1 %v4655_v57  ;;  %v3287_v47 = vperm.slane %v3285_v1, 0  ;;  %v3288_v7 = vperm.slane %v3285_v1, 1  ;;  %v3289_v48 = vperm.slane %v3285_v1, 2  ;;  %v3290_v62 = vperm.slane %v3285_v1, 3  ;;  %v4622_v57 = vld [vmem:[#allocation5 + $0x170] sm:$0xf] }
 0xbbb   :  { %4088 = vmatpush.bf16.msrb.mxu2 %v4751_v19  ;;  %v4623_v18 = vor.u32 %v4913_v23, %v4622_v57  ;;  %v4610_v1 = vld [vmem:[#allocation5 + $0x158] sm:$0xf]  ;;  %v4766_v57 = vld [vmem:[#allocation5 + $0x290] sm:$0xf]  ;;  %v4949_v23 = vld [vmem:[#allocation5 + $0x298] sm:$0xf0] }
 0xbbc   :  { %4050 = vmatpush.bf16.msrb.mxu3 %v4451_v49  ;;  %v3296_v26 = vmul.f32 %v3288_v7, %v6743_v5  ;;  %v3297_v58 = vmul.f32 %v3289_v48, %v6746_v51  ;;  %v3298_v37 = vmul.f32 %v3290_v62, %v6758_v34  ;;  %v3295_v61 = vmul.f32 %v3287_v47, %v6755_v41 }
 0xbbd   :  { %4063 = vmatpush.bf16.msrb.mxu0 %v4547_v52  ;;  %v3314_v29 = vmul.f32 %v3290_v62, %v6734_v15  ;;  %v3311_v41 = vmul.f32 %v3287_v47, %v6728_v27  ;;  %v3312_v50 = vmul.f32 %v3288_v7, %v6714_v56  ;;  %v3313_v42 = vmul.f32 %v3289_v48, %v6720_v8  ;;  %v4937_v15 = vld [vmem:[#allocation5 + $0x238] sm:$0xf0]  ;;  %v4514_v52 = vld [vmem:[#allocation5 + $0x98] sm:$0xf]  ;;  %v4502_v47 = vld [vmem:[#allocation5 + $0x80] sm:$0xf] }
 0xbbe   :  { %4076 = vmatpush.bf16.msrb.mxu1 %v4643_v38  ;;  %v3303_v13 = vrot.slane %v3296_v26, 7  ;;  %v3304_v17 = vrot.slane %v3297_v58, 6  ;;  %v3305_v28 = vrot.slane %v3298_v37, 5  ;;  %v4961_v27 = vld [vmem:[#allocation5 + $0x2f8] sm:$0xf0]  ;;  %v4527_v49 = vor.u32 %v4889_v21, %v4526_v44 }
 0xbbf   :  { %4089 = vmatpush.bf16.msrb.mxu2 %v4739_v60  ;;  %v4719_v12 = vor.u32 %v4937_v15, %v4718_v11  ;;  %v4815_v38 = vor.u32 %v4961_v27, %v4814_v32  ;;  %v4910_v60 = vld [vmem:[#allocation5 + $0x160] sm:$0xf0]  ;;  %v4515_v16 = vor.u32 %v4886_v53, %v4514_v52  ;;  %v4883_v7 = vld [vmem:[#allocation5 + $0x88] sm:$0xf0]  ;;  %v4707_v48 = vor.u32 %v4934_v10, %v4706_v36  ;;  %v4694_v58 = vld [vmem:[#allocation5 + $0x200] sm:$0xf] }
 0xbc0   :  { %4051 = vmatpush.bf16.msrb.mxu3 %v4439_v59  ;;  %v3306_v5 = vsel %vm160_vm0, %v3295_v61, %v3303_v13  ;;  %v3307_v51 = vsel %vm2659_vm11, %v3304_v17, %v3305_v28  ;;  %v4802_v59 = vld [vmem:[#allocation5 + $0x2d8] sm:$0xf]  ;;  %v4611_v39 = vor.u32 %v4910_v60, %v4610_v1  ;;  %v4907_v26 = vld [vmem:[#allocation5 + $0x148] sm:$0xf0]  ;;  %v4503_v13 = vor.u32 %v4883_v7, %v4502_v47  ;;  %v4490_v28 = vld [vmem:[#allocation5 + $0x68] sm:$0xf] }
 0xbc1   :  { %4064 = vmatpush.bf16.msrb.mxu0 %v4535_v3  ;;  %v3308_v34 = vsel %vm161_vm1, %v3306_v5, %v3307_v51  ;;  %v4958_v3 = vld [vmem:[#allocation5 + $0x2e0] sm:$0xf0]  ;;  %v4931_v37 = vld [vmem:[#allocation5 + $0x208] sm:$0xf0]  ;;  %v4925_v21 = vld [vmem:[#allocation5 + $0x1d8] sm:$0xf0] }
 0xbc2   :  { %4077 = vmatpush.bf16.msrb.mxu1 %v4631_v45  ;;  %v3310_v25 = vsub.f32 %v3149_v63, %v3308_v34  ;;  %v4803_v62 = vor.u32 %v4958_v3, %v4802_v59  ;;  %v4598_v45 = vld [vmem:[#allocation5 + $0x140] sm:$0xf]  ;;  %v4955_v61 = vld [vmem:[#allocation5 + $0x2c8] sm:$0xf0]  ;;  %v4880_v63 = vld [vmem:[#allocation5 + $0x70] sm:$0xf0]  ;;  %v4695_v5 = vor.u32 %v4931_v37, %v4694_v58 }
 0xbc3   :  { %4090 = vmatpush.bf16.msrb.mxu2 %v4727_v54  ;;  %v4790_v54 = vld [vmem:[#allocation5 + $0x2c0] sm:$0xf]  ;;  %v4599_v17 = vor.u32 %v4907_v26, %v4598_v45  ;;  %v4586_v34 = vld [vmem:[#allocation5 + $0x128] sm:$0xf]  ;;  %v4466_v32 = vld [vmem:[#allocation5 + $0x38] sm:$0xf] }
 0xbc4   :  { %v3319_v22 = vperm.slane %v3310_v25, 3  ;;  %v3316_v31 = vperm.slane %v3310_v25, 0  ;;  %v3317_v2 = vperm.slane %v3310_v25, 1  ;;  %v3318_v35 = vperm.slane %v3310_v25, 2  ;;  %v4904_v25 = vld [vmem:[#allocation5 + $0x130] sm:$0xf0] }
 0xbc5   :  { %v4791_v51 = vor.u32 %v4955_v61, %v4790_v54  ;;  %v4874_v27 = vld [vmem:[#allocation5 + $0x40] sm:$0xf0]  ;;  %v4454_v52 = vld [vmem:[#allocation5 + $0x20] sm:$0xf]  ;;  %v4871_v53 = vld [vmem:[#allocation5 + $0x28] sm:$0xf0] }
 0xbc6   :  { %v3327_v43 = vadd.f32 %v3319_v22, %v3314_v29  ;;  %v3324_v20 = vadd.f32 %v3316_v31, %v3311_v41  ;;  %v3325_v30 = vadd.f32 %v3317_v2, %v3312_v50  ;;  %v3326_v9 = vadd.f32 %v3318_v35, %v3313_v42  ;;  %v4682_v29 = vld [vmem:[#allocation5 + $0x1e8] sm:$0xf]  ;;  %v4928_v41 = vld [vmem:[#allocation5 + $0x1f0] sm:$0xf0]  ;;  %v4478_v2 = vld [vmem:[#allocation5 + $0x50] sm:$0xf] }
 0xbc7   :  { %v4778_v50 = vld [vmem:[#allocation5 + $0x2a8] sm:$0xf]  ;;  %v4952_v42 = vld [vmem:[#allocation5 + $0x2b0] sm:$0xf0]  ;;  %v4491_v22 = vor.u32 %v4880_v63, %v4490_v28  ;;  %v4587_v31 = vor.u32 %v4904_v25, %v4586_v34  ;;  %v4877_v35 = vld [vmem:[#allocation5 + $0x58] sm:$0xf0]  ;;  %v4683_v44 = vor.u32 %v4928_v41, %v4682_v29 }
 0xbc8   :  { %vm3331_vm0 = vcmp.ge.f32.partialorder %v3327_v43, 0.0  ;;  %v3335_v56 = vmul.f32 0.01, %v3327_v43  ;;  %vm3328_vm1 = vcmp.ge.f32.partialorder %v3324_v20, 0.0  ;;  %v3332_v8 = vmul.f32 0.01, %v3324_v20 }
 0xbc9   :  { %vm3329_vm11 = vcmp.ge.f32.partialorder %v3325_v30, 0.0  ;;  %v3333_v0 = vmul.f32 0.01, %v3325_v30  ;;  %vm3330_vm12 = vcmp.ge.f32.partialorder %v3326_v9, 0.0  ;;  %v3334_v19 = vmul.f32 0.01, %v3326_v9 }
 0xbca   :  { %v3339_v33 = vsel %vm3331_vm0, %v3327_v43, %v3335_v56  ;;  %v3336_v40 = vsel %vm3328_vm1, %v3324_v20, %v3332_v8  ;;  %v4779_v43 = vor.u32 %v4952_v42, %v4778_v50  ;;  %v4574_v20 = vld [vmem:[#allocation5 + $0x110] sm:$0xf]  ;;  %v4479_v11 = vor.u32 %v4877_v35, %v4478_v2  ;;  %v4550_v1 = vld [vmem:[#allocation5 + $0xe0] sm:$0xf]  ;;  %v4895_v60 = vld [vmem:[#allocation5 + $0xe8] sm:$0xf0] }
 0xbcb   :  { %v6860_v6 = vpack.c.bf16 %v3339_v33, %v3339_v33  ;;  %v6862_v14 = vpack.c.bf16 %v3336_v40, %v3336_v40  ;;  %v3337_v4 = vsel %vm3329_vm11, %v3325_v30, %v3333_v0  ;;  %v3338_v46 = vsel %vm3330_vm12, %v3326_v9, %v3334_v19  ;;  %v4901_v30 = vld [vmem:[#allocation5 + $0x118] sm:$0xf0]  ;;  %v4670_v9 = vld [vmem:[#allocation5 + $0x1d0] sm:$0xf]  ;;  %v4562_v0 = vld [vmem:[#allocation5 + $0xf8] sm:$0xf] }
 0xbcc   :  { %v6864_v55 = vpack.c.bf16 %v3337_v4, %v3337_v4  ;;  %v6866_v24 = vpack.c.bf16 %v3338_v46, %v3338_v46  ;;  %v4575_v15 = vor.u32 %v4901_v30, %v4574_v20  ;;  %v4671_v56 = vor.u32 %v4925_v21, %v4670_v9  ;;  %v4898_v19 = vld [vmem:[#allocation5 + $0x100] sm:$0xf0]  ;;  %v4658_v33 = vld [vmem:[#allocation5 + $0x1b8] sm:$0xf]  ;;  %v4646_v36 = vld [vmem:[#allocation5 + $0x1a0] sm:$0xf] }
 0xbcd   :  { %4000 = vmatmul.bf16.vlgmr.msra.gmra.mxu3 %v6862_v14  ;;  %4039 = vmatmul.bf16.vlgmr.msra.gmra.mxu2 %v6860_v6  ;;  %v4767_v8 = vor.u32 %v4949_v23, %v4766_v57  ;;  %v4922_v40 = vld [vmem:[#allocation5 + $0x1c0] sm:$0xf0]  ;;  %v4467_v4 = vor.u32 %v4874_v27, %v4466_v32  ;;  %v4563_v46 = vor.u32 %v4898_v19, %v4562_v0  ;;  %v4919_v10 = vld [vmem:[#allocation5 + $0x1a8] sm:$0xf0]  ;;  %v4742_v59 = vld [vmem:[#allocation5 + $0x260] sm:$0xf] }
 0xbce   :  { %4013 = vmatmul.bf16.vlgmr.msra.gmra.mxu0 %v6864_v55  ;;  %4026 = vmatmul.bf16.vlgmr.msra.gmra.mxu1 %v6866_v24  ;;  %v4943_v3 = vld [vmem:[#allocation5 + $0x268] sm:$0xf0]  ;;  %v4442_v47 = vld [vmem:[#allocation5 + $0x8] sm:$0xf]  ;;  %v4868_v7 = vld [vmem:[#allocation5 + $0x10] sm:$0xf0] }
 0xbcf   :  { %4096 = vmatpush.bf16.msra.mxu3 %v4527_v49  ;;  %4109 = vmatpush.bf16.msra.mxu0 %v4623_v18  ;;  %v4754_v49 = vld [vmem:[#allocation5 + $0x278] sm:$0xf]  ;;  %v4946_v18 = vld [vmem:[#allocation5 + $0x280] sm:$0xf0]  ;;  %v4538_v45 = vld [vmem:[#allocation5 + $0xc8] sm:$0xf] }
 0xbd0   :  { %4122 = vmatpush.bf16.msra.mxu1 %v4719_v12  ;;  %4135 = vmatpush.bf16.msra.mxu2 %v4815_v38  ;;  %v4659_v12 = vor.u32 %v4922_v40, %v4658_v33  ;;  %v4755_v38 = vor.u32 %v4946_v18, %v4754_v49  ;;  %v4892_v26 = vld [vmem:[#allocation5 + $0xd0] sm:$0xf0]  ;;  %v4634_v58 = vld [vmem:[#allocation5 + $0x188] sm:$0xf] }
 0xbd1   :  { %v4916_v37 = vld [vmem:[#allocation5 + $0x190] sm:$0xf0]  ;;  %v4730_v54 = vld [vmem:[#allocation5 + $0x248] sm:$0xf] }
 0xbd2   :  { %v4940_v61 = vld [vmem:[#allocation5 + $0x250] sm:$0xf0]  ;;  %v4635_v28 = vor.u32 %v4916_v37, %v4634_v58 }
 0xbd3   :  { %4097 = vmatpush.bf16.msra.mxu3 %v4515_v16  ;;  %4110 = vmatpush.bf16.msra.mxu0 %v4611_v39  ;;  %v4455_v16 = vor.u32 %v4871_v53, %v4454_v52  ;;  %v4551_v39 = vor.u32 %v4895_v60, %v4550_v1  ;;  %v4731_v63 = vor.u32 %v4940_v61, %v4730_v54 }
 0xbd4   :  { %4123 = vmatpush.bf16.msra.mxu1 %v4707_v48  ;;  %4136 = vmatpush.bf16.msra.mxu2 %v4803_v62  ;;  %v4647_v48 = vor.u32 %v4919_v10, %v4646_v36  ;;  %v4743_v62 = vor.u32 %v4943_v3, %v4742_v59 }
 0xbd7   :  { %4098 = vmatpush.bf16.msra.mxu3 %v4503_v13  ;;  %4111 = vmatpush.bf16.msra.mxu0 %v4599_v17  ;;  %v4443_v13 = vor.u32 %v4868_v7, %v4442_v47  ;;  %v4539_v17 = vor.u32 %v4892_v26, %v4538_v45 }
 0xbd8   :  { %4124 = vmatpush.bf16.msra.mxu1 %v4695_v5  ;;  %4137 = vmatpush.bf16.msra.mxu2 %v4791_v51 }
 0xbdb   :  { %4099 = vmatpush.bf16.msra.mxu3 %v4491_v22  ;;  %4112 = vmatpush.bf16.msra.mxu0 %v4587_v31 }
 0xbdc   :  { %4125 = vmatpush.bf16.msra.mxu1 %v4683_v44  ;;  %4138 = vmatpush.bf16.msra.mxu2 %v4779_v43 }
 0xbdd   :  { %4052 = vmatmul.bf16.vlgmr.msrb.gmra.mxu3 %v6862_v14  ;;  %4091 = vmatmul.bf16.vlgmr.msrb.gmra.mxu2 %v6860_v6 }
 0xbde   :  { %4065 = vmatmul.bf16.vlgmr.msrb.gmra.mxu0 %v6864_v55  ;;  %4078 = vmatmul.bf16.vlgmr.msrb.gmra.mxu1 %v6866_v24 }
 0xbdf   :  { %4100 = vmatpush.bf16.msra.mxu3 %v4479_v11  ;;  %4113 = vmatpush.bf16.msra.mxu0 %v4575_v15 }
 0xbe0   :  { %4126 = vmatpush.bf16.msra.mxu1 %v4671_v56  ;;  %4139 = vmatpush.bf16.msra.mxu2 %v4767_v8 }
 0xbe3   :  { %4101 = vmatpush.bf16.msra.mxu3 %v4467_v4  ;;  %4114 = vmatpush.bf16.msra.mxu0 %v4563_v46 }
 0xbe4   :  { %4127 = vmatpush.bf16.msra.mxu1 %v4659_v12  ;;  %4140 = vmatpush.bf16.msra.mxu2 %v4755_v38 }
 0xbe7   :  { %4102 = vmatpush.bf16.msra.mxu3 %v4455_v16  ;;  %4115 = vmatpush.bf16.msra.mxu0 %v4551_v39 }
 0xbe8   :  { %4128 = vmatpush.bf16.msra.mxu1 %v4647_v48  ;;  %4141 = vmatpush.bf16.msra.mxu2 %v4743_v62 }
 0xbeb   :  { %4103 = vmatpush.bf16.msra.mxu3 %v4443_v13  ;;  %4116 = vmatpush.bf16.msra.mxu0 %v4539_v17 }
 0xbec   :  { %4129 = vmatpush.bf16.msra.mxu1 %v4635_v28  ;;  %4142 = vmatpush.bf16.msra.mxu2 %v4731_v63 }
 0xbee   :  { %4104 = vmatmul.bf16.vlgmr.msra.gmra.mxu3 %v6862_v14  ;;  %4117 = vmatmul.bf16.vlgmr.msra.gmra.mxu0 %v6864_v55  ;;  %v3472_v55 = vld [vmem:[%s6918_s25] sm:$0x7] }
 0xbef   :  { %4130 = vmatmul.bf16.vlgmr.msra.gmra.mxu1 %v6866_v24  ;;  %4143 = vmatmul.bf16.vlgmr.msra.gmra.mxu2 %v6860_v6  ;;  %v3474_v41 = vperm.slane %v3472_v55, 0  ;;  %v3475_v31 = vperm.slane %v3472_v55, 1  ;;  %v3476_v19 = vperm.slane %v3472_v55, 2 }
 0xc4b   :  { %v4014_v5 = vpop.f32.mrf.mxu0  ;;  %v4027_v51 = vpop.f32.mrf.mxu1 }
 0xc50   :  { %v4001_v34 = vpop.f32.mrf.mxu3  ;;  %v4040_v25 = vpop.f32.mrf.mxu2 }
 0xc51   :  { %v4002_v22 = vadd.f32 %v4001_v34, %v3474_v41 }
 0xc53   :  { %v4016_v14 = vpop.f32.mrf.mxu0  ;;  %v4029_v29 = vpop.f32.mrf.mxu1  ;;  %v4015_v44 = vadd.f32 %v4014_v5, %v4002_v22 }
 0xc55   :  { %v4028_v21 = vadd.f32 %v4027_v51, %v4015_v44 }
 0xc57   :  { %v4041_v32 = vadd.f32 %v4040_v25, %v4028_v21 }
 0xc58   :  { %v4003_v6 = vpop.f32.mrf.mxu3  ;;  %v4042_v24 = vpop.f32.mrf.mxu2 }
 0xc5b   :  { %v4066_v50 = vpop.f32.mrf.mxu0  ;;  %v4079_v42 = vpop.f32.mrf.mxu1 }
 0xc60   :  { %v4053_v2 = vpop.f32.mrf.mxu3  ;;  %v4092_v35 = vpop.f32.mrf.mxu2 }
 0xc61   :  { %v4054_v43 = vadd.f32 %v4053_v2, %v3475_v31 }
 0xc63   :  { %v4067_v20 = vadd.f32 %v4066_v50, %v4054_v43  ;;  %v4068_v30 = vpop.f32.mrf.mxu0  ;;  %v4081_v9 = vpop.f32.mrf.mxu1 }
 0xc65   :  { %v4080_v57 = vadd.f32 %v4079_v42, %v4067_v20 }
 0xc67   :  { %v4093_v23 = vadd.f32 %v4092_v35, %v4080_v57 }
 0xc68   :  { %v4055_v11 = vpop.f32.mrf.mxu3  ;;  %v4094_v15 = vpop.f32.mrf.mxu2 }
 0xc69   :  { %v4150_v27 = vrot.slane %v4093_v23, 4 }
 0xc6b   :  { %v4151_v56 = vsel %vm2494_vm10, %v4041_v32, %v4150_v27  ;;  %v4118_v8 = vpop.f32.mrf.mxu0 }
 0xc6c   :  { %4153 = vst [vmem:[%s6921_s28] sm:$0xff] %v4151_v56  ;;  %v4131_v0 = vpop.f32.mrf.mxu1 }
 0xc71   :  { %v4105_v33 = vpop.f32.mrf.mxu3 }
 0xc72   :  { %v4106_v40 = vadd.f32 %v4105_v33, %v3476_v19  ;;  %v4144_v49 = vpop.f32.mrf.mxu2 }
 0xc73   :  { %v4120_v18 = vpop.f32.mrf.mxu0 }
 0xc74   :  { %v4119_v4 = vadd.f32 %v4118_v8, %v4106_v40  ;;  %v4133_v46 = vpop.f32.mrf.mxu1 }
 0xc76   :  { %v4132_v52 = vadd.f32 %v4131_v0, %v4119_v4 }
 0xc78   :  { %v4145_v53 = vadd.f32 %v4144_v49, %v4132_v52 }
 0xc79   :  { %v4107_v12 = vpop.f32.mrf.mxu3 }
 0xc7a   :  { %4154 = vst [vmem:[%s6921_s28 + $0x8] sm:$0xf] %v4145_v53  ;;  %v4146_v38 = vpop.f32.mrf.mxu2 }
 0xc7b   :  { %5123 = dma.done.wait [#allocation4], 64  }
 0xc7c   :  { %5124 = vsyncadd [#allocation4], 4294967232 }
 0xc7d   :  { %4178 = vsyncpa [#allocation3], 1 }
 0xc7e   :  { %4179 = vsyncpa [#allocation6], 1 }
 0xc7f   :  { %4180 = vsyncpa [#allocation4], 1 }

</bundles_post_ra>
